<compile_context>
chip_gen: v7x
topology: tpu7x:2x2x1
jax: 0.10.0
libtpu: 0.0.40
codegen_flags: <defaults>
</compile_context>

<pallas_src>
import functools
import math

import jax
import jax.numpy as jnp
from jax.experimental import pallas as pl
from jax.experimental.pallas import tpu as pltpu

_BN_EPS = 1e-5
_N_PVEC = 13          # per-block packed per-channel vectors (biases/gammas/betas)


# --------------------------- layout bookkeeping ------------------------------

def _weight_layout(c1, c2):
    """Row layout of the per-block packed weight slab (weights stored Cout-major)."""
    C1, C2 = 2 * c1, 2 * c2
    entries = [
        ("conv1",   C1, 14 * 2),     # fused conv1_1 / conv1_2 (block-diagonal)
        ("conv2",   C2, 14 * C1),    # fused conv2_1 / conv2_2
        ("deconv1", C2, 10 * C2),
        ("deconv2", C2, 10 * C2),
        ("mix",     2,  3 * C2),
    ]
    layout, r, wmax = {}, 0, 0
    for name, nr, nc in entries:
        layout[name] = (r, nr, nc)
        r += nr
        wmax = max(wmax, nc)
    rows = ((r + 7) // 8) * 8        # tidy sublane padding per block
    return layout, rows, wmax


# --------------------------------- kernel ------------------------------------

def make_kernel(num_blocks, c1, c2, n_batch, length):
    C1, C2 = 2 * c1, 2 * c2
    nl = n_batch * length            # spatial*batch on lanes (128 in the demo)
    nl1, nl2 = nl // 2, nl // 4
    wl, wrows, _ = _weight_layout(c1, c2)

    def relu(v):
        return jnp.maximum(v, 0.0)

    def batchnorm(h, gamma, beta):
        # Training-mode BatchNorm1d (biased variance); reduction over the lane
        # axis; centered two-pass variance for numerical robustness.
        mean = jnp.mean(h, axis=-1, keepdims=True)
        d = h - mean
        var = jnp.mean(d * d, axis=-1, keepdims=True)
        scale = gamma * jax.lax.rsqrt(var + _BN_EPS)
        return d * scale + beta

    def conv(x, sel, k, nlo, w, bias):
        # im2col gather: (Cin, N*l_in) @ (N*l_in, K*N*l_out) -> (Cin, K*N*l_out)
        g = jnp.dot(x, sel, preferred_element_type=jnp.float32)
        # Restack taps onto sublanes -> (K*Cin, N*l_out); every piece is
        # lane-dense (32/64/128 lanes), unlike the previous channel-width slices.
        z = jnp.concatenate([g[:, t * nlo:(t + 1) * nlo] for t in range(k)], axis=0)
        # Channel matmul: output (Cout, N*l_out) keeps spatial on lanes.
        return jnp.dot(w, z, preferred_element_type=jnp.float32) + bias

    def kernel(x_ref, s1_ref, s2_ref, sd1_ref, sd2_ref, sm_ref,
               w_ref, p_ref, out_ref):
        # Upcast bf16 0/1 selection matrices once (exact), shared by all blocks.
        s1 = s1_ref[...].astype(jnp.float32)
        s2 = s2_ref[...].astype(jnp.float32)
        sd1 = sd1_ref[...].astype(jnp.float32)
        sd2 = sd2_ref[...].astype(jnp.float32)
        sm = sm_ref[...].astype(jnp.float32)
        wslab = w_ref[...]
        pslab = p_ref[...]

        def wmat(b, name):
            r0, nr, nc = wl[name]
            r0 += b * wrows
            return wslab[r0:r0 + nr, 0:nc]

        def pvec(b, i, c):
            j = b * _N_PVEC + i
            return pslab[0:c, j:j + 1]           # (C, 1) column for broadcast

        x = x_ref[...]                            # (2, N*L) lane-dense f32 slab
        for b in range(num_blocks):               # fused Evo blocks, all in VMEM
            # conv1_1/conv1_2 (stride 2, circular) fused -> relu -> bn1
            h = relu(conv(x, s1, 14, nl1, wmat(b, "conv1"), pvec(b, 0, C1)))
            h = batchnorm(h, pvec(b, 1, C1), pvec(b, 2, C1))
            # conv2_1/conv2_2 fused -> relu -> bn2
            h = relu(conv(h, s2, 14, nl2, wmat(b, "conv2"), pvec(b, 3, C2)))
            h = batchnorm(h, pvec(b, 4, C2), pvec(b, 5, C2))
            # deconv1 (stride-2 transposed, zero boundary) -> relu -> bn3
            h = relu(conv(h, sd1, 10, nl1, wmat(b, "deconv1"), pvec(b, 6, C2)))
            h = batchnorm(h, pvec(b, 7, C2), pvec(b, 8, C2))
            # deconv2 -> relu -> bn4
            h = relu(conv(h, sd2, 10, nl, wmat(b, "deconv2"), pvec(b, 9, C2)))
            h = batchnorm(h, pvec(b, 10, C2), pvec(b, 11, C2))
            # mix (stride 1, zero padding) + residual
            x = conv(h, sm, 3, nl, wmat(b, "mix"), pvec(b, 12, 2)) + x
        out_ref[...] = x.astype(out_ref.dtype)    # already (C, N*L): no transpose

    return kernel


# --------------------------------- wrapper -----------------------------------

def pdenet_forward(x_ncl, sels, w_slab, p_slab, *, num_blocks, c1, c2):
    # x_ncl follows the PyTorch Conv1d convention (N, C=2, L).
    n, c, L = x_ncl.shape
    x_cnl = jnp.transpose(x_ncl, (1, 0, 2)).reshape(c, n * L).astype(jnp.float32)
    kernel = make_kernel(num_blocks, c1, c2, n, L)
    vmem = pl.BlockSpec(memory_space=pltpu.MemorySpace.VMEM)
    # TODO(synk): single grid point -> no DMA/compute overlap and one TensorCore
    # on v7x; BatchNorm couples the whole batch, so splitting needs eval-mode BN
    # or a cross-core reduction and is intentionally not done at this size.
    out = pl.pallas_call(
        kernel,
        out_shape=jax.ShapeDtypeStruct((c, n * L), jnp.float32),
        in_specs=[vmem] * (3 + len(sels)),
        out_specs=vmem,
    )(x_cnl, *sels, w_slab, p_slab)
    return out.reshape(c, n, L).transpose(1, 0, 2).astype(x_ncl.dtype)


# ------------------- selection-matrix construction (wrapper) -----------------

def _sel_circular(l_out, l_in, offset):
    # A[j, m] = 1  where  m == (2*j + offset) mod l_in   (circular pad, stride 2)
    r = jnp.arange(l_out)[:, None]
    c = jnp.arange(l_in)[None, :]
    return (c == jnp.mod(2 * r + offset, l_in)).astype(jnp.float32)


def _sel_transposed(l_out, l_in, offset):
    # B[l, j] = 1  where  l + offset == 2*j              (stride-2 transposed conv)
    r = jnp.arange(l_out)[:, None]
    c = jnp.arange(l_in)[None, :]
    return ((r + offset) == 2 * c).astype(jnp.float32)


def _sel_zeropad(l, offset):
    # C[l, m] = 1  where  m == l + offset                (zero padding, stride 1)
    r = jnp.arange(l)[:, None]
    c = jnp.arange(l)[None, :]
    return (c == r + offset).astype(jnp.float32)


def _stack_taps(tap_sels, n_batch):
    # Per-sample block-diagonal (kron with I_N), taps stacked along rows.
    eye = jnp.eye(n_batch, dtype=jnp.float32)
    return jnp.concatenate([jnp.kron(eye, s) for s in tap_sels], axis=0)


def build_selectors(n_batch, length):
    # TODO(synk): the kron(I_N) block-diagonal sels scale O(batch^2); for large
    # batches switch to a per-sample batched contraction or a batch grid axis.
    l1, l2 = length // 2, length // 4

    def to_new_layout(s):     # (K*N*l_out, N*l_in) -> (N*l_in, K*N*l_out), bf16
        return jnp.transpose(s).astype(jnp.bfloat16)

    s1 = _stack_taps([_sel_circular(l1, length, t - 3) for t in range(7)]
                     + [_sel_circular(l1, length, 2 * t - 6) for t in range(7)],
                     n_batch)
    s2 = _stack_taps([_sel_circular(l2, l1, t - 3) for t in range(7)]
                     + [_sel_circular(l2, l1, 2 * t - 6) for t in range(7)],
                     n_batch)
    sd1 = _stack_taps([_sel_transposed(l1, l2, 4 - k) for k in range(10)], n_batch)
    sd2 = _stack_taps([_sel_transposed(length, l1, 4 - k) for k in range(10)], n_batch)
    sm = _stack_taps([_sel_zeropad(length, t - 1) for t in range(3)], n_batch)
    return [to_new_layout(s) for s in (s1, s2, sd1, sd2, sm)]


# --------------------- parameter init / packing (plain JAX) ------------------

def init_block_params(key, factor):
    c1 = math.floor(8 * factor)
    c2 = math.floor(10 * factor)
    keys = iter(jax.random.split(key, 24))

    def nrm(shape, scale):
        return scale * jax.random.normal(next(keys), shape, dtype=jnp.float32)

    p = {
        "w11": nrm((c1, 2, 7), 0.25), "b11": nrm((c1,), 0.1),
        "w12": nrm((c1, 2, 7), 0.25), "b12": nrm((c1,), 0.1),
        "g1": 1.0 + nrm((2 * c1,), 0.1), "e1": nrm((2 * c1,), 0.1),
        "w21": nrm((c2, 2 * c1, 7), 0.09), "b21": nrm((c2,), 0.1),
        "w22": nrm((c2, 2 * c1, 7), 0.09), "b22": nrm((c2,), 0.1),
        "g2": 1.0 + nrm((2 * c2,), 0.1), "e2": nrm((2 * c2,), 0.1),
        "wd1": nrm((2 * c2, 2 * c2, 10), 0.07), "bd1": nrm((2 * c2,), 0.1),
        "g3": 1.0 + nrm((2 * c2,), 0.1), "e3": nrm((2 * c2,), 0.1),
        "wd2": nrm((2 * c2, 2 * c2, 10), 0.07), "bd2": nrm((2 * c2,), 0.1),
        "g4": 1.0 + nrm((2 * c2,), 0.1), "e4": nrm((2 * c2,), 0.1),
        "wm": nrm((2, 2 * c2, 3), 0.12), "bm": nrm((2,), 0.1),
    }
    return p, c1, c2


def _conv_w(w):       # torch Conv1d (Co, Ci, K) -> (Co, K*Ci), col = t*Ci + ci
    co, ci, k = w.shape
    return jnp.transpose(w, (0, 2, 1)).reshape(co, k * ci)


def _tconv_w(w):      # torch ConvTranspose1d (Ci, Co, K) -> (Co, K*Ci)
    ci, co, k = w.shape
    return jnp.transpose(w, (1, 2, 0)).reshape(co, k * ci)


def _fuse_pair(wa, wb):   # dual conv -> block-diagonal (2*Co, 2*K*Ci)
    za, zb = _conv_w(wa), _conv_w(wb)
    top = jnp.concatenate([za, jnp.zeros_like(zb)], axis=1)
    bot = jnp.concatenate([jnp.zeros_like(za), zb], axis=1)
    return jnp.concatenate([top, bot], axis=0)


def pack_block_weights(p, c1, c2):
    layout, rows, wmax = _weight_layout(c1, c2)
    mats = {
        "conv1": _fuse_pair(p["w11"], p["w12"]),
        "conv2": _fuse_pair(p["w21"], p["w22"]),
        "deconv1": _tconv_w(p["wd1"]),
        "deconv2": _tconv_w(p["wd2"]),
        "mix": _conv_w(p["wm"]),
    }
    parts = [jnp.pad(mats[name], ((0, 0), (0, wmax - nc)))
             for name, (_, _, nc) in layout.items()]
    slab = jnp.concatenate(parts, axis=0)
    return jnp.pad(slab, ((0, rows - slab.shape[0]), (0, 0)))


def pack_block_vectors(p, c1, c2):
    C1, C2 = 2 * c1, 2 * c2
    cmax = max(C1, C2, 8)
    vecs = [jnp.concatenate([p["b11"], p["b12"]]), p["g1"], p["e1"],
            jnp.concatenate([p["b21"], p["b22"]]), p["g2"], p["e2"],
            p["bd1"], p["g3"], p["e3"],
            p["bd2"], p["g4"], p["e4"],
            p["bm"]]
    assert len(vecs) == _N_PVEC
    cols = [jnp.pad(v, (0, cmax - v.shape[0]))[:, None] for v in vecs]
    return jnp.concatenate(cols, axis=1)          # (cmax, 13) column-per-vector


# ------------------------------------ main -----------------------------------

if __name__ == "__main__":
    num_blocks = 2
    factor = 1.0
    batch, length = 2, 64          # length divisible by 4; batch*length = 128 lanes

    root = jax.random.PRNGKey(0)
    k_x, k_p = jax.random.split(root)
    x = jax.random.normal(k_x, (batch, 2, length), dtype=jnp.float32)

    w_slabs, p_slabs = [], []
    c1 = c2 = None
    for bk in jax.random.split(k_p, num_blocks):
        p, c1, c2 = init_block_params(bk, factor)
        w_slabs.append(pack_block_weights(p, c1, c2))
        p_slabs.append(pack_block_vectors(p, c1, c2))
    w_slab = jnp.concatenate(w_slabs, axis=0)     # (num_blocks * rows, wmax)
    p_slab = jnp.concatenate(p_slabs, axis=1)     # (cmax, num_blocks * 13)

    sels = build_selectors(batch, length)

    fwd = jax.jit(functools.partial(pdenet_forward,
                                    num_blocks=num_blocks, c1=c1, c2=c2))
    out = jax.block_until_ready(fwd(x, sels, w_slab, p_slab))

    assert out.shape == x.shape and out.dtype == jnp.float32
    assert bool(jnp.all(jnp.isfinite(out)))
    # TODO(synk): torch BatchNorm also updates running_mean/var buffers in
    # training mode; that stateful side effect does not affect the forward
    # output and is intentionally not modeled.
    print("KERNEL_OK")
</pallas_src>

<mosaic_0001>
module attributes {stable_mosaic.version = 11 : i64} {
  func.func @kernel(%arg0: memref<2x128xf32, #tpu.memory_space<vmem>>, %arg1: memref<128x896xbf16, #tpu.memory_space<vmem>>, %arg2: memref<64x448xbf16, #tpu.memory_space<vmem>>, %arg3: memref<32x640xbf16, #tpu.memory_space<vmem>>, %arg4: memref<64x1280xbf16, #tpu.memory_space<vmem>>, %arg5: memref<128x384xbf16, #tpu.memory_space<vmem>>, %arg6: memref<160x224xf32, #tpu.memory_space<vmem>>, %arg7: memref<20x26xf32, #tpu.memory_space<vmem>>, %arg8: memref<2x128xf32, #tpu.memory_space<vmem>>) attributes {dimension_semantics = [], scalar_prefetch = 0 : i64, scratch_operands = 0 : i64, tpu.core_type = #tpu.core_type<tc>} {
    %c0 = arith.constant 0 : index
    %c0_0 = arith.constant 0 : index
    %0 = vector.load %arg1[%c0, %c0_0] : memref<128x896xbf16, #tpu.memory_space<vmem>>, vector<128x896xbf16>
    %1 = arith.extf %0 : vector<128x896xbf16> to vector<128x896xf32>
    %c0_1 = arith.constant 0 : index
    %c0_2 = arith.constant 0 : index
    %2 = vector.load %arg2[%c0_1, %c0_2] : memref<64x448xbf16, #tpu.memory_space<vmem>>, vector<64x448xbf16>
    %3 = arith.extf %2 : vector<64x448xbf16> to vector<64x448xf32>
    %c0_3 = arith.constant 0 : index
    %c0_4 = arith.constant 0 : index
    %4 = vector.load %arg3[%c0_3, %c0_4] : memref<32x640xbf16, #tpu.memory_space<vmem>>, vector<32x640xbf16>
    %5 = arith.extf %4 : vector<32x640xbf16> to vector<32x640xf32>
    %c0_5 = arith.constant 0 : index
    %c0_6 = arith.constant 0 : index
    %6 = vector.load %arg4[%c0_5, %c0_6] : memref<64x1280xbf16, #tpu.memory_space<vmem>>, vector<64x1280xbf16>
    %7 = arith.extf %6 : vector<64x1280xbf16> to vector<64x1280xf32>
    %c0_7 = arith.constant 0 : index
    %c0_8 = arith.constant 0 : index
    %8 = vector.load %arg5[%c0_7, %c0_8] : memref<128x384xbf16, #tpu.memory_space<vmem>>, vector<128x384xbf16>
    %9 = arith.extf %8 : vector<128x384xbf16> to vector<128x384xf32>
    %c0_9 = arith.constant 0 : index
    %c0_10 = arith.constant 0 : index
    %10 = vector.load %arg6[%c0_9, %c0_10] : memref<160x224xf32, #tpu.memory_space<vmem>>, vector<160x224xf32>
    %c0_11 = arith.constant 0 : index
    %c0_12 = arith.constant 0 : index
    %11 = vector.load %arg7[%c0_11, %c0_12] : memref<20x26xf32, #tpu.memory_space<vmem>>, vector<20x26xf32>
    %c0_13 = arith.constant 0 : index
    %c0_14 = arith.constant 0 : index
    %12 = vector.load %arg0[%c0_13, %c0_14] : memref<2x128xf32, #tpu.memory_space<vmem>>, vector<2x128xf32>
    %13 = vector.extract_strided_slice %10 {offsets = [0, 0], sizes = [16, 28], strides = [1, 1]} : vector<160x224xf32> to vector<16x28xf32>
    %14 = vector.extract_strided_slice %11 {offsets = [0, 0], sizes = [16, 1], strides = [1, 1]} : vector<20x26xf32> to vector<16x1xf32>
    %cst = arith.constant dense<0.000000e+00> : vector<2x896xf32>
    %15 = tpu.matmul %12, %1, %cst {dimension_numbers = #tpu.dot_dimension_numbers<[1], [0], [0], [1], [0, 0, 1, 1], [], []>} : vector<2x128xf32>, vector<128x896xf32>, vector<2x896xf32> -> vector<2x896xf32>
    %16 = vector.extract_strided_slice %15 {offsets = [0, 0], sizes = [2, 64], strides = [1, 1]} : vector<2x896xf32> to vector<2x64xf32>
    %17 = vector.extract_strided_slice %15 {offsets = [0, 64], sizes = [2, 64], strides = [1, 1]} : vector<2x896xf32> to vector<2x64xf32>
    %18 = vector.extract_strided_slice %15 {offsets = [0, 128], sizes = [2, 64], strides = [1, 1]} : vector<2x896xf32> to vector<2x64xf32>
    %19 = vector.extract_strided_slice %15 {offsets = [0, 192], sizes = [2, 64], strides = [1, 1]} : vector<2x896xf32> to vector<2x64xf32>
    %20 = vector.extract_strided_slice %15 {offsets = [0, 256], sizes = [2, 64], strides = [1, 1]} : vector<2x896xf32> to vector<2x64xf32>
    %21 = vector.extract_strided_slice %15 {offsets = [0, 320], sizes = [2, 64], strides = [1, 1]} : vector<2x896xf32> to vector<2x64xf32>
    %22 = vector.extract_strided_slice %15 {offsets = [0, 384], sizes = [2, 64], strides = [1, 1]} : vector<2x896xf32> to vector<2x64xf32>
    %23 = vector.extract_strided_slice %15 {offsets = [0, 448], sizes = [2, 64], strides = [1, 1]} : vector<2x896xf32> to vector<2x64xf32>
    %24 = vector.extract_strided_slice %15 {offsets = [0, 512], sizes = [2, 64], strides = [1, 1]} : vector<2x896xf32> to vector<2x64xf32>
    %25 = vector.extract_strided_slice %15 {offsets = [0, 576], sizes = [2, 64], strides = [1, 1]} : vector<2x896xf32> to vector<2x64xf32>
    %26 = vector.extract_strided_slice %15 {offsets = [0, 640], sizes = [2, 64], strides = [1, 1]} : vector<2x896xf32> to vector<2x64xf32>
    %27 = vector.extract_strided_slice %15 {offsets = [0, 704], sizes = [2, 64], strides = [1, 1]} : vector<2x896xf32> to vector<2x64xf32>
    %28 = vector.extract_strided_slice %15 {offsets = [0, 768], sizes = [2, 64], strides = [1, 1]} : vector<2x896xf32> to vector<2x64xf32>
    %29 = vector.extract_strided_slice %15 {offsets = [0, 832], sizes = [2, 64], strides = [1, 1]} : vector<2x896xf32> to vector<2x64xf32>
    %30 = tpu.concatenate %16, %17, %18, %19, %20, %21, %22, %23, %24, %25, %26, %27, %28, %29 in 0 : vector<2x64xf32>, vector<2x64xf32>, vector<2x64xf32>, vector<2x64xf32>, vector<2x64xf32>, vector<2x64xf32>, vector<2x64xf32>, vector<2x64xf32>, vector<2x64xf32>, vector<2x64xf32>, vector<2x64xf32>, vector<2x64xf32>, vector<2x64xf32>, vector<2x64xf32> -> vector<28x64xf32>
    %cst_15 = arith.constant dense<0.000000e+00> : vector<16x64xf32>
    %31 = tpu.matmul %13, %30, %cst_15 {dimension_numbers = #tpu.dot_dimension_numbers<[1], [0], [0], [1], [0, 0, 1, 1], [], []>} : vector<16x28xf32>, vector<28x64xf32>, vector<16x64xf32> -> vector<16x64xf32>
    %32 = vector.broadcast %14 : vector<16x1xf32> to vector<16x64xf32>
    %33 = arith.addf %31, %32 : vector<16x64xf32>
    %cst_16 = arith.constant 0.000000e+00 : f32
    %34 = vector.broadcast %cst_16 : f32 to vector<16x64xf32>
    %35 = arith.maximumf %33, %34 : vector<16x64xf32>
    %36 = vector.extract_strided_slice %11 {offsets = [0, 1], sizes = [16, 1], strides = [1, 1]} : vector<20x26xf32> to vector<16x1xf32>
    %37 = vector.extract_strided_slice %11 {offsets = [0, 2], sizes = [16, 1], strides = [1, 1]} : vector<20x26xf32> to vector<16x1xf32>
    %cst_17 = arith.constant dense<0.000000e+00> : vector<16xf32>
    %38 = vector.multi_reduction <add>, %35, %cst_17 [1] : vector<16x64xf32> to vector<16xf32>
    %39 = vector.shape_cast %38 : vector<16xf32> to vector<16x1xf32>
    %cst_18 = arith.constant 6.400000e+01 : f32
    %40 = vector.broadcast %cst_18 : f32 to vector<16x1xf32>
    %41 = arith.divf %39, %40 : vector<16x1xf32>
    %42 = vector.broadcast %41 : vector<16x1xf32> to vector<16x64xf32>
    %43 = arith.subf %35, %42 : vector<16x64xf32>
    %44 = arith.mulf %43, %43 : vector<16x64xf32>
    %cst_19 = arith.constant dense<0.000000e+00> : vector<16xf32>
    %45 = vector.multi_reduction <add>, %44, %cst_19 [1] : vector<16x64xf32> to vector<16xf32>
    %46 = vector.shape_cast %45 : vector<16xf32> to vector<16x1xf32>
    %cst_20 = arith.constant 6.400000e+01 : f32
    %47 = vector.broadcast %cst_20 : f32 to vector<16x1xf32>
    %48 = arith.divf %46, %47 : vector<16x1xf32>
    %cst_21 = arith.constant 9.99999974E-6 : f32
    %49 = vector.broadcast %cst_21 : f32 to vector<16x1xf32>
    %50 = arith.addf %48, %49 : vector<16x1xf32>
    %51 = math.rsqrt %50 : vector<16x1xf32>
    %52 = arith.mulf %36, %51 : vector<16x1xf32>
    %53 = vector.broadcast %52 : vector<16x1xf32> to vector<16x64xf32>
    %54 = arith.mulf %43, %53 : vector<16x64xf32>
    %55 = vector.broadcast %37 : vector<16x1xf32> to vector<16x64xf32>
    %56 = arith.addf %54, %55 : vector<16x64xf32>
    %57 = vector.extract_strided_slice %10 {offsets = [16, 0], sizes = [20, 224], strides = [1, 1]} : vector<160x224xf32> to vector<20x224xf32>
    %58 = vector.extract_strided_slice %11 {offsets = [0, 3], sizes = [20, 1], strides = [1, 1]} : vector<20x26xf32> to vector<20x1xf32>
    %cst_22 = arith.constant dense<0.000000e+00> : vector<16x448xf32>
    %59 = tpu.matmul %56, %3, %cst_22 {dimension_numbers = #tpu.dot_dimension_numbers<[1], [0], [0], [1], [0, 0, 1, 1], [], []>} : vector<16x64xf32>, vector<64x448xf32>, vector<16x448xf32> -> vector<16x448xf32>
    %60 = vector.extract_strided_slice %59 {offsets = [0, 0], sizes = [16, 32], strides = [1, 1]} : vector<16x448xf32> to vector<16x32xf32>
    %61 = vector.extract_strided_slice %59 {offsets = [0, 32], sizes = [16, 32], strides = [1, 1]} : vector<16x448xf32> to vector<16x32xf32>
    %62 = vector.extract_strided_slice %59 {offsets = [0, 64], sizes = [16, 32], strides = [1, 1]} : vector<16x448xf32> to vector<16x32xf32>
    %63 = vector.extract_strided_slice %59 {offsets = [0, 96], sizes = [16, 32], strides = [1, 1]} : vector<16x448xf32> to vector<16x32xf32>
    %64 = vector.extract_strided_slice %59 {offsets = [0, 128], sizes = [16, 32], strides = [1, 1]} : vector<16x448xf32> to vector<16x32xf32>
    %65 = vector.extract_strided_slice %59 {offsets = [0, 160], sizes = [16, 32], strides = [1, 1]} : vector<16x448xf32> to vector<16x32xf32>
    %66 = vector.extract_strided_slice %59 {offsets = [0, 192], sizes = [16, 32], strides = [1, 1]} : vector<16x448xf32> to vector<16x32xf32>
    %67 = vector.extract_strided_slice %59 {offsets = [0, 224], sizes = [16, 32], strides = [1, 1]} : vector<16x448xf32> to vector<16x32xf32>
    %68 = vector.extract_strided_slice %59 {offsets = [0, 256], sizes = [16, 32], strides = [1, 1]} : vector<16x448xf32> to vector<16x32xf32>
    %69 = vector.extract_strided_slice %59 {offsets = [0, 288], sizes = [16, 32], strides = [1, 1]} : vector<16x448xf32> to vector<16x32xf32>
    %70 = vector.extract_strided_slice %59 {offsets = [0, 320], sizes = [16, 32], strides = [1, 1]} : vector<16x448xf32> to vector<16x32xf32>
    %71 = vector.extract_strided_slice %59 {offsets = [0, 352], sizes = [16, 32], strides = [1, 1]} : vector<16x448xf32> to vector<16x32xf32>
    %72 = vector.extract_strided_slice %59 {offsets = [0, 384], sizes = [16, 32], strides = [1, 1]} : vector<16x448xf32> to vector<16x32xf32>
    %73 = vector.extract_strided_slice %59 {offsets = [0, 416], sizes = [16, 32], strides = [1, 1]} : vector<16x448xf32> to vector<16x32xf32>
    %74 = tpu.concatenate %60, %61, %62, %63, %64, %65, %66, %67, %68, %69, %70, %71, %72, %73 in 0 : vector<16x32xf32>, vector<16x32xf32>, vector<16x32xf32>, vector<16x32xf32>, vector<16x32xf32>, vector<16x32xf32>, vector<16x32xf32>, vector<16x32xf32>, vector<16x32xf32>, vector<16x32xf32>, vector<16x32xf32>, vector<16x32xf32>, vector<16x32xf32>, vector<16x32xf32> -> vector<224x32xf32>
    %cst_23 = arith.constant dense<0.000000e+00> : vector<20x32xf32>
    %75 = tpu.matmul %57, %74, %cst_23 {dimension_numbers = #tpu.dot_dimension_numbers<[1], [0], [0], [1], [0, 0, 1, 1], [], []>} : vector<20x224xf32>, vector<224x32xf32>, vector<20x32xf32> -> vector<20x32xf32>
    %76 = vector.broadcast %58 : vector<20x1xf32> to vector<20x32xf32>
    %77 = arith.addf %75, %76 : vector<20x32xf32>
    %cst_24 = arith.constant 0.000000e+00 : f32
    %78 = vector.broadcast %cst_24 : f32 to vector<20x32xf32>
    %79 = arith.maximumf %77, %78 : vector<20x32xf32>
    %80 = vector.extract_strided_slice %11 {offsets = [0, 4], sizes = [20, 1], strides = [1, 1]} : vector<20x26xf32> to vector<20x1xf32>
    %81 = vector.extract_strided_slice %11 {offsets = [0, 5], sizes = [20, 1], strides = [1, 1]} : vector<20x26xf32> to vector<20x1xf32>
    %cst_25 = arith.constant dense<0.000000e+00> : vector<20xf32>
    %82 = vector.multi_reduction <add>, %79, %cst_25 [1] : vector<20x32xf32> to vector<20xf32>
    %83 = vector.shape_cast %82 : vector<20xf32> to vector<20x1xf32>
    %cst_26 = arith.constant 3.200000e+01 : f32
    %84 = vector.broadcast %cst_26 : f32 to vector<20x1xf32>
    %85 = arith.divf %83, %84 : vector<20x1xf32>
    %86 = vector.broadcast %85 : vector<20x1xf32> to vector<20x32xf32>
    %87 = arith.subf %79, %86 : vector<20x32xf32>
    %88 = arith.mulf %87, %87 : vector<20x32xf32>
    %cst_27 = arith.constant dense<0.000000e+00> : vector<20xf32>
    %89 = vector.multi_reduction <add>, %88, %cst_27 [1] : vector<20x32xf32> to vector<20xf32>
    %90 = vector.shape_cast %89 : vector<20xf32> to vector<20x1xf32>
    %cst_28 = arith.constant 3.200000e+01 : f32
    %91 = vector.broadcast %cst_28 : f32 to vector<20x1xf32>
    %92 = arith.divf %90, %91 : vector<20x1xf32>
    %cst_29 = arith.constant 9.99999974E-6 : f32
    %93 = vector.broadcast %cst_29 : f32 to vector<20x1xf32>
    %94 = arith.addf %92, %93 : vector<20x1xf32>
    %95 = math.rsqrt %94 : vector<20x1xf32>
    %96 = arith.mulf %80, %95 : vector<20x1xf32>
    %97 = vector.broadcast %96 : vector<20x1xf32> to vector<20x32xf32>
    %98 = arith.mulf %87, %97 : vector<20x32xf32>
    %99 = vector.broadcast %81 : vector<20x1xf32> to vector<20x32xf32>
    %100 = arith.addf %98, %99 : vector<20x32xf32>
    %101 = vector.extract_strided_slice %10 {offsets = [36, 0], sizes = [20, 200], strides = [1, 1]} : vector<160x224xf32> to vector<20x200xf32>
    %102 = vector.extract_strided_slice %11 {offsets = [0, 6], sizes = [20, 1], strides = [1, 1]} : vector<20x26xf32> to vector<20x1xf32>
    %cst_30 = arith.constant dense<0.000000e+00> : vector<20x640xf32>
    %103 = tpu.matmul %100, %5, %cst_30 {dimension_numbers = #tpu.dot_dimension_numbers<[1], [0], [0], [1], [0, 0, 1, 1], [], []>} : vector<20x32xf32>, vector<32x640xf32>, vector<20x640xf32> -> vector<20x640xf32>
    %104 = vector.extract_strided_slice %103 {offsets = [0, 0], sizes = [20, 64], strides = [1, 1]} : vector<20x640xf32> to vector<20x64xf32>
    %105 = vector.extract_strided_slice %103 {offsets = [0, 64], sizes = [20, 64], strides = [1, 1]} : vector<20x640xf32> to vector<20x64xf32>
    %106 = vector.extract_strided_slice %103 {offsets = [0, 128], sizes = [20, 64], strides = [1, 1]} : vector<20x640xf32> to vector<20x64xf32>
    %107 = vector.extract_strided_slice %103 {offsets = [0, 192], sizes = [20, 64], strides = [1, 1]} : vector<20x640xf32> to vector<20x64xf32>
    %108 = vector.extract_strided_slice %103 {offsets = [0, 256], sizes = [20, 64], strides = [1, 1]} : vector<20x640xf32> to vector<20x64xf32>
    %109 = vector.extract_strided_slice %103 {offsets = [0, 320], sizes = [20, 64], strides = [1, 1]} : vector<20x640xf32> to vector<20x64xf32>
    %110 = vector.extract_strided_slice %103 {offsets = [0, 384], sizes = [20, 64], strides = [1, 1]} : vector<20x640xf32> to vector<20x64xf32>
    %111 = vector.extract_strided_slice %103 {offsets = [0, 448], sizes = [20, 64], strides = [1, 1]} : vector<20x640xf32> to vector<20x64xf32>
    %112 = vector.extract_strided_slice %103 {offsets = [0, 512], sizes = [20, 64], strides = [1, 1]} : vector<20x640xf32> to vector<20x64xf32>
    %113 = vector.extract_strided_slice %103 {offsets = [0, 576], sizes = [20, 64], strides = [1, 1]} : vector<20x640xf32> to vector<20x64xf32>
    %114 = tpu.concatenate %104, %105, %106, %107, %108, %109, %110, %111, %112, %113 in 0 : vector<20x64xf32>, vector<20x64xf32>, vector<20x64xf32>, vector<20x64xf32>, vector<20x64xf32>, vector<20x64xf32>, vector<20x64xf32>, vector<20x64xf32>, vector<20x64xf32>, vector<20x64xf32> -> vector<200x64xf32>
    %cst_31 = arith.constant dense<0.000000e+00> : vector<20x64xf32>
    %115 = tpu.matmul %101, %114, %cst_31 {dimension_numbers = #tpu.dot_dimension_numbers<[1], [0], [0], [1], [0, 0, 1, 1], [], []>} : vector<20x200xf32>, vector<200x64xf32>, vector<20x64xf32> -> vector<20x64xf32>
    %116 = vector.broadcast %102 : vector<20x1xf32> to vector<20x64xf32>
    %117 = arith.addf %115, %116 : vector<20x64xf32>
    %cst_32 = arith.constant 0.000000e+00 : f32
    %118 = vector.broadcast %cst_32 : f32 to vector<20x64xf32>
    %119 = arith.maximumf %117, %118 : vector<20x64xf32>
    %120 = vector.extract_strided_slice %11 {offsets = [0, 7], sizes = [20, 1], strides = [1, 1]} : vector<20x26xf32> to vector<20x1xf32>
    %121 = vector.extract_strided_slice %11 {offsets = [0, 8], sizes = [20, 1], strides = [1, 1]} : vector<20x26xf32> to vector<20x1xf32>
    %cst_33 = arith.constant dense<0.000000e+00> : vector<20xf32>
    %122 = vector.multi_reduction <add>, %119, %cst_33 [1] : vector<20x64xf32> to vector<20xf32>
    %123 = vector.shape_cast %122 : vector<20xf32> to vector<20x1xf32>
    %cst_34 = arith.constant 6.400000e+01 : f32
    %124 = vector.broadcast %cst_34 : f32 to vector<20x1xf32>
    %125 = arith.divf %123, %124 : vector<20x1xf32>
    %126 = vector.broadcast %125 : vector<20x1xf32> to vector<20x64xf32>
    %127 = arith.subf %119, %126 : vector<20x64xf32>
    %128 = arith.mulf %127, %127 : vector<20x64xf32>
    %cst_35 = arith.constant dense<0.000000e+00> : vector<20xf32>
    %129 = vector.multi_reduction <add>, %128, %cst_35 [1] : vector<20x64xf32> to vector<20xf32>
    %130 = vector.shape_cast %129 : vector<20xf32> to vector<20x1xf32>
    %cst_36 = arith.constant 6.400000e+01 : f32
    %131 = vector.broadcast %cst_36 : f32 to vector<20x1xf32>
    %132 = arith.divf %130, %131 : vector<20x1xf32>
    %cst_37 = arith.constant 9.99999974E-6 : f32
    %133 = vector.broadcast %cst_37 : f32 to vector<20x1xf32>
    %134 = arith.addf %132, %133 : vector<20x1xf32>
    %135 = math.rsqrt %134 : vector<20x1xf32>
    %136 = arith.mulf %120, %135 : vector<20x1xf32>
    %137 = vector.broadcast %136 : vector<20x1xf32> to vector<20x64xf32>
    %138 = arith.mulf %127, %137 : vector<20x64xf32>
    %139 = vector.broadcast %121 : vector<20x1xf32> to vector<20x64xf32>
    %140 = arith.addf %138, %139 : vector<20x64xf32>
    %141 = vector.extract_strided_slice %10 {offsets = [56, 0], sizes = [20, 200], strides = [1, 1]} : vector<160x224xf32> to vector<20x200xf32>
    %142 = vector.extract_strided_slice %11 {offsets = [0, 9], sizes = [20, 1], strides = [1, 1]} : vector<20x26xf32> to vector<20x1xf32>
    %cst_38 = arith.constant dense<0.000000e+00> : vector<20x1280xf32>
    %143 = tpu.matmul %140, %7, %cst_38 {dimension_numbers = #tpu.dot_dimension_numbers<[1], [0], [0], [1], [0, 0, 1, 1], [], []>} : vector<20x64xf32>, vector<64x1280xf32>, vector<20x1280xf32> -> vector<20x1280xf32>
    %144 = vector.extract_strided_slice %143 {offsets = [0, 0], sizes = [20, 128], strides = [1, 1]} : vector<20x1280xf32> to vector<20x128xf32>
    %145 = vector.extract_strided_slice %143 {offsets = [0, 128], sizes = [20, 128], strides = [1, 1]} : vector<20x1280xf32> to vector<20x128xf32>
    %146 = vector.extract_strided_slice %143 {offsets = [0, 256], sizes = [20, 128], strides = [1, 1]} : vector<20x1280xf32> to vector<20x128xf32>
    %147 = vector.extract_strided_slice %143 {offsets = [0, 384], sizes = [20, 128], strides = [1, 1]} : vector<20x1280xf32> to vector<20x128xf32>
    %148 = vector.extract_strided_slice %143 {offsets = [0, 512], sizes = [20, 128], strides = [1, 1]} : vector<20x1280xf32> to vector<20x128xf32>
    %149 = vector.extract_strided_slice %143 {offsets = [0, 640], sizes = [20, 128], strides = [1, 1]} : vector<20x1280xf32> to vector<20x128xf32>
    %150 = vector.extract_strided_slice %143 {offsets = [0, 768], sizes = [20, 128], strides = [1, 1]} : vector<20x1280xf32> to vector<20x128xf32>
    %151 = vector.extract_strided_slice %143 {offsets = [0, 896], sizes = [20, 128], strides = [1, 1]} : vector<20x1280xf32> to vector<20x128xf32>
    %152 = vector.extract_strided_slice %143 {offsets = [0, 1024], sizes = [20, 128], strides = [1, 1]} : vector<20x1280xf32> to vector<20x128xf32>
    %153 = vector.extract_strided_slice %143 {offsets = [0, 1152], sizes = [20, 128], strides = [1, 1]} : vector<20x1280xf32> to vector<20x128xf32>
    %154 = tpu.concatenate %144, %145, %146, %147, %148, %149, %150, %151, %152, %153 in 0 : vector<20x128xf32>, vector<20x128xf32>, vector<20x128xf32>, vector<20x128xf32>, vector<20x128xf32>, vector<20x128xf32>, vector<20x128xf32>, vector<20x128xf32>, vector<20x128xf32>, vector<20x128xf32> -> vector<200x128xf32>
    %cst_39 = arith.constant dense<0.000000e+00> : vector<20x128xf32>
    %155 = tpu.matmul %141, %154, %cst_39 {dimension_numbers = #tpu.dot_dimension_numbers<[1], [0], [0], [1], [0, 0, 1, 1], [], []>} : vector<20x200xf32>, vector<200x128xf32>, vector<20x128xf32> -> vector<20x128xf32>
    %156 = vector.broadcast %142 : vector<20x1xf32> to vector<20x128xf32>
    %157 = arith.addf %155, %156 : vector<20x128xf32>
    %cst_40 = arith.constant 0.000000e+00 : f32
    %158 = vector.broadcast %cst_40 : f32 to vector<20x128xf32>
    %159 = arith.maximumf %157, %158 : vector<20x128xf32>
    %160 = vector.extract_strided_slice %11 {offsets = [0, 10], sizes = [20, 1], strides = [1, 1]} : vector<20x26xf32> to vector<20x1xf32>
    %161 = vector.extract_strided_slice %11 {offsets = [0, 11], sizes = [20, 1], strides = [1, 1]} : vector<20x26xf32> to vector<20x1xf32>
    %cst_41 = arith.constant dense<0.000000e+00> : vector<20xf32>
    %162 = vector.multi_reduction <add>, %159, %cst_41 [1] : vector<20x128xf32> to vector<20xf32>
    %163 = vector.shape_cast %162 : vector<20xf32> to vector<20x1xf32>
    %cst_42 = arith.constant 1.280000e+02 : f32
    %164 = vector.broadcast %cst_42 : f32 to vector<20x1xf32>
    %165 = arith.divf %163, %164 : vector<20x1xf32>
    %166 = vector.broadcast %165 : vector<20x1xf32> to vector<20x128xf32>
    %167 = arith.subf %159, %166 : vector<20x128xf32>
    %168 = arith.mulf %167, %167 : vector<20x128xf32>
    %cst_43 = arith.constant dense<0.000000e+00> : vector<20xf32>
    %169 = vector.multi_reduction <add>, %168, %cst_43 [1] : vector<20x128xf32> to vector<20xf32>
    %170 = vector.shape_cast %169 : vector<20xf32> to vector<20x1xf32>
    %cst_44 = arith.constant 1.280000e+02 : f32
    %171 = vector.broadcast %cst_44 : f32 to vector<20x1xf32>
    %172 = arith.divf %170, %171 : vector<20x1xf32>
    %cst_45 = arith.constant 9.99999974E-6 : f32
    %173 = vector.broadcast %cst_45 : f32 to vector<20x1xf32>
    %174 = arith.addf %172, %173 : vector<20x1xf32>
    %175 = math.rsqrt %174 : vector<20x1xf32>
    %176 = arith.mulf %160, %175 : vector<20x1xf32>
    %177 = vector.broadcast %176 : vector<20x1xf32> to vector<20x128xf32>
    %178 = arith.mulf %167, %177 : vector<20x128xf32>
    %179 = vector.broadcast %161 : vector<20x1xf32> to vector<20x128xf32>
    %180 = arith.addf %178, %179 : vector<20x128xf32>
    %181 = vector.extract_strided_slice %10 {offsets = [76, 0], sizes = [2, 60], strides = [1, 1]} : vector<160x224xf32> to vector<2x60xf32>
    %182 = vector.extract_strided_slice %11 {offsets = [0, 12], sizes = [2, 1], strides = [1, 1]} : vector<20x26xf32> to vector<2x1xf32>
    %cst_46 = arith.constant dense<0.000000e+00> : vector<20x384xf32>
    %183 = tpu.matmul %180, %9, %cst_46 {dimension_numbers = #tpu.dot_dimension_numbers<[1], [0], [0], [1], [0, 0, 1, 1], [], []>} : vector<20x128xf32>, vector<128x384xf32>, vector<20x384xf32> -> vector<20x384xf32>
    %184 = vector.extract_strided_slice %183 {offsets = [0, 0], sizes = [20, 128], strides = [1, 1]} : vector<20x384xf32> to vector<20x128xf32>
    %185 = vector.extract_strided_slice %183 {offsets = [0, 128], sizes = [20, 128], strides = [1, 1]} : vector<20x384xf32> to vector<20x128xf32>
    %186 = vector.extract_strided_slice %183 {offsets = [0, 256], sizes = [20, 128], strides = [1, 1]} : vector<20x384xf32> to vector<20x128xf32>
    %187 = tpu.concatenate %184, %185, %186 in 0 : vector<20x128xf32>, vector<20x128xf32>, vector<20x128xf32> -> vector<60x128xf32>
    %cst_47 = arith.constant dense<0.000000e+00> : vector<2x128xf32>
    %188 = tpu.matmul %181, %187, %cst_47 {dimension_numbers = #tpu.dot_dimension_numbers<[1], [0], [0], [1], [0, 0, 1, 1], [], []>} : vector<2x60xf32>, vector<60x128xf32>, vector<2x128xf32> -> vector<2x128xf32>
    %189 = vector.broadcast %182 : vector<2x1xf32> to vector<2x128xf32>
    %190 = arith.addf %188, %189 : vector<2x128xf32>
    %191 = arith.addf %190, %12 : vector<2x128xf32>
    %192 = vector.extract_strided_slice %10 {offsets = [80, 0], sizes = [16, 28], strides = [1, 1]} : vector<160x224xf32> to vector<16x28xf32>
    %193 = vector.extract_strided_slice %11 {offsets = [0, 13], sizes = [16, 1], strides = [1, 1]} : vector<20x26xf32> to vector<16x1xf32>
    %cst_48 = arith.constant dense<0.000000e+00> : vector<2x896xf32>
    %194 = tpu.matmul %191, %1, %cst_48 {dimension_numbers = #tpu.dot_dimension_numbers<[1], [0], [0], [1], [0, 0, 1, 1], [], []>} : vector<2x128xf32>, vector<128x896xf32>, vector<2x896xf32> -> vector<2x896xf32>
    %195 = vector.extract_strided_slice %194 {offsets = [0, 0], sizes = [2, 64], strides = [1, 1]} : vector<2x896xf32> to vector<2x64xf32>
    %196 = vector.extract_strided_slice %194 {offsets = [0, 64], sizes = [2, 64], strides = [1, 1]} : vector<2x896xf32> to vector<2x64xf32>
    %197 = vector.extract_strided_slice %194 {offsets = [0, 128], sizes = [2, 64], strides = [1, 1]} : vector<2x896xf32> to vector<2x64xf32>
    %198 = vector.extract_strided_slice %194 {offsets = [0, 192], sizes = [2, 64], strides = [1, 1]} : vector<2x896xf32> to vector<2x64xf32>
    %199 = vector.extract_strided_slice %194 {offsets = [0, 256], sizes = [2, 64], strides = [1, 1]} : vector<2x896xf32> to vector<2x64xf32>
    %200 = vector.extract_strided_slice %194 {offsets = [0, 320], sizes = [2, 64], strides = [1, 1]} : vector<2x896xf32> to vector<2x64xf32>
    %201 = vector.extract_strided_slice %194 {offsets = [0, 384], sizes = [2, 64], strides = [1, 1]} : vector<2x896xf32> to vector<2x64xf32>
    %202 = vector.extract_strided_slice %194 {offsets = [0, 448], sizes = [2, 64], strides = [1, 1]} : vector<2x896xf32> to vector<2x64xf32>
    %203 = vector.extract_strided_slice %194 {offsets = [0, 512], sizes = [2, 64], strides = [1, 1]} : vector<2x896xf32> to vector<2x64xf32>
    %204 = vector.extract_strided_slice %194 {offsets = [0, 576], sizes = [2, 64], strides = [1, 1]} : vector<2x896xf32> to vector<2x64xf32>
    %205 = vector.extract_strided_slice %194 {offsets = [0, 640], sizes = [2, 64], strides = [1, 1]} : vector<2x896xf32> to vector<2x64xf32>
    %206 = vector.extract_strided_slice %194 {offsets = [0, 704], sizes = [2, 64], strides = [1, 1]} : vector<2x896xf32> to vector<2x64xf32>
    %207 = vector.extract_strided_slice %194 {offsets = [0, 768], sizes = [2, 64], strides = [1, 1]} : vector<2x896xf32> to vector<2x64xf32>
    %208 = vector.extract_strided_slice %194 {offsets = [0, 832], sizes = [2, 64], strides = [1, 1]} : vector<2x896xf32> to vector<2x64xf32>
    %209 = tpu.concatenate %195, %196, %197, %198, %199, %200, %201, %202, %203, %204, %205, %206, %207, %208 in 0 : vector<2x64xf32>, vector<2x64xf32>, vector<2x64xf32>, vector<2x64xf32>, vector<2x64xf32>, vector<2x64xf32>, vector<2x64xf32>, vector<2x64xf32>, vector<2x64xf32>, vector<2x64xf32>, vector<2x64xf32>, vector<2x64xf32>, vector<2x64xf32>, vector<2x64xf32> -> vector<28x64xf32>
    %cst_49 = arith.constant dense<0.000000e+00> : vector<16x64xf32>
    %210 = tpu.matmul %192, %209, %cst_49 {dimension_numbers = #tpu.dot_dimension_numbers<[1], [0], [0], [1], [0, 0, 1, 1], [], []>} : vector<16x28xf32>, vector<28x64xf32>, vector<16x64xf32> -> vector<16x64xf32>
    %211 = vector.broadcast %193 : vector<16x1xf32> to vector<16x64xf32>
    %212 = arith.addf %210, %211 : vector<16x64xf32>
    %cst_50 = arith.constant 0.000000e+00 : f32
    %213 = vector.broadcast %cst_50 : f32 to vector<16x64xf32>
    %214 = arith.maximumf %212, %213 : vector<16x64xf32>
    %215 = vector.extract_strided_slice %11 {offsets = [0, 14], sizes = [16, 1], strides = [1, 1]} : vector<20x26xf32> to vector<16x1xf32>
    %216 = vector.extract_strided_slice %11 {offsets = [0, 15], sizes = [16, 1], strides = [1, 1]} : vector<20x26xf32> to vector<16x1xf32>
    %cst_51 = arith.constant dense<0.000000e+00> : vector<16xf32>
    %217 = vector.multi_reduction <add>, %214, %cst_51 [1] : vector<16x64xf32> to vector<16xf32>
    %218 = vector.shape_cast %217 : vector<16xf32> to vector<16x1xf32>
    %cst_52 = arith.constant 6.400000e+01 : f32
    %219 = vector.broadcast %cst_52 : f32 to vector<16x1xf32>
    %220 = arith.divf %218, %219 : vector<16x1xf32>
    %221 = vector.broadcast %220 : vector<16x1xf32> to vector<16x64xf32>
    %222 = arith.subf %214, %221 : vector<16x64xf32>
    %223 = arith.mulf %222, %222 : vector<16x64xf32>
    %cst_53 = arith.constant dense<0.000000e+00> : vector<16xf32>
    %224 = vector.multi_reduction <add>, %223, %cst_53 [1] : vector<16x64xf32> to vector<16xf32>
    %225 = vector.shape_cast %224 : vector<16xf32> to vector<16x1xf32>
    %cst_54 = arith.constant 6.400000e+01 : f32
    %226 = vector.broadcast %cst_54 : f32 to vector<16x1xf32>
    %227 = arith.divf %225, %226 : vector<16x1xf32>
    %cst_55 = arith.constant 9.99999974E-6 : f32
    %228 = vector.broadcast %cst_55 : f32 to vector<16x1xf32>
    %229 = arith.addf %227, %228 : vector<16x1xf32>
    %230 = math.rsqrt %229 : vector<16x1xf32>
    %231 = arith.mulf %215, %230 : vector<16x1xf32>
    %232 = vector.broadcast %231 : vector<16x1xf32> to vector<16x64xf32>
    %233 = arith.mulf %222, %232 : vector<16x64xf32>
    %234 = vector.broadcast %216 : vector<16x1xf32> to vector<16x64xf32>
    %235 = arith.addf %233, %234 : vector<16x64xf32>
    %236 = vector.extract_strided_slice %10 {offsets = [96, 0], sizes = [20, 224], strides = [1, 1]} : vector<160x224xf32> to vector<20x224xf32>
    %237 = vector.extract_strided_slice %11 {offsets = [0, 16], sizes = [20, 1], strides = [1, 1]} : vector<20x26xf32> to vector<20x1xf32>
    %cst_56 = arith.constant dense<0.000000e+00> : vector<16x448xf32>
    %238 = tpu.matmul %235, %3, %cst_56 {dimension_numbers = #tpu.dot_dimension_numbers<[1], [0], [0], [1], [0, 0, 1, 1], [], []>} : vector<16x64xf32>, vector<64x448xf32>, vector<16x448xf32> -> vector<16x448xf32>
    %239 = vector.extract_strided_slice %238 {offsets = [0, 0], sizes = [16, 32], strides = [1, 1]} : vector<16x448xf32> to vector<16x32xf32>
    %240 = vector.extract_strided_slice %238 {offsets = [0, 32], sizes = [16, 32], strides = [1, 1]} : vector<16x448xf32> to vector<16x32xf32>
    %241 = vector.extract_strided_slice %238 {offsets = [0, 64], sizes = [16, 32], strides = [1, 1]} : vector<16x448xf32> to vector<16x32xf32>
    %242 = vector.extract_strided_slice %238 {offsets = [0, 96], sizes = [16, 32], strides = [1, 1]} : vector<16x448xf32> to vector<16x32xf32>
    %243 = vector.extract_strided_slice %238 {offsets = [0, 128], sizes = [16, 32], strides = [1, 1]} : vector<16x448xf32> to vector<16x32xf32>
    %244 = vector.extract_strided_slice %238 {offsets = [0, 160], sizes = [16, 32], strides = [1, 1]} : vector<16x448xf32> to vector<16x32xf32>
    %245 = vector.extract_strided_slice %238 {offsets = [0, 192], sizes = [16, 32], strides = [1, 1]} : vector<16x448xf32> to vector<16x32xf32>
    %246 = vector.extract_strided_slice %238 {offsets = [0, 224], sizes = [16, 32], strides = [1, 1]} : vector<16x448xf32> to vector<16x32xf32>
    %247 = vector.extract_strided_slice %238 {offsets = [0, 256], sizes = [16, 32], strides = [1, 1]} : vector<16x448xf32> to vector<16x32xf32>
    %248 = vector.extract_strided_slice %238 {offsets = [0, 288], sizes = [16, 32], strides = [1, 1]} : vector<16x448xf32> to vector<16x32xf32>
    %249 = vector.extract_strided_slice %238 {offsets = [0, 320], sizes = [16, 32], strides = [1, 1]} : vector<16x448xf32> to vector<16x32xf32>
    %250 = vector.extract_strided_slice %238 {offsets = [0, 352], sizes = [16, 32], strides = [1, 1]} : vector<16x448xf32> to vector<16x32xf32>
    %251 = vector.extract_strided_slice %238 {offsets = [0, 384], sizes = [16, 32], strides = [1, 1]} : vector<16x448xf32> to vector<16x32xf32>
    %252 = vector.extract_strided_slice %238 {offsets = [0, 416], sizes = [16, 32], strides = [1, 1]} : vector<16x448xf32> to vector<16x32xf32>
    %253 = tpu.concatenate %239, %240, %241, %242, %243, %244, %245, %246, %247, %248, %249, %250, %251, %252 in 0 : vector<16x32xf32>, vector<16x32xf32>, vector<16x32xf32>, vector<16x32xf32>, vector<16x32xf32>, vector<16x32xf32>, vector<16x32xf32>, vector<16x32xf32>, vector<16x32xf32>, vector<16x32xf32>, vector<16x32xf32>, vector<16x32xf32>, vector<16x32xf32>, vector<16x32xf32> -> vector<224x32xf32>
    %cst_57 = arith.constant dense<0.000000e+00> : vector<20x32xf32>
    %254 = tpu.matmul %236, %253, %cst_57 {dimension_numbers = #tpu.dot_dimension_numbers<[1], [0], [0], [1], [0, 0, 1, 1], [], []>} : vector<20x224xf32>, vector<224x32xf32>, vector<20x32xf32> -> vector<20x32xf32>
    %255 = vector.broadcast %237 : vector<20x1xf32> to vector<20x32xf32>
    %256 = arith.addf %254, %255 : vector<20x32xf32>
    %cst_58 = arith.constant 0.000000e+00 : f32
    %257 = vector.broadcast %cst_58 : f32 to vector<20x32xf32>
    %258 = arith.maximumf %256, %257 : vector<20x32xf32>
    %259 = vector.extract_strided_slice %11 {offsets = [0, 17], sizes = [20, 1], strides = [1, 1]} : vector<20x26xf32> to vector<20x1xf32>
    %260 = vector.extract_strided_slice %11 {offsets = [0, 18], sizes = [20, 1], strides = [1, 1]} : vector<20x26xf32> to vector<20x1xf32>
    %cst_59 = arith.constant dense<0.000000e+00> : vector<20xf32>
    %261 = vector.multi_reduction <add>, %258, %cst_59 [1] : vector<20x32xf32> to vector<20xf32>
    %262 = vector.shape_cast %261 : vector<20xf32> to vector<20x1xf32>
    %cst_60 = arith.constant 3.200000e+01 : f32
    %263 = vector.broadcast %cst_60 : f32 to vector<20x1xf32>
    %264 = arith.divf %262, %263 : vector<20x1xf32>
    %265 = vector.broadcast %264 : vector<20x1xf32> to vector<20x32xf32>
    %266 = arith.subf %258, %265 : vector<20x32xf32>
    %267 = arith.mulf %266, %266 : vector<20x32xf32>
    %cst_61 = arith.constant dense<0.000000e+00> : vector<20xf32>
    %268 = vector.multi_reduction <add>, %267, %cst_61 [1] : vector<20x32xf32> to vector<20xf32>
    %269 = vector.shape_cast %268 : vector<20xf32> to vector<20x1xf32>
    %cst_62 = arith.constant 3.200000e+01 : f32
    %270 = vector.broadcast %cst_62 : f32 to vector<20x1xf32>
    %271 = arith.divf %269, %270 : vector<20x1xf32>
    %cst_63 = arith.constant 9.99999974E-6 : f32
    %272 = vector.broadcast %cst_63 : f32 to vector<20x1xf32>
    %273 = arith.addf %271, %272 : vector<20x1xf32>
    %274 = math.rsqrt %273 : vector<20x1xf32>
    %275 = arith.mulf %259, %274 : vector<20x1xf32>
    %276 = vector.broadcast %275 : vector<20x1xf32> to vector<20x32xf32>
    %277 = arith.mulf %266, %276 : vector<20x32xf32>
    %278 = vector.broadcast %260 : vector<20x1xf32> to vector<20x32xf32>
    %279 = arith.addf %277, %278 : vector<20x32xf32>
    %280 = vector.extract_strided_slice %10 {offsets = [116, 0], sizes = [20, 200], strides = [1, 1]} : vector<160x224xf32> to vector<20x200xf32>
    %281 = vector.extract_strided_slice %11 {offsets = [0, 19], sizes = [20, 1], strides = [1, 1]} : vector<20x26xf32> to vector<20x1xf32>
    %cst_64 = arith.constant dense<0.000000e+00> : vector<20x640xf32>
    %282 = tpu.matmul %279, %5, %cst_64 {dimension_numbers = #tpu.dot_dimension_numbers<[1], [0], [0], [1], [0, 0, 1, 1], [], []>} : vector<20x32xf32>, vector<32x640xf32>, vector<20x640xf32> -> vector<20x640xf32>
    %283 = vector.extract_strided_slice %282 {offsets = [0, 0], sizes = [20, 64], strides = [1, 1]} : vector<20x640xf32> to vector<20x64xf32>
    %284 = vector.extract_strided_slice %282 {offsets = [0, 64], sizes = [20, 64], strides = [1, 1]} : vector<20x640xf32> to vector<20x64xf32>
    %285 = vector.extract_strided_slice %282 {offsets = [0, 128], sizes = [20, 64], strides = [1, 1]} : vector<20x640xf32> to vector<20x64xf32>
    %286 = vector.extract_strided_slice %282 {offsets = [0, 192], sizes = [20, 64], strides = [1, 1]} : vector<20x640xf32> to vector<20x64xf32>
    %287 = vector.extract_strided_slice %282 {offsets = [0, 256], sizes = [20, 64], strides = [1, 1]} : vector<20x640xf32> to vector<20x64xf32>
    %288 = vector.extract_strided_slice %282 {offsets = [0, 320], sizes = [20, 64], strides = [1, 1]} : vector<20x640xf32> to vector<20x64xf32>
    %289 = vector.extract_strided_slice %282 {offsets = [0, 384], sizes = [20, 64], strides = [1, 1]} : vector<20x640xf32> to vector<20x64xf32>
    %290 = vector.extract_strided_slice %282 {offsets = [0, 448], sizes = [20, 64], strides = [1, 1]} : vector<20x640xf32> to vector<20x64xf32>
    %291 = vector.extract_strided_slice %282 {offsets = [0, 512], sizes = [20, 64], strides = [1, 1]} : vector<20x640xf32> to vector<20x64xf32>
    %292 = vector.extract_strided_slice %282 {offsets = [0, 576], sizes = [20, 64], strides = [1, 1]} : vector<20x640xf32> to vector<20x64xf32>
    %293 = tpu.concatenate %283, %284, %285, %286, %287, %288, %289, %290, %291, %292 in 0 : vector<20x64xf32>, vector<20x64xf32>, vector<20x64xf32>, vector<20x64xf32>, vector<20x64xf32>, vector<20x64xf32>, vector<20x64xf32>, vector<20x64xf32>, vector<20x64xf32>, vector<20x64xf32> -> vector<200x64xf32>
    %cst_65 = arith.constant dense<0.000000e+00> : vector<20x64xf32>
    %294 = tpu.matmul %280, %293, %cst_65 {dimension_numbers = #tpu.dot_dimension_numbers<[1], [0], [0], [1], [0, 0, 1, 1], [], []>} : vector<20x200xf32>, vector<200x64xf32>, vector<20x64xf32> -> vector<20x64xf32>
    %295 = vector.broadcast %281 : vector<20x1xf32> to vector<20x64xf32>
    %296 = arith.addf %294, %295 : vector<20x64xf32>
    %cst_66 = arith.constant 0.000000e+00 : f32
    %297 = vector.broadcast %cst_66 : f32 to vector<20x64xf32>
    %298 = arith.maximumf %296, %297 : vector<20x64xf32>
    %299 = vector.extract_strided_slice %11 {offsets = [0, 20], sizes = [20, 1], strides = [1, 1]} : vector<20x26xf32> to vector<20x1xf32>
    %300 = vector.extract_strided_slice %11 {offsets = [0, 21], sizes = [20, 1], strides = [1, 1]} : vector<20x26xf32> to vector<20x1xf32>
    %cst_67 = arith.constant dense<0.000000e+00> : vector<20xf32>
    %301 = vector.multi_reduction <add>, %298, %cst_67 [1] : vector<20x64xf32> to vector<20xf32>
    %302 = vector.shape_cast %301 : vector<20xf32> to vector<20x1xf32>
    %cst_68 = arith.constant 6.400000e+01 : f32
    %303 = vector.broadcast %cst_68 : f32 to vector<20x1xf32>
    %304 = arith.divf %302, %303 : vector<20x1xf32>
    %305 = vector.broadcast %304 : vector<20x1xf32> to vector<20x64xf32>
    %306 = arith.subf %298, %305 : vector<20x64xf32>
    %307 = arith.mulf %306, %306 : vector<20x64xf32>
    %cst_69 = arith.constant dense<0.000000e+00> : vector<20xf32>
    %308 = vector.multi_reduction <add>, %307, %cst_69 [1] : vector<20x64xf32> to vector<20xf32>
    %309 = vector.shape_cast %308 : vector<20xf32> to vector<20x1xf32>
    %cst_70 = arith.constant 6.400000e+01 : f32
    %310 = vector.broadcast %cst_70 : f32 to vector<20x1xf32>
    %311 = arith.divf %309, %310 : vector<20x1xf32>
    %cst_71 = arith.constant 9.99999974E-6 : f32
    %312 = vector.broadcast %cst_71 : f32 to vector<20x1xf32>
    %313 = arith.addf %311, %312 : vector<20x1xf32>
    %314 = math.rsqrt %313 : vector<20x1xf32>
    %315 = arith.mulf %299, %314 : vector<20x1xf32>
    %316 = vector.broadcast %315 : vector<20x1xf32> to vector<20x64xf32>
    %317 = arith.mulf %306, %316 : vector<20x64xf32>
    %318 = vector.broadcast %300 : vector<20x1xf32> to vector<20x64xf32>
    %319 = arith.addf %317, %318 : vector<20x64xf32>
    %320 = vector.extract_strided_slice %10 {offsets = [136, 0], sizes = [20, 200], strides = [1, 1]} : vector<160x224xf32> to vector<20x200xf32>
    %321 = vector.extract_strided_slice %11 {offsets = [0, 22], sizes = [20, 1], strides = [1, 1]} : vector<20x26xf32> to vector<20x1xf32>
    %cst_72 = arith.constant dense<0.000000e+00> : vector<20x1280xf32>
    %322 = tpu.matmul %319, %7, %cst_72 {dimension_numbers = #tpu.dot_dimension_numbers<[1], [0], [0], [1], [0, 0, 1, 1], [], []>} : vector<20x64xf32>, vector<64x1280xf32>, vector<20x1280xf32> -> vector<20x1280xf32>
    %323 = vector.extract_strided_slice %322 {offsets = [0, 0], sizes = [20, 128], strides = [1, 1]} : vector<20x1280xf32> to vector<20x128xf32>
    %324 = vector.extract_strided_slice %322 {offsets = [0, 128], sizes = [20, 128], strides = [1, 1]} : vector<20x1280xf32> to vector<20x128xf32>
    %325 = vector.extract_strided_slice %322 {offsets = [0, 256], sizes = [20, 128], strides = [1, 1]} : vector<20x1280xf32> to vector<20x128xf32>
    %326 = vector.extract_strided_slice %322 {offsets = [0, 384], sizes = [20, 128], strides = [1, 1]} : vector<20x1280xf32> to vector<20x128xf32>
    %327 = vector.extract_strided_slice %322 {offsets = [0, 512], sizes = [20, 128], strides = [1, 1]} : vector<20x1280xf32> to vector<20x128xf32>
    %328 = vector.extract_strided_slice %322 {offsets = [0, 640], sizes = [20, 128], strides = [1, 1]} : vector<20x1280xf32> to vector<20x128xf32>
    %329 = vector.extract_strided_slice %322 {offsets = [0, 768], sizes = [20, 128], strides = [1, 1]} : vector<20x1280xf32> to vector<20x128xf32>
    %330 = vector.extract_strided_slice %322 {offsets = [0, 896], sizes = [20, 128], strides = [1, 1]} : vector<20x1280xf32> to vector<20x128xf32>
    %331 = vector.extract_strided_slice %322 {offsets = [0, 1024], sizes = [20, 128], strides = [1, 1]} : vector<20x1280xf32> to vector<20x128xf32>
    %332 = vector.extract_strided_slice %322 {offsets = [0, 1152], sizes = [20, 128], strides = [1, 1]} : vector<20x1280xf32> to vector<20x128xf32>
    %333 = tpu.concatenate %323, %324, %325, %326, %327, %328, %329, %330, %331, %332 in 0 : vector<20x128xf32>, vector<20x128xf32>, vector<20x128xf32>, vector<20x128xf32>, vector<20x128xf32>, vector<20x128xf32>, vector<20x128xf32>, vector<20x128xf32>, vector<20x128xf32>, vector<20x128xf32> -> vector<200x128xf32>
    %cst_73 = arith.constant dense<0.000000e+00> : vector<20x128xf32>
    %334 = tpu.matmul %320, %333, %cst_73 {dimension_numbers = #tpu.dot_dimension_numbers<[1], [0], [0], [1], [0, 0, 1, 1], [], []>} : vector<20x200xf32>, vector<200x128xf32>, vector<20x128xf32> -> vector<20x128xf32>
    %335 = vector.broadcast %321 : vector<20x1xf32> to vector<20x128xf32>
    %336 = arith.addf %334, %335 : vector<20x128xf32>
    %cst_74 = arith.constant 0.000000e+00 : f32
    %337 = vector.broadcast %cst_74 : f32 to vector<20x128xf32>
    %338 = arith.maximumf %336, %337 : vector<20x128xf32>
    %339 = vector.extract_strided_slice %11 {offsets = [0, 23], sizes = [20, 1], strides = [1, 1]} : vector<20x26xf32> to vector<20x1xf32>
    %340 = vector.extract_strided_slice %11 {offsets = [0, 24], sizes = [20, 1], strides = [1, 1]} : vector<20x26xf32> to vector<20x1xf32>
    %cst_75 = arith.constant dense<0.000000e+00> : vector<20xf32>
    %341 = vector.multi_reduction <add>, %338, %cst_75 [1] : vector<20x128xf32> to vector<20xf32>
    %342 = vector.shape_cast %341 : vector<20xf32> to vector<20x1xf32>
    %cst_76 = arith.constant 1.280000e+02 : f32
    %343 = vector.broadcast %cst_76 : f32 to vector<20x1xf32>
    %344 = arith.divf %342, %343 : vector<20x1xf32>
    %345 = vector.broadcast %344 : vector<20x1xf32> to vector<20x128xf32>
    %346 = arith.subf %338, %345 : vector<20x128xf32>
    %347 = arith.mulf %346, %346 : vector<20x128xf32>
    %cst_77 = arith.constant dense<0.000000e+00> : vector<20xf32>
    %348 = vector.multi_reduction <add>, %347, %cst_77 [1] : vector<20x128xf32> to vector<20xf32>
    %349 = vector.shape_cast %348 : vector<20xf32> to vector<20x1xf32>
    %cst_78 = arith.constant 1.280000e+02 : f32
    %350 = vector.broadcast %cst_78 : f32 to vector<20x1xf32>
    %351 = arith.divf %349, %350 : vector<20x1xf32>
    %cst_79 = arith.constant 9.99999974E-6 : f32
    %352 = vector.broadcast %cst_79 : f32 to vector<20x1xf32>
    %353 = arith.addf %351, %352 : vector<20x1xf32>
    %354 = math.rsqrt %353 : vector<20x1xf32>
    %355 = arith.mulf %339, %354 : vector<20x1xf32>
    %356 = vector.broadcast %355 : vector<20x1xf32> to vector<20x128xf32>
    %357 = arith.mulf %346, %356 : vector<20x128xf32>
    %358 = vector.broadcast %340 : vector<20x1xf32> to vector<20x128xf32>
    %359 = arith.addf %357, %358 : vector<20x128xf32>
    %360 = vector.extract_strided_slice %10 {offsets = [156, 0], sizes = [2, 60], strides = [1, 1]} : vector<160x224xf32> to vector<2x60xf32>
    %361 = vector.extract_strided_slice %11 {offsets = [0, 25], sizes = [2, 1], strides = [1, 1]} : vector<20x26xf32> to vector<2x1xf32>
    %cst_80 = arith.constant dense<0.000000e+00> : vector<20x384xf32>
    %362 = tpu.matmul %359, %9, %cst_80 {dimension_numbers = #tpu.dot_dimension_numbers<[1], [0], [0], [1], [0, 0, 1, 1], [], []>} : vector<20x128xf32>, vector<128x384xf32>, vector<20x384xf32> -> vector<20x384xf32>
    %363 = vector.extract_strided_slice %362 {offsets = [0, 0], sizes = [20, 128], strides = [1, 1]} : vector<20x384xf32> to vector<20x128xf32>
    %364 = vector.extract_strided_slice %362 {offsets = [0, 128], sizes = [20, 128], strides = [1, 1]} : vector<20x384xf32> to vector<20x128xf32>
    %365 = vector.extract_strided_slice %362 {offsets = [0, 256], sizes = [20, 128], strides = [1, 1]} : vector<20x384xf32> to vector<20x128xf32>
    %366 = tpu.concatenate %363, %364, %365 in 0 : vector<20x128xf32>, vector<20x128xf32>, vector<20x128xf32> -> vector<60x128xf32>
    %cst_81 = arith.constant dense<0.000000e+00> : vector<2x128xf32>
    %367 = tpu.matmul %360, %366, %cst_81 {dimension_numbers = #tpu.dot_dimension_numbers<[1], [0], [0], [1], [0, 0, 1, 1], [], []>} : vector<2x60xf32>, vector<60x128xf32>, vector<2x128xf32> -> vector<2x128xf32>
    %368 = vector.broadcast %361 : vector<2x1xf32> to vector<2x128xf32>
    %369 = arith.addf %367, %368 : vector<2x128xf32>
    %370 = arith.addf %369, %191 : vector<2x128xf32>
    %c0_82 = arith.constant 0 : index
    %c0_83 = arith.constant 0 : index
    %371 = vector.load %arg8[%c0_82, %c0_83] : memref<2x128xf32, #tpu.memory_space<vmem>>, vector<2x128xf32>
    tpu.vector_store %arg8[%c0_82, %c0_83], %370 {strides = array<i32>} : memref<2x128xf32, #tpu.memory_space<vmem>>, vector<2x128xf32>,
    return
  }
}

</mosaic_0001>

<bundles_post_ra>
// kernel: pdenet_forward.1
= control target key start
LH: loop header
LB: loop body
LE: loop exit
PB: predicated region body
PF: predicated region fallthrough
CT: control target
= control target key end

     0   :  { %13 = vsyncpa [#allocation3], 0  ;;  %s8853_s0 = inlined_call_operand.vmem [shape: f32[2,128], index: 0, kind: input, shape index: {}]   ;;  %s8854_s1 = inlined_call_operand.hbm [shape: bf16[128,896], index: 1, kind: input, shape index: {}]   ;;  %s8855_s2 = inlined_call_operand.hbm [shape: bf16[64,448], index: 2, kind: input, shape index: {}]   ;;  %s8856_s3 = inlined_call_operand.hbm [shape: bf16[32,640], index: 3, kind: input, shape index: {}]   ;;  %s8857_s4 = inlined_call_operand.hbm [shape: bf16[64,1280], index: 4, kind: input, shape index: {}]   ;;  %s8858_s5 = inlined_call_operand.hbm [shape: bf16[128,384], index: 5, kind: input, shape index: {}]   ;;  %s8859_s6 = inlined_call_operand.hbm [shape: f32[160,224], index: 6, kind: input, shape index: {}]   ;;  %s8860_s7 = inlined_call_operand.vmem [shape: f32[20,26], index: 7, kind: input, shape index: {}]   ;;  %s8861_s8 = inlined_call_operand.vmem [shape: f32[2,128], index: 8, kind: output, shape index: {}]  }
   0x1   :  { %14 = vsyncpa [#allocation5], 0 }
   0x2   :  { %15 = vsyncpa [#allocation8], 0 }
   0x3   :  { %16 = vsyncpa [#allocation11], 0  ;;  %s7752_s27 = smov [#allocation4]   ;;  %s7612_s9 = scalar_lea.hbm %s8855_s2, 2048 }
   0x4   :  { %s36_s28 = sshll.u32 %s7752_s27, 4  ;;  %p7613_p0 = scmp.ne.s32.totalorder %s8855_s2, %s7612_s9  ;;  %s37_s28 = int_to_ptr.vmem [resolvable:$true] %s36_s28 }
   0x5   :  { %p7616_p1 = scmp.lt.u32.totalorder %s7612_s9, %s8855_s2 }
   0x7   :  { %p7618_p2 = pnand %p7616_p1, %p7613_p0 }
   0x9   :  { %7621 = shalt.err (!%p7618_p2)
}
   0xa   :  { %s7622_s14 = scalar_lea.vmem %s37_s28, 2048  ;;  %p7627_p4 = scmp.lt.s32.totalorder %s37_s28, %s37_s28 }
   0xb   :  { %p7623_p3 = scmp.ne.s32.totalorder %s37_s28, %s7622_s14  ;;  %p7628_p5 = scmp.lt.s32.totalorder %s7622_s14, %s7622_s14 }
   0xd   :  { %p7629_p6 = por %p7628_p5, %p7627_p4 }
   0xf   :  { %p7630_p7 = pnand %p7629_p6, %p7623_p3 }
  0x11   :  { %7633 = shalt.err (!%p7630_p7)
}
  0x12   :  { %s7753_s15 = smov 256   ;;  %s7754_s16 = smov 16  }
  0x13   :  { %42 = dma.hbm_to_vmem [thread:$0]  %s8855_s2, 2048, %s37_s28, [#allocation5], %s7753_s15, %s7753_s15, %s7754_s16  }
  0x14   :  { %s7755_s19 = smov [#allocation7]   ;;  %s7634_s23 = scalar_lea.hbm %s8857_s4, 5120 }
  0x15   :  { %s60_s20 = sshll.u32 %s7755_s19, 4  ;;  %p7635_p8 = scmp.ne.s32.totalorder %s8857_s4, %s7634_s23  ;;  %s61_s20 = int_to_ptr.vmem [resolvable:$true] %s60_s20 }
  0x16   :  { %p7638_p9 = scmp.lt.u32.totalorder %s7634_s23, %s8857_s4 }
  0x18   :  { %p7640_p10 = pnand %p7638_p9, %p7635_p8 }
  0x1a   :  { %7643 = shalt.err (!%p7640_p10)
}
  0x1b   :  { %s7644_s29 = scalar_lea.vmem %s61_s20, 5120  ;;  %p7649_p12 = scmp.lt.s32.totalorder %s61_s20, %s61_s20 }
  0x1c   :  { %p7645_p11 = scmp.ne.s32.totalorder %s61_s20, %s7644_s29  ;;  %p7650_p13 = scmp.lt.s32.totalorder %s7644_s29, %s7644_s29 }
  0x1e   :  { %p7651_p0 = por %p7650_p13, %p7649_p12 }
  0x20   :  { %p7652_p1 = pnand %p7651_p0, %p7645_p11 }
  0x22   :  { %7655 = shalt.err (!%p7652_p1)
}
  0x23   :  { %s7756_s2 = smov 640   ;;  %s7757_s28 = smov 40  }
  0x24   :  { %66 = dma.hbm_to_vmem [thread:$0]  %s8857_s4, 5120, %s61_s20, [#allocation8], %s7756_s2, %s7756_s2, %s7757_s28  }
  0x25   :  { %s7758_s10 = smov [#allocation2]   ;;  %s7656_s14 = scalar_lea.hbm %s8854_s1, 7168 }
  0x26   :  { %s24_s11 = sshll.u32 %s7758_s10, 4  ;;  %p7657_p2 = scmp.ne.s32.totalorder %s8854_s1, %s7656_s14  ;;  %s25_s11 = int_to_ptr.vmem [resolvable:$true] %s24_s11 }
  0x27   :  { %p7660_p3 = scmp.lt.u32.totalorder %s7656_s14, %s8854_s1 }
  0x29   :  { %p7662_p4 = pnand %p7660_p3, %p7657_p2 }
  0x2b   :  { %7665 = shalt.err (!%p7662_p4)
}
  0x2c   :  { %s7666_s22 = scalar_lea.vmem %s25_s11, 7168  ;;  %p7671_p6 = scmp.lt.s32.totalorder %s25_s11, %s25_s11 }
  0x2d   :  { %p7667_p5 = scmp.ne.s32.totalorder %s25_s11, %s7666_s22  ;;  %p7672_p7 = scmp.lt.s32.totalorder %s7666_s22, %s7666_s22 }
  0x2f   :  { %p7673_p8 = por %p7672_p7, %p7671_p6 }
  0x31   :  { %p7674_p9 = pnand %p7673_p8, %p7667_p5 }
  0x33   :  { %7677 = shalt.err (!%p7674_p9)
}
  0x34   :  { %s7759_s4 = smov 448   ;;  %s7760_s20 = smov 28  }
  0x35   :  { %30 = dma.hbm_to_vmem [thread:$0]  %s8854_s1, 7168, %s25_s11, [#allocation3], %s7759_s4, %s7759_s4, %s7760_s20  }
  0x36   :  { %s7761_s25 = smov [#allocation6]   ;;  %s7678_s2 = scalar_lea.hbm %s8856_s3, 1280 }
  0x37   :  { %s48_s26 = sshll.u32 %s7761_s25, 4  ;;  %p7679_p10 = scmp.ne.s32.totalorder %s8856_s3, %s7678_s2  ;;  %s49_s26 = int_to_ptr.vmem [resolvable:$true] %s48_s26 }
  0x38   :  { %p7682_p11 = scmp.lt.u32.totalorder %s7678_s2, %s8856_s3 }
  0x3a   :  { %p7684_p12 = pnand %p7682_p11, %p7679_p10 }
  0x3c   :  { %7687 = shalt.err (!%p7684_p12)
}
  0x3d   :  { %s7688_s12 = scalar_lea.vmem %s49_s26, 1280  ;;  %p7693_p0 = scmp.lt.s32.totalorder %s49_s26, %s49_s26 }
  0x3e   :  { %p7689_p13 = scmp.ne.s32.totalorder %s49_s26, %s7688_s12  ;;  %p7694_p1 = scmp.lt.s32.totalorder %s7688_s12, %s7688_s12 }
  0x40   :  { %p7695_p2 = por %p7694_p1, %p7693_p0 }
  0x42   :  { %p7696_p3 = pnand %p7695_p2, %p7689_p13 }
  0x44   :  { %7699 = shalt.err (!%p7696_p3)
}
  0x45   :  { %s7762_s1 = smov 320   ;;  %s7763_s11 = smov 20  }
  0x46   :  { %54 = dma.hbm_to_vmem [thread:$0]  %s8856_s3, 1280, %s49_s26, [#allocation5], %s7762_s1, %s7762_s1, %s7763_s11  }
  0x47   :  { %s7764_s17 = smov [#allocation9]   ;;  %s7700_s22 = scalar_lea.hbm %s8858_s5, 3072 }
  0x48   :  { %s72_s18 = sshll.u32 %s7764_s17, 4  ;;  %p7701_p4 = scmp.ne.s32.totalorder %s8858_s5, %s7700_s22  ;;  %s73_s18 = int_to_ptr.vmem [resolvable:$true] %s72_s18 }
  0x49   :  { %p7704_p5 = scmp.lt.u32.totalorder %s7700_s22, %s8858_s5 }
  0x4b   :  { %p7706_p6 = pnand %p7704_p5, %p7701_p4 }
  0x4d   :  { %7709 = shalt.err (!%p7706_p6)
}
  0x4e   :  { %s7710_s25 = scalar_lea.vmem %s73_s18, 3072  ;;  %p7715_p8 = scmp.lt.s32.totalorder %s73_s18, %s73_s18 }
  0x4f   :  { %p7711_p7 = scmp.ne.s32.totalorder %s73_s18, %s7710_s25  ;;  %p7716_p9 = scmp.lt.s32.totalorder %s7710_s25, %s7710_s25 }
  0x51   :  { %p7717_p10 = por %p7716_p9, %p7715_p8 }
  0x53   :  { %p7718_p11 = pnand %p7717_p10, %p7711_p7 }
  0x55   :  { %7721 = shalt.err (!%p7718_p11)
}
  0x56   :  { %s7765_s3 = smov 192   ;;  %s7766_s26 = smov 12  }
  0x57   :  { %78 = dma.hbm_to_vmem [thread:$0]  %s8858_s5, 3072, %s73_s18, [#allocation8], %s7765_s3, %s7765_s3, %s7766_s26  }
  0x58   :  { %s7767_s2 = smov [#allocation10]   ;;  %s7722_s10 = scalar_lea.hbm %s8859_s6, 5120 }
  0x59   :  { %s84_s28 = sshll.u32 %s7767_s2, 4  ;;  %p7723_p12 = scmp.ne.s32.totalorder %s8859_s6, %s7722_s10  ;;  %s85_s28 = int_to_ptr.vmem [resolvable:$true] %s84_s28 }
  0x5a   :  { %p7726_p13 = scmp.lt.u32.totalorder %s7722_s10, %s8859_s6 }
  0x5c   :  { %p7728_p0 = pnand %p7726_p13, %p7723_p12 }
  0x5e   :  { %7731 = shalt.err (!%p7728_p0)
}
  0x5f   :  { %s7732_s14 = scalar_lea.vmem %s85_s28, 5120  ;;  %p7737_p2 = scmp.lt.s32.totalorder %s85_s28, %s85_s28 }
  0x60   :  { %p7733_p1 = scmp.ne.s32.totalorder %s85_s28, %s7732_s14  ;;  %p7738_p3 = scmp.lt.s32.totalorder %s7732_s14, %s7732_s14 }
  0x62   :  { %p7739_p4 = por %p7738_p3, %p7737_p2 }
  0x64   :  { %p7740_p5 = pnand %p7739_p4, %p7733_p1 }
  0x66   :  { %7743 = shalt.err (!%p7740_p5)
}
  0x67   :  { %90 = dma.hbm_to_vmem [thread:$0]  %s8859_s6, 5120, %s85_s28, [#allocation11], %s7753_s15, %s7753_s15, %s7754_s16  }
  0x68   :  { %7744 = dma.done.wait [#allocation3], 7168  }
  0x69   :  { %7745 = vsyncadd [#allocation3], 4294960128 }
  0x6a   :  { %7746 = dma.done.wait [#allocation5], 3328  }
  0x6b   :  { %7747 = vsyncadd [#allocation5], 4294963968 }
  0x6c   :  { %7748 = dma.done.wait [#allocation8], 8192  }
  0x6d   :  { %7749 = vsyncadd [#allocation8], 4294959104 }
  0x6e   :  { %7750 = dma.done.wait [#allocation11], 5120  }
  0x6f   :  { %7751 = vsyncadd [#allocation11], 4294962176  ;;  %v7768_v0 = vmov 0.0   ;;  %v7202_v1 = vld [vmem:[#allocation2 + $0x4] ss:$28 sps:$4 sm:$0xff]   ;;  %v7769_v38 = vmov 0.0|0.0  }
  0x70   :  { %671 = vmatprep.mubr.f32.mxu0 %v7768_v0  ;;  %742 = vmatprep.mubr.f32.mxu1 %v7768_v0  ;;  %v7204_v2 = vld [vmem:[#allocation2 + $0xc] ss:$28 sps:$4 sm:$0xff]   ;;  %v7206_v3 = vld [vmem:[#allocation2] ss:$28 sps:$4 sm:$0xff]   ;;  %v7212_v7 = vld [vmem:[#allocation2 + $0x38] ss:$28 sps:$4 sm:$0xff]  }
  0x71   :  { %5738 = vmatprep.subr.bf16.mxu0 %v7202_v1  ;;  %v7207_v4 = vld [vmem:[#allocation2 + $0x8] ss:$28 sps:$4 sm:$0xff]   ;;  %5770 = vmatprep.subr.bf16.mxu1 %v7204_v2  ;;  %v7208_v5 = vld [vmem:[#allocation2 + $0x3c] ss:$28 sps:$4 sm:$0xff]   ;;  %v7214_v9 = vld [vmem:[#allocation2 + $0x74] ss:$28 sps:$4 sm:$0xff]  }
  0x72   :  { %5740 = vmatpush1.bf16.msra.mxu0 %v7206_v3  ;;  %5772 = vmatpush1.bf16.msra.mxu1 %v7207_v4  ;;  %v7210_v6 = vld [vmem:[#allocation2 + $0x44] ss:$28 sps:$4 sm:$0xff]   ;;  %v7216_v10 = vld [vmem:[#allocation2 + $0x7c] ss:$28 sps:$4 sm:$0xff]   ;;  %v7218_v11 = vld [vmem:[#allocation2 + $0x70] ss:$28 sps:$4 sm:$0xff]  }
  0x73   :  { %5742 = vmatprep.subr.bf16.mxu0 %v7208_v5  ;;  %v7213_v8 = vld [vmem:[#allocation2 + $0x40] ss:$28 sps:$4 sm:$0xff]   ;;  %5774 = vmatprep.subr.bf16.mxu1 %v7210_v6  ;;  %v7219_v12 = vld [vmem:[#allocation2 + $0x78] ss:$28 sps:$4 sm:$0xff]   ;;  %v7220_v13 = vld [vmem:[#allocation2 + $0xac] ss:$28 sps:$4 sm:$0xff]  }
  0x74   :  { %v7222_v14 = vld [vmem:[#allocation2 + $0xb4] ss:$28 sps:$4 sm:$0xff]   ;;  %v7224_v15 = vld [vmem:[#allocation2 + $0xa8] ss:$28 sps:$4 sm:$0xff]   ;;  %v7230_v19 = vld [vmem:[#allocation2 + $0xe0] ss:$28 sps:$4 sm:$0xff]  }
  0x75   :  { %v7225_v16 = vld [vmem:[#allocation2 + $0xb0] ss:$28 sps:$4 sm:$0xff]   ;;  %v7226_v17 = vld [vmem:[#allocation2 + $0xe4] ss:$28 sps:$4 sm:$0xff]   ;;  %v7232_v21 = vld [vmem:[#allocation2 + $0x11c] ss:$28 sps:$4 sm:$0xff]  }
  0x76   :  { %5744 = vmatpush1.bf16.msra.mxu0 %v7212_v7  ;;  %5776 = vmatpush1.bf16.msra.mxu1 %v7213_v8  ;;  %v7228_v18 = vld [vmem:[#allocation2 + $0xec] ss:$28 sps:$4 sm:$0xff]   ;;  %v7234_v22 = vld [vmem:[#allocation2 + $0x124] ss:$28 sps:$4 sm:$0xff]   ;;  %v7236_v23 = vld [vmem:[#allocation2 + $0x118] ss:$28 sps:$4 sm:$0xff]  }
  0x77   :  { %5746 = vmatprep.subr.bf16.mxu0 %v7214_v9  ;;  %5778 = vmatprep.subr.bf16.mxu1 %v7216_v10  ;;  %v7231_v20 = vld [vmem:[#allocation2 + $0xe8] ss:$28 sps:$4 sm:$0xff]   ;;  %v7237_v24 = vld [vmem:[#allocation2 + $0x120] ss:$28 sps:$4 sm:$0xff]   ;;  %v7238_v25 = vld [vmem:[#allocation2 + $0x154] ss:$28 sps:$4 sm:$0xff]  }
  0x78   :  { %v7240_v26 = vld [vmem:[#allocation2 + $0x15c] ss:$28 sps:$4 sm:$0xff]   ;;  %v7242_v27 = vld [vmem:[#allocation2 + $0x150] ss:$28 sps:$4 sm:$0xff]   ;;  %v7248_v31 = vld [vmem:[#allocation2 + $0x188] ss:$28 sps:$4 sm:$0xff]  }
  0x79   :  { %v7243_v28 = vld [vmem:[#allocation2 + $0x158] ss:$28 sps:$4 sm:$0xff]   ;;  %v7244_v29 = vld [vmem:[#allocation2 + $0x18c] ss:$28 sps:$4 sm:$0xff]   ;;  %v7929_v34 = vld [vmem:[%s8853_s0] sm:$0x3] }
  0x7a   :  { %5748 = vmatpush1.bf16.msra.mxu0 %v7218_v11  ;;  %5780 = vmatpush1.bf16.msra.mxu1 %v7219_v12  ;;  %v7246_v30 = vld [vmem:[#allocation2 + $0x194] ss:$28 sps:$4 sm:$0xff]   ;;  %v7253_v37 = vld [vmem:[#allocation2 + $0x4c] ss:$28 sps:$4 sm:$0xff]   ;;  %v7257_v41 = vld [vmem:[#allocation2 + $0x84] ss:$28 sps:$4 sm:$0xff]  }
  0x7b   :  { %5750 = vmatprep.subr.bf16.mxu0 %v7220_v13  ;;  %5782 = vmatprep.subr.bf16.mxu1 %v7222_v14  ;;  %v7249_v32 = vld [vmem:[#allocation2 + $0x190] ss:$28 sps:$4 sm:$0xff]   ;;  %v7256_v36 = vld [vmem:[#allocation2 + $0x18] ss:$28 sps:$4 sm:$0xff]   ;;  %v7255_v39 = vld [vmem:[#allocation2 + $0x48] ss:$28 sps:$4 sm:$0xff]  }
  0x7c   :  { %v7250_v33 = vld [vmem:[#allocation2 + $0x14] ss:$28 sps:$4 sm:$0xff]   ;;  %v7259_v42 = vld [vmem:[#allocation2 + $0x80] ss:$28 sps:$4 sm:$0xff]   ;;  %vm7770_vm0 = vmmov 0   ;;  %s7771_s16 = smov 64  }
  0x7d   :  { %v7252_v35 = vld [vmem:[#allocation2 + $0x10] ss:$28 sps:$4 sm:$0xff]   ;;  %v7261_v43 = vld [vmem:[#allocation2 + $0xbc] ss:$28 sps:$4 sm:$0xff]   ;;  %v7264_v44 = vld [vmem:[#allocation2 + $0x88] ss:$28 sps:$4 sm:$0xff]  }
  0x7e   :  { %5752 = vmatpush1.bf16.msra.mxu0 %v7224_v15  ;;  %5784 = vmatpush1.bf16.msra.mxu1 %v7225_v16  ;;  %v7260_v40 = vld [vmem:[#allocation2 + $0x50] ss:$28 sps:$4 sm:$0xff]   ;;  %v7263_v45 = vld [vmem:[#allocation2 + $0xb8] ss:$28 sps:$4 sm:$0xff]   ;;  %v7268_v46 = vld [vmem:[#allocation2 + $0xc0] ss:$28 sps:$4 sm:$0xff]  }
  0x7f   :  { %5754 = vmatprep.subr.bf16.mxu0 %v7226_v17  ;;  %5786 = vmatprep.subr.bf16.mxu1 %v7228_v18  ;;  %v7265_v47 = vld [vmem:[#allocation2 + $0xf4] ss:$28 sps:$4 sm:$0xff]   ;;  %v7269_v50 = vld [vmem:[#allocation2 + $0x12c] ss:$28 sps:$4 sm:$0xff]   ;;  %v7273_v53 = vld [vmem:[#allocation2 + $0x164] ss:$28 sps:$4 sm:$0xff]  }
  0x80   :  { %v7267_v48 = vld [vmem:[#allocation2 + $0xf0] ss:$28 sps:$4 sm:$0xff]   ;;  %v7272_v49 = vld [vmem:[#allocation2 + $0xf8] ss:$28 sps:$4 sm:$0xff]   ;;  %v7271_v51 = vld [vmem:[#allocation2 + $0x128] ss:$28 sps:$4 sm:$0xff]  }
  0x81   :  { %v7276_v52 = vld [vmem:[#allocation2 + $0x130] ss:$28 sps:$4 sm:$0xff]   ;;  %v7275_v54 = vld [vmem:[#allocation2 + $0x160] ss:$28 sps:$4 sm:$0xff]   ;;  %v7280_v55 = vld [vmem:[#allocation2 + $0x168] ss:$28 sps:$4 sm:$0xff]  }
  0x82   :  { %5756 = vmatpush1.bf16.msra.mxu0 %v7230_v19  ;;  %5788 = vmatpush1.bf16.msra.mxu1 %v7231_v20  ;;  %v7277_v56 = vld [vmem:[#allocation2 + $0x19c] ss:$28 sps:$4 sm:$0xff]   ;;  %v567_v11 = vld [vmem:[#allocation10] sm:$0xff]  ;;  %vm954_vm1 = vcmask 228352   ;;  %v7953_v14 = vld [vmem:[%s8860_s7] sm:$0xff]  ;;  %v7772_v15 = vmov 0  }
  0x83   :  { %5758 = vmatprep.subr.bf16.mxu0 %v7232_v21  ;;  %5790 = vmatprep.subr.bf16.mxu1 %v7234_v22  ;;  %v7279_v57 = vld [vmem:[#allocation2 + $0x198] ss:$28 sps:$4 sm:$0xff]   ;;  %v7281_v58 = vld [vmem:[#allocation2 + $0x1a0] ss:$28 sps:$4 sm:$0xff]   ;;  %v7961_v17 = vld [vmem:[%s8860_s7 + $0x8] sm:$0xff]  ;;  %vm931_vm2 = vcmask 1041408  }
  0x84   :  { %6988 = vset.pattern.permute.xlu1 %v7772_v15  ;;  %6987 = vset.pattern.permute.xlu0 %v7772_v15  ;;  %vm933_vm3 = vcmask 1043456   ;;  %vm935_vm4 = vcmask 1045504   ;;  %vm7773_vm5 = vmmov 1   ;;  %vm1041_vm7 = vcmask 523264   ;;  %v7297_v15 = vld [vmem:[#allocation4 + $0x4c] ss:$16 sps:$4 sm:$0xff]  }
  0x85   :  { %vm7975_vm6 = vmpackc.low %vm933_vm3, %vm7773_vm5  ;;  %s7776_s4 = smov 96   ;;  %s7777_s20 = smov 32   ;;  %vm1332_vm8 = vcmask 785408   ;;  %vm1425_vm9 = vcmask 261120   ;;  %vm1432_vm10 = vcmask 257024   ;;  %vm1875_vm11 = vcmask 588800  }
  0x86   :  { %5760 = vmatpush1.bf16.msra.mxu0 %v7236_v23  ;;  %5792 = vmatpush1.bf16.msra.mxu1 %v7237_v24  ;;  %vm1971_vm12 = vcmask 519168   ;;  %vm2876_vm13 = vcmask 490496  }
  0x87   :  { %5762 = vmatprep.subr.bf16.mxu0 %v7238_v25  ;;  %5794 = vmatprep.subr.bf16.mxu1 %v7240_v26 }
  0x8a   :  { %5764 = vmatpush1.bf16.msra.mxu0 %v7242_v27  ;;  %5796 = vmatpush1.bf16.msra.mxu1 %v7243_v28 }
  0x8b   :  { %5766 = vmatprep.subr.bf16.mxu0 %v7244_v29  ;;  %5798 = vmatprep.subr.bf16.mxu1 %v7246_v30 }
  0x8e   :  { %5768 = vmatpush1.bf16.msra.mxu0 %v7248_v31  ;;  %5800 = vmatpush1.bf16.msra.mxu1 %v7249_v32 }
  0x8f   :  { %5802 = vmatprep.subr.bf16.mxu0 %v7250_v33  ;;  %5833 = vmatprep.subr.bf16.mxu1 %v7769_v38 }
  0x91   :  { %672 = vmatmul.mubr.f32.vlgmr.msra.gmra.mrb[0].mxu0 %v7929_v34  ;;  %743 = vmatmul.mubr.f32.vlgmr.msra.gmra.mrb[0].mxu1 %v7929_v34 }
  0x92   :  { %5804 = vmatpush1.bf16.msra.mxu0 %v7252_v35  ;;  %5835 = vmatpush3.bf16.msra.mxu1 %v7256_v36 }
  0x93   :  { %5806 = vmatprep.subr.bf16.mxu0 %v7253_v37  ;;  %5836 = vmatprep.subr.bf16.mxu1 %v7769_v38 }
  0x94   :  { %813 = vmatprep.mubr.f32.mxu0 %v7768_v0  ;;  %5523 = vmatprep.mubr.msk.f32.mxu1 %vm7770_vm0, %v7768_v0 }
  0x96   :  { %5808 = vmatpush1.bf16.msra.mxu0 %v7255_v39  ;;  %5838 = vmatpush3.bf16.msra.mxu1 %v7260_v40 }
  0x97   :  { %5810 = vmatprep.subr.bf16.mxu0 %v7257_v41  ;;  %5839 = vmatprep.subr.bf16.mxu1 %v7769_v38 }
  0x9a   :  { %5812 = vmatpush1.bf16.msra.mxu0 %v7259_v42  ;;  %5841 = vmatpush3.bf16.msra.mxu1 %v7264_v44 }
  0x9b   :  { %5814 = vmatprep.subr.bf16.mxu0 %v7261_v43  ;;  %5842 = vmatprep.subr.bf16.mxu1 %v7769_v38 }
  0x9e   :  { %5816 = vmatpush1.bf16.msra.mxu0 %v7263_v45  ;;  %5844 = vmatpush3.bf16.msra.mxu1 %v7268_v46  ;;  %v568_v45 = vld [vmem:[#allocation10 + $0x10] sm:$0xff] }
  0x9f   :  { %5818 = vmatprep.subr.bf16.mxu0 %v7265_v47  ;;  %5845 = vmatprep.subr.bf16.mxu1 %v7769_v38 }
  0xa2   :  { %5820 = vmatpush1.bf16.msra.mxu0 %v7267_v48  ;;  %5847 = vmatpush3.bf16.msra.mxu1 %v7272_v49 }
  0xa3   :  { %5822 = vmatprep.subr.bf16.mxu0 %v7269_v50  ;;  %5848 = vmatprep.subr.bf16.mxu1 %v7769_v38 }
  0xa6   :  { %5824 = vmatpush1.bf16.msra.mxu0 %v7271_v51  ;;  %5850 = vmatpush3.bf16.msra.mxu1 %v7276_v52 }
  0xa7   :  { %5826 = vmatprep.subr.bf16.mxu0 %v7273_v53  ;;  %5851 = vmatprep.subr.bf16.mxu1 %v7769_v38 }
  0xaa   :  { %5828 = vmatpush1.bf16.msra.mxu0 %v7275_v54  ;;  %5853 = vmatpush3.bf16.msra.mxu1 %v7280_v55 }
  0xab   :  { %5830 = vmatprep.subr.bf16.mxu0 %v7277_v56  ;;  %5854 = vmatprep.subr.bf16.mxu1 %v7769_v38 }
  0xae   :  { %5832 = vmatpush1.bf16.msra.mxu0 %v7279_v57  ;;  %5856 = vmatpush3.bf16.msra.mxu1 %v7281_v58 }
  0xb1   :  { %814 = vmatmul.mubr.f32.vlgmr.msra.gmra.mrb[2].mxu0 %v7929_v34  ;;  %5524 = vmatmul.mubr.f32.vlgmr.msra.gmra.mrb[2].mxu1 %v7929_v34 }
  0xb2   :  { %1161 = vmatprep.mubr.f32.mxu1 %v7768_v0  ;;  %5534 = vmatprep.mubr.msk.f32.mxu0 %vm954_vm1, %v567_v11  ;;  %v7290_v11 = vld [vmem:[#allocation4 + $0x20] ss:$16 sps:$4 sm:$0xff]  }
 0x164   :  { %v673_v59 = vpop.f32.mrb[0].mxu0  ;;  %v744_v60 = vpop.f32.mrb[0].mxu1 }
 0x165   :  { %v891_v61 = vrot.slane %v673_v59, 6  ;;  %v903_v62 = vrot.slane %v744_v60, 6  ;;  %v675_v63 = vpop.f32.mrb[1].mxu0  ;;  %v746_v1 = vpop.f32.mrb[1].mxu1 }
 0x166   :  { %v898_v2 = vrot.slane %v675_v63, 2  ;;  %v910_v3 = vrot.slane %v746_v1, 2  ;;  %v896_v21 = vrot.slane %v675_v63, 4  ;;  %v908_v22 = vrot.slane %v746_v1, 4 }
 0x167   :  { %v6972_v4 = vpack.i.bf16 %v903_v62, %v891_v61 }
 0x168   :  { %v6977_v5 = vpack.i.bf16 %v910_v3, %v898_v2  ;;  %v7774_v3 = vmov 2  }
 0x169   :  { %6973 = vrot.lane.b32.xlu0 %v6972_v4, %s7771_s16  ;;  %v7775_v4 = vmov 1  }
 0x16d   :  { %6978 = vrot.lane.b32.xlu0 %v6977_v5, %s7771_s16  ;;  %v7282_v5 = vld [vmem:[#allocation4 + $0x4] ss:$16 sps:$4 sm:$0xff]  }
 0x16e   :  { %5868 = vmatprep.subr.bf16.mxu1 %v7282_v5 }
 0x171   :  { %946 = vperm.xlu0 %6987, %v7953_v14  }
 0x175   :  { %6989 = vset.pattern.permute.xlu0 %v7775_v4 }
 0x184   :  { %v815_v6 = vpop.f32.mrb[2].mxu0  ;;  %v886_v7 = vpop.f32.mrb[2].mxu1 }
 0x185   :  { %v915_v8 = vrot.slane %v815_v6, 6  ;;  %v817_v9 = vpop.f32.mrb[3].mxu0  ;;  %v5525_v10 = vpop.f32.mrb[3].mxu1  ;;  %v927_v16 = vrot.slane %v886_v7, 6 }
 0x186   :  { %v922_v12 = vrot.slane %v817_v9, 2  ;;  %v920_v35 = vrot.slane %v817_v9, 4  ;;  %v7288_v9 = vld [vmem:[#allocation4 + $0x24] ss:$16 sps:$4 sm:$0xff]   ;;  %v7291_v10 = vld [vmem:[#allocation4 + $0x2c] ss:$16 sps:$4 sm:$0xff]  }
 0x188   :  { %v6982_v13 = vpack.i.bf16 %v922_v12, %v915_v8  ;;  %v7287_v8 = vld [vmem:[#allocation4 + $0x8] ss:$16 sps:$4 sm:$0xff]  }
 0x189   :  { %v7293_v12 = vld [vmem:[#allocation4 + $0x28] ss:$16 sps:$4 sm:$0xff]  }
 0x18a   :  { %6983 = vrot.lane.b32.xlu1 %v6982_v13, %s7771_s16  ;;  %v7294_v13 = vld [vmem:[#allocation4 + $0x44] ss:$16 sps:$4 sm:$0xff]  }
 0x18e   :  { %928 = vrot.lane.b32.xlu1 %v927_v16, %s7771_s16  ;;  %v7296_v16 = vld [vmem:[#allocation4 + $0x40] ss:$16 sps:$4 sm:$0xff]  }
 0x192   :  { %951 = vperm.xlu1 %6988, %v7961_v17  }
 0x196   :  { %6990 = vset.pattern.permute.xlu1 %v7774_v3 }
 0x1db   :  { %v6974_v18 = vpop.permute.xlu0 %6973 }
 0x1dc   :  { %v6976_v19 = vunpack.i.h.bf16 %v6974_v18  ;;  %v6975_v20 = vunpack.i.l.bf16 %v6974_v18  ;;  %v7299_v18 = vld [vmem:[#allocation4 + $0x48] ss:$16 sps:$4 sm:$0xff]  }
 0x1de   :  { %v937_v23 = vsel %vm931_vm2, %v744_v60, %v6976_v19  ;;  %v932_v24 = vsel %vm931_vm2, %v673_v59, %v6975_v20 }
 0x1df   :  { %v6979_v25 = vpop.permute.xlu0 %6978  ;;  %v934_v26 = vsel %vm933_vm3, %v932_v24, %v896_v21  ;;  %v938_v27 = vsel %vm933_vm3, %v937_v23, %v908_v22 }
 0x1e0   :  { %v6981_v28 = vunpack.i.h.bf16 %v6979_v25  ;;  %v6980_v29 = vunpack.i.l.bf16 %v6979_v25 }
 0x1e2   :  { %v936_v30 = vsel %vm935_vm4, %v934_v26, %v6980_v29  ;;  %v939_v31 = vsel %vm935_vm4, %v938_v27, %v6981_v28  ;;  %v7300_v29 = vld [vmem:[#allocation4 + $0x64] ss:$16 sps:$4 sm:$0xff]  }
 0x1e3   :  { %v5857_v32 = vpack.c.bf16 %v939_v31, %v936_v30  ;;  %v7303_v30 = vld [vmem:[#allocation4 + $0x6c] ss:$16 sps:$4 sm:$0xff]   ;;  %v7302_v31 = vld [vmem:[#allocation4 + $0x60] ss:$16 sps:$4 sm:$0xff]  }
 0x1e5   :  { %5858 = vmatprep.subr.bf16.mxu0 %v5857_v32 }
 0x1e6   :  { %5860 = vmatpush3.bf16.msra.mxu0 %v5857_v32  ;;  %v7305_v32 = vld [vmem:[#allocation4 + $0x68] ss:$16 sps:$4 sm:$0xff]  }
 0x1f0   :  { %v947_v47 = vpop.permute.xlu0 %946 }
 0x1fc   :  { %v6984_v33 = vpop.permute.xlu1 %6983 }
 0x1fd   :  { %v6985_v34 = vunpack.i.l.bf16 %v6984_v33  ;;  %v6986_v36 = vunpack.i.h.bf16 %v6984_v33 }
 0x1ff   :  { %v940_v37 = vsel %vm931_vm2, %v815_v6, %v6985_v34  ;;  %v7284_v6 = vld [vmem:[#allocation4] ss:$16 sps:$4 sm:$0xff]  }
 0x200   :  { %v929_v39 = vpop.permute.xlu1 %928  ;;  %v941_v40 = vsel %vm933_vm3, %v940_v37, %v920_v35  ;;  %5870 = vmatpush1.bf16.msra.mxu1 %v7284_v6 }
 0x201   :  { %v942_v41 = vsel %vm935_vm4, %v941_v40, %v6986_v36  ;;  %v943_v42 = vsel %vm931_vm2, %v886_v7, %v929_v39  ;;  %v7285_v7 = vld [vmem:[#allocation4 + $0xc] ss:$16 sps:$4 sm:$0xff]   ;;  %5872 = vmatprep.subr.bf16.mxu1 %v7288_v9 }
 0x202   :  { %v5861_v44 = vpack.c.bf16 %v943_v42, %v942_v41 }
 0x204   :  { %5863 = vmatprep.subr.msk.bf16.mxu0 %vm7975_vm6, %v5861_v44  ;;  %5874 = vmatpush1.bf16.msra.mxu1 %v7290_v11 }
 0x205   :  { %5866 = vmatpush3.bf16.msk.msra.mxu0 %vm7975_vm6, %v5861_v44  ;;  %5876 = vmatprep.subr.bf16.mxu1 %v7294_v13 }
 0x206   :  { %5884 = vmatprep.subr.bf16.mxu0 %v7285_v7 }
 0x208   :  { %5535 = vmatmul.mubr.msk.f32.vlgmr.msra.gmra.mrb[4].mxu0 %vm954_vm1, %v568_v45  ;;  %5878 = vmatpush1.bf16.msra.mxu1 %v7296_v16 }
 0x209   :  { %1238 = vmatprep.mubr.f32.mxu0 %v7768_v0  ;;  %5886 = vmatpush1.bf16.msra.mxu0 %v7287_v8 }
 0x20a   :  { %5888 = vmatprep.subr.bf16.mxu0 %v7291_v10  ;;  %5880 = vmatprep.subr.bf16.mxu1 %v7300_v29 }
 0x20c   :  { %5882 = vmatpush1.bf16.msra.mxu1 %v7302_v31 }
 0x20d   :  { %5890 = vmatpush1.bf16.msra.mxu0 %v7293_v12  ;;  %5899 = vmatprep.subr.bf16.mxu1 %v7769_v38 }
 0x20e   :  { %5892 = vmatprep.subr.bf16.mxu0 %v7297_v15 }
 0x211   :  { %v952_v46 = vpop.permute.xlu1 %951  ;;  %5894 = vmatpush1.bf16.msra.mxu0 %v7299_v18 }
 0x212   :  { %5896 = vmatprep.subr.bf16.mxu0 %v7303_v30 }
 0x215   :  { %5898 = vmatpush1.bf16.msra.mxu0 %v7305_v32 }
 0x2db   :  { %v5536_v48 = vpop.f32.mrb[4].mxu0 }
 0x2dc   :  { %v1036_v49 = vadd.f32 %v5536_v48, %v952_v46  ;;  %v1030_v50 = vpop.f32.mrb[5].mxu0 }
 0x2dd   :  { %v1031_v51 = vadd.f32 %v1030_v50, %v947_v47 }
 0x2de   :  { %v1040_v52 = vmax.f32 %v1036_v49, 0.0 }
 0x2df   :  { %v1039_v53 = vmax.f32 %v1031_v51, 0.0 }
 0x2e0   :  { %v1045_v54 = vsel %vm1041_vm7, %v1040_v52, 0.0 }
 0x2e1   :  { %1046 = vadd.xlane.f32.xlu0 %v1045_v54  ;;  %v1042_v55 = vsel %vm1041_vm7, %v1039_v53, 0.0 }
 0x2e2   :  { %1043 = vadd.xlane.f32.xlu1 %v1042_v55 }
 0x36e   :  { %v1047_v56 = vpop.xlane.xlu0 %1046 }
 0x36f   :  { %v1050_v57 = vmul.f32 0.015625, %v1047_v56  ;;  %v1044_v58 = vpop.xlane.xlu1 %1043 }
 0x370   :  { %v1049_v59 = vmul.f32 0.015625, %v1044_v58 }
 0x371   :  { %v7987_v60 = vsub.f32 %v1040_v52, %v1050_v57 }
 0x372   :  { %v7989_v61 = vsub.f32 %v1039_v53, %v1049_v59  ;;  %v570_v59 = vld [vmem:[#allocation10 + $0x28] sm:$0xff] }
 0x373   :  { %v1054_v62 = vmul.f32 %v7987_v60, %v7987_v60 }
 0x374   :  { %v1053_v63 = vmul.f32 %v7989_v61, %v7989_v61 }
 0x375   :  { %v1058_v1 = vsel %vm1041_vm7, %v1054_v62, 0.0 }
 0x376   :  { %1059 = vadd.xlane.f32.xlu1 %v1058_v1  ;;  %v1055_v2 = vsel %vm1041_vm7, %v1053_v63, 0.0 }
 0x377   :  { %1056 = vadd.xlane.f32.xlu0 %v1055_v2 }
 0x387   :  { %1082 = vperm.xlu1 %6990, %v7953_v14  }
 0x38b   :  { %6991 = vset.pattern.permute.xlu1 %v7775_v4 }
 0x403   :  { %v1060_v19 = vpop.xlane.xlu1 %1059 }
 0x404   :  { %v1062_v20 = vmul.f32 0.015625, %v1060_v19  ;;  %v1057_v21 = vpop.xlane.xlu0 %1056 }
 0x405   :  { %v1061_v22 = vmul.f32 0.015625, %v1057_v21 }
 0x406   :  { %v1064_v23 = vadd.f32 1e-05, %v1062_v20 }
 0x407   :  { %v1063_v24 = vadd.f32 1e-05, %v1061_v22  ;;  %v1083_v33 = vpop.permute.xlu1 %1082 }
 0x408   :  { %7412 = vrsqrt.f32 %v1064_v23 }
 0x409   :  { %7414 = vrsqrt.f32 %v1063_v24 }
 0x412   :  { %v7413_v25 = vpop.eup %7412 }
 0x413   :  { %v7415_v26 = vpop.eup %7414  ;;  %v1068_v27 = vmul.f32 %v7413_v25, %v7961_v17 }
 0x414   :  { %v1067_v28 = vmul.f32 %v7415_v26, %v7953_v14 }
 0x415   :  { %1076 = vperm.xlu1 %6991, %v1068_v27  }
 0x416   :  { %1071 = vperm.xlu0 %6989, %v1067_v28  }
 0x419   :  { %6992 = vset.pattern.permute.xlu1 %v7774_v3 }
 0x41a   :  { %1086 = vperm.xlu1 %6992, %v7961_v17  }
 0x494   :  { %v1077_v34 = vpop.permute.xlu1 %1076 }
 0x495   :  { %v1072_v35 = vpop.permute.xlu0 %1071  ;;  %v1080_v40 = vmul.f32 %v1077_v34, %v7987_v60  ;;  %v7778_v60 = vmov 3  }
 0x496   :  { %v1079_v36 = vmul.f32 %v1072_v35, %v7989_v61  ;;  %7043 = vset.pattern.permute.xlu1 %v7778_v60  ;;  %7044 = vset.pattern.permute.xlu0 %v7778_v60  ;;  %v8044_v61 = vld [vmem:[%s8860_s7 + $0x10] sm:$0xf] }
 0x498   :  { %v1089_v37 = vadd.f32 %v1083_v33, %v1079_v36 }
 0x499   :  { %v1087_v39 = vpop.permute.xlu1 %1086 }
 0x49a   :  { %5294 = vmatmul.mubr.msk.f32.vlgmr.msra.gmra.mrb[4].mxu1 %vm1041_vm7, %v1089_v37  ;;  %5296 = vmatmul.mubr.msk.f32.vlgmr.msra.gmra.mrb[6].mxu0 %vm1041_vm7, %v1089_v37  ;;  %v1090_v41 = vadd.f32 %v1087_v39, %v1080_v40 }
 0x49b   :  { %1167 = vmatprep.mubr.f32.mxu1 %v7768_v0  ;;  %1244 = vmatprep.mubr.f32.mxu0 %v7768_v0 }
 0x49e   :  { %5295 = vmatmul.mubr.msk.f32.gmra.mrb[6].mxu1 %vm1041_vm7, %v1090_v41  ;;  %5297 = vmatmul.mubr.msk.f32.gmra.mrb[8].mxu0 %vm1041_vm7, %v1090_v41 }
 0x49f   :  { %1573 = vmatprep.mubr.f32.mxu0 %v7768_v0  ;;  %5298 = vmatprep.mubr.msk.f32.mxu1 %vm1332_vm8, %v570_v59 }
 0x56d   :  { %v1163_v42 = vpop.f32.mrb[4].mxu1  ;;  %v8011_v44 = vpop.f32.mrb[6].mxu0 }
 0x56e   :  { %v1165_v45 = vpop.f32.mrb[5].mxu1  ;;  %v8013_v46 = vpop.f32.mrb[7].mxu0 }
 0x571   :  { %v1169_v47 = vpop.f32.mrb[6].mxu1  ;;  %v8015_v48 = vpop.f32.mrb[8].mxu0 }
 0x572   :  { %v5900_v49 = vpack.c.bf16 %v1169_v47, %v1163_v42  ;;  %v5924_v50 = vpack.c.bf16 %v8015_v48, %v8011_v44  ;;  %v1171_v51 = vpop.f32.mrb[7].mxu1  ;;  %v8019_v52 = vpop.f32.mrb[9].mxu0  ;;  %v6993_v53 = vpack.i.bf16 %v1169_v47, %v1163_v42  ;;  %v7028_v58 = vpack.i.bf16 %v8015_v48, %v8011_v44  ;;  %v569_v42 = vld [vmem:[#allocation10 + $0x20] sm:$0xff]  ;;  %v572_v44 = vld [vmem:[#allocation10 + $0x38] sm:$0xff]  ;;  %v8066_v47 = vld [vmem:[#allocation10 + $0x48] sm:$0xff] }
 0x573   :  { %v5912_v54 = vpack.c.bf16 %v1171_v51, %v1165_v45  ;;  %v7038_v55 = vpack.i.bf16 %v8019_v52, %v8013_v46  ;;  %v5936_v56 = vpack.c.bf16 %v8019_v52, %v8013_v46  ;;  %v7018_v57 = vpack.i.bf16 %v1171_v51, %v1165_v45  ;;  %v571_v45 = vld [vmem:[#allocation10 + $0x30] sm:$0xff]  ;;  %v8070_v48 = vld [vmem:[#allocation10 + $0x40] sm:$0xff] }
 0x574   :  { %6994 = vrot.lane.b32.xlu1 %v6993_v53, %s7776_s4  ;;  %5901 = vmatpush1.bf16.msra.mxu1 %v5900_v49 }
 0x575   :  { %7019 = vrot.lane.b32.xlu0 %v7018_v57, %s7777_s20  ;;  %5902 = vmatprep.subr.bf16.mxu1 %v7769_v38 }
 0x578   :  { %6999 = vrot.lane.b32.xlu1 %v6993_v53, %s7771_s16 }
 0x579   :  { %7029 = vrot.lane.b32.xlu0 %v7028_v58, %s7771_s16 }
 0x57c   :  { %7004 = vrot.lane.b32.xlu1 %v6993_v53, %s7777_s20 }
 0x57d   :  { %7039 = vrot.lane.b32.xlu0 %v7038_v55, %s7776_s4 }
 0x580   :  { %7009 = vrot.lane.b32.xlu1 %v7018_v57, %s7776_s4 }
 0x581   :  { %1324 = vperm.xlu0 %7044, %v7961_v17  }
 0x584   :  { %7014 = vrot.lane.b32.xlu1 %v7018_v57, %s7771_s16 }
 0x588   :  { %7024 = vrot.lane.b32.xlu1 %v7028_v58, %s7776_s4 }
 0x58c   :  { %7034 = vrot.lane.b32.xlu1 %v7028_v58, %s7777_s20 }
 0x590   :  { %1320 = vperm.xlu1 %7043, %v7953_v14  }
 0x594   :  { %1329 = vperm.xlu1 %7043, %v8044_v61  }
 0x5e6   :  { %v6995_v62 = vpop.permute.xlu1 %6994 }
 0x5e7   :  { %v6997_v63 = vunpack.i.h.bf16 %v6995_v62  ;;  %v6996_v1 = vunpack.i.l.bf16 %v6995_v62  ;;  %v7020_v20 = vpop.permute.xlu0 %7019 }
 0x5e8   :  { %v7022_v21 = vunpack.i.h.bf16 %v7020_v20  ;;  %v7021_v22 = vunpack.i.l.bf16 %v7020_v20 }
 0x5e9   :  { %v5903_v2 = vpack.c.bf16 %v6997_v63, %v6996_v1 }
 0x5ea   :  { %v7000_v3 = vpop.permute.xlu1 %6999  ;;  %v5921_v24 = vpack.c.bf16 %v7022_v21, %v7021_v22  ;;  %v7779_v21 = vmov 5   ;;  %v7780_v22 = vmov 4  }
 0x5eb   :  { %v7002_v4 = vunpack.i.h.bf16 %v7000_v3  ;;  %v7001_v5 = vunpack.i.l.bf16 %v7000_v3  ;;  %5904 = vmatpush1.bf16.msra.mxu1 %v5903_v2  ;;  %v7030_v28 = vpop.permute.xlu0 %7029  ;;  %7046 = vset.pattern.permute.xlu1 %v7779_v21 }
 0x5ec   :  { %5905 = vmatprep.subr.bf16.mxu1 %v7769_v38  ;;  %v7032_v29 = vunpack.i.h.bf16 %v7030_v28  ;;  %v7031_v30 = vunpack.i.l.bf16 %v7030_v28  ;;  %7045 = vset.pattern.permute.xlu0 %v7780_v22 }
 0x5ed   :  { %v5906_v6 = vpack.c.bf16 %v7002_v4, %v7001_v5 }
 0x5ee   :  { %v7005_v7 = vpop.permute.xlu1 %7004  ;;  %v5930_v33 = vpack.c.bf16 %v7032_v29, %v7031_v30 }
 0x5ef   :  { %v7007_v8 = vunpack.i.h.bf16 %v7005_v7  ;;  %v7006_v9 = vunpack.i.l.bf16 %v7005_v7  ;;  %5907 = vmatpush1.bf16.msra.mxu1 %v5906_v6  ;;  %v7040_v37 = vpop.permute.xlu0 %7039 }
 0x5f0   :  { %5908 = vmatprep.subr.bf16.mxu1 %v7769_v38  ;;  %v7042_v39 = vunpack.i.h.bf16 %v7040_v37  ;;  %v7041_v40 = vunpack.i.l.bf16 %v7040_v37 }
 0x5f1   :  { %v5909_v10 = vpack.c.bf16 %v7007_v8, %v7006_v9 }
 0x5f2   :  { %v7010_v11 = vpop.permute.xlu1 %7009  ;;  %v5939_v41 = vpack.c.bf16 %v7042_v39, %v7041_v40 }
 0x5f3   :  { %5910 = vmatpush1.bf16.msra.mxu1 %v5909_v10  ;;  %v7012_v12 = vunpack.i.h.bf16 %v7010_v11  ;;  %v7011_v13 = vunpack.i.l.bf16 %v7010_v11 }
 0x5f4   :  { %5911 = vmatprep.subr.bf16.mxu1 %v7769_v38 }
 0x5f5   :  { %v5915_v16 = vpack.c.bf16 %v7012_v12, %v7011_v13 }
 0x5f6   :  { %v7015_v15 = vpop.permute.xlu1 %7014 }
 0x5f7   :  { %5913 = vmatpush1.bf16.msra.mxu1 %v5912_v54  ;;  %v7017_v18 = vunpack.i.h.bf16 %v7015_v15  ;;  %v7016_v19 = vunpack.i.l.bf16 %v7015_v15 }
 0x5f8   :  { %5914 = vmatprep.subr.bf16.mxu1 %v7769_v38 }
 0x5f9   :  { %v5918_v23 = vpack.c.bf16 %v7017_v18, %v7016_v19 }
 0x5fa   :  { %v7025_v25 = vpop.permute.xlu1 %7024 }
 0x5fb   :  { %5916 = vmatpush1.bf16.msra.mxu1 %v5915_v16  ;;  %v7027_v26 = vunpack.i.h.bf16 %v7025_v25  ;;  %v7026_v27 = vunpack.i.l.bf16 %v7025_v25  ;;  %v7309_v25 = vld [vmem:[#allocation6 + $0x2c] ss:$20 sps:$4 sm:$0xff]  }
 0x5fc   :  { %5917 = vmatprep.subr.bf16.mxu1 %v7769_v38 }
 0x5fd   :  { %v5927_v31 = vpack.c.bf16 %v7027_v26, %v7026_v27  ;;  %v7311_v26 = vld [vmem:[#allocation6 + $0x28] ss:$20 sps:$4 sm:$0xff]  }
 0x5fe   :  { %v7035_v32 = vpop.permute.xlu1 %7034 }
 0x5ff   :  { %5919 = vmatpush1.bf16.msra.mxu1 %v5918_v23  ;;  %v7037_v34 = vunpack.i.h.bf16 %v7035_v32  ;;  %v7036_v35 = vunpack.i.l.bf16 %v7035_v32  ;;  %v7306_v23 = vld [vmem:[#allocation6 + $0x4] ss:$20 sps:$4 sm:$0xff]  }
 0x600   :  { %5920 = vmatprep.subr.bf16.mxu1 %v7769_v38  ;;  %v1325_v52 = vpop.permute.xlu0 %1324  ;;  %5942 = vmatprep.subr.bf16.mxu0 %v7306_v23 }
 0x601   :  { %v5933_v36 = vpack.c.bf16 %v7037_v34, %v7036_v35 }
 0x603   :  { %5922 = vmatpush1.bf16.msra.mxu1 %v5921_v24  ;;  %v7308_v24 = vld [vmem:[#allocation6] ss:$20 sps:$4 sm:$0xff]  }
 0x604   :  { %5923 = vmatprep.subr.bf16.mxu1 %v7769_v38  ;;  %5944 = vmatpush1.bf16.msra.mxu0 %v7308_v24 }
 0x605   :  { %5946 = vmatprep.subr.bf16.mxu0 %v7309_v25 }
 0x607   :  { %5925 = vmatpush1.bf16.msra.mxu1 %v5924_v50 }
 0x608   :  { %5926 = vmatprep.subr.bf16.mxu1 %v7769_v38  ;;  %5948 = vmatpush1.bf16.msra.mxu0 %v7311_v26 }
 0x60b   :  { %5928 = vmatpush1.bf16.msra.mxu1 %v5927_v31 }
 0x60c   :  { %5929 = vmatprep.subr.bf16.mxu1 %v7769_v38 }
 0x60f   :  { %5931 = vmatpush1.bf16.msra.mxu1 %v5930_v33  ;;  %v1321_v46 = vpop.permute.xlu1 %1320 }
 0x610   :  { %5932 = vmatprep.subr.bf16.mxu1 %v7769_v38 }
 0x613   :  { %5934 = vmatpush1.bf16.msra.mxu1 %v5933_v36  ;;  %v1330_v59 = vpop.permute.xlu1 %1329 }
 0x614   :  { %5935 = vmatprep.subr.bf16.mxu1 %v7769_v38 }
 0x617   :  { %5937 = vmatpush1.bf16.msra.mxu1 %v5936_v56 }
 0x618   :  { %5938 = vmatprep.subr.bf16.mxu1 %v7769_v38 }
 0x61b   :  { %5940 = vmatpush1.bf16.msra.mxu1 %v5939_v41 }
 0x61e   :  { %1407 = vmatmul.mubr.f32.vlgmr.msra.gmra.mrb[8].mxu1 %v569_v42 }
 0x61f   :  { %5299 = vmatprep.mubr.msk.f32.mxu1 %vm1332_vm8, %v572_v44  ;;  %v7312_v44 = vld [vmem:[#allocation6 + $0xc] ss:$20 sps:$4 sm:$0xff]  }
 0x620   :  { %5950 = vmatprep.subr.bf16.mxu0 %v7312_v44 }
 0x622   :  { %1412 = vmatmul.mubr.f32.gmra.mrb[10].mxu1 %v571_v45 }
 0x623   :  { %5300 = vmatprep.mubr.msk.f32.mxu1 %vm1332_vm8, %v8066_v47 }
 0x626   :  { %1417 = vmatmul.mubr.f32.gmra.mrb[12].mxu1 %v8070_v48 }
 0x627   :  { %2111 = vmatprep.mubr.f32.mxu1 %v7768_v0 }
 0x6f1   :  { %v1408_v49 = vpop.f32.mrb[8].mxu1 }
 0x6f2   :  { %v1409_v50 = vadd.f32 %v1408_v49, %v1321_v46  ;;  %v1410_v51 = vpop.f32.mrb[9].mxu1 }
 0x6f3   :  { %v7314_v51 = vld [vmem:[#allocation6 + $0x8] ss:$20 sps:$4 sm:$0xff]  }
 0x6f4   :  { %v1422_v53 = vmax.f32 %v1409_v50, 0.0 }
 0x6f5   :  { %v1413_v54 = vpop.f32.mrb[10].mxu1 }
 0x6f6   :  { %v1414_v55 = vadd.f32 %v1413_v54, %v1325_v52  ;;  %v1415_v56 = vpop.f32.mrb[11].mxu1  ;;  %v1426_v57 = vsel %vm1425_vm9, %v1422_v53, 0.0 }
 0x6f7   :  { %1427 = vadd.xlane.f32.xlu1 %v1426_v57  ;;  %v7317_v56 = vld [vmem:[#allocation6 + $0x30] ss:$20 sps:$4 sm:$0xff]  }
 0x6f8   :  { %v1423_v58 = vmax.f32 %v1414_v55, 0.0 }
 0x6f9   :  { %v1418_v60 = vpop.f32.mrb[12].mxu1 }
 0x6fa   :  { %v1419_v62 = vadd.f32 %v1418_v60, %v1330_v59  ;;  %v1420_v63 = vpop.f32.mrb[13].mxu1  ;;  %v1429_v1 = vsel %vm1425_vm9, %v1423_v58, 0.0 }
 0x6fb   :  { %1430 = vadd.xlane.f32.xlu0 %v1429_v1  ;;  %v7318_v63 = vld [vmem:[#allocation6 + $0x10] ss:$20 sps:$4 sm:$0xff]   ;;  %v7319_v1 = vld [vmem:[#allocation6 + $0x38] ss:$20 sps:$4 sm:$0xff]  }
 0x6fc   :  { %v1424_v2 = vmax.f32 %v1419_v62, 0.0 }
 0x6fe   :  { %v1433_v3 = vsel %vm1432_vm10, %v1424_v2, 0.0 }
 0x6ff   :  { %1434 = vadd.xlane.f32.xlu0 %v1433_v3 }
 0x784   :  { %v1428_v4 = vpop.xlane.xlu1 %1427 }
 0x785   :  { %v1437_v5 = vmul.f32 0.03125, %v1428_v4 }
 0x787   :  { %v1440_v6 = vsub.f32 %v1422_v53, %v1437_v5  ;;  %v7315_v53 = vld [vmem:[#allocation6 + $0x34] ss:$20 sps:$4 sm:$0xff]  }
 0x788   :  { %v1431_v7 = vpop.xlane.xlu0 %1430 }
 0x789   :  { %v1438_v8 = vmul.f32 0.03125, %v1431_v7  ;;  %v1443_v9 = vmul.f32 %v1440_v6, %v1440_v6 }
 0x78b   :  { %v1441_v10 = vsub.f32 %v1423_v58, %v1438_v8  ;;  %v1446_v11 = vsel %vm1425_vm9, %v1443_v9, 0.0 }
 0x78c   :  { %v1435_v12 = vpop.xlane.xlu0 %1434  ;;  %1447 = vadd.xlane.f32.xlu1 %v1446_v11 }
 0x78d   :  { %v1439_v13 = vmul.f32 0.03125, %v1435_v12  ;;  %v1444_v15 = vmul.f32 %v1441_v10, %v1441_v10 }
 0x78f   :  { %v8078_v16 = vsub.f32 %v1424_v2, %v1439_v13  ;;  %v1449_v18 = vsel %vm1425_vm9, %v1444_v15, 0.0 }
 0x790   :  { %1450 = vadd.xlane.f32.xlu0 %v1449_v18 }
 0x791   :  { %v1445_v19 = vmul.f32 %v8078_v16, %v8078_v16 }
 0x793   :  { %v1452_v20 = vsel %vm1432_vm10, %v1445_v19, 0.0 }
 0x794   :  { %1453 = vadd.xlane.f32.xlu1 %v1452_v20 }
 0x7a5   :  { %1486 = vperm.xlu1 %7046, %v7953_v14  }
 0x7a9   :  { %1490 = vperm.xlu1 %7046, %v7961_v17  }
 0x7ad   :  { %7047 = vset.pattern.permute.xlu1 %v7780_v22 }
 0x819   :  { %v1448_v27 = vpop.xlane.xlu1 %1447 }
 0x81a   :  { %v1455_v28 = vmul.f32 0.03125, %v1448_v27 }
 0x81c   :  { %v1458_v29 = vadd.f32 1e-05, %v1455_v28 }
 0x81d   :  { %v1451_v30 = vpop.xlane.xlu0 %1450 }
 0x81e   :  { %7416 = vrsqrt.f32 %v1458_v29  ;;  %v1456_v31 = vmul.f32 0.03125, %v1451_v30 }
 0x820   :  { %v1459_v32 = vadd.f32 1e-05, %v1456_v31 }
 0x821   :  { %v1454_v33 = vpop.xlane.xlu1 %1453 }
 0x822   :  { %7418 = vrsqrt.f32 %v1459_v32  ;;  %v1457_v34 = vmul.f32 0.03125, %v1454_v33 }
 0x824   :  { %v1460_v35 = vadd.f32 1e-05, %v1457_v34 }
 0x825   :  { %v1487_v45 = vpop.permute.xlu1 %1486 }
 0x826   :  { %7420 = vrsqrt.f32 %v1460_v35 }
 0x828   :  { %v7417_v36 = vpop.eup %7416 }
 0x829   :  { %v1464_v37 = vmul.f32 %v7417_v36, %v7953_v14  ;;  %v1491_v46 = vpop.permute.xlu1 %1490 }
 0x82b   :  { %1469 = vperm.xlu0 %7045, %v1464_v37  }
 0x82c   :  { %v7419_v39 = vpop.eup %7418 }
 0x82d   :  { %v1465_v40 = vmul.f32 %v7419_v39, %v7961_v17 }
 0x82f   :  { %1474 = vperm.xlu1 %7047, %v1465_v40  }
 0x830   :  { %v7421_v41 = vpop.eup %7420 }
 0x831   :  { %v1466_v42 = vmul.f32 %v7421_v41, %v8044_v61 }
 0x833   :  { %1479 = vperm.xlu1 %7047, %v1466_v42  }
 0x837   :  { %7048 = vset.pattern.permute.xlu1 %v7779_v21 }
 0x838   :  { %1494 = vperm.xlu1 %7048, %v8044_v61  }
 0x8aa   :  { %v1470_v49 = vpop.permute.xlu0 %1469 }
 0x8ab   :  { %v1482_v50 = vmul.f32 %v1470_v49, %v1440_v6 }
 0x8ad   :  { %v1497_v52 = vadd.f32 %v1487_v45, %v1482_v50 }
 0x8ae   :  { %v1475_v54 = vpop.permute.xlu1 %1474 }
 0x8af   :  { %v1483_v55 = vmul.f32 %v1475_v54, %v1441_v10  ;;  %5301 = vmatmul.mubr.msk.f32.vlgmr.msra.gmra.mrb[10].mxu0 %vm1425_vm9, %v1497_v52 }
 0x8b0   :  { %1579 = vmatprep.mubr.f32.mxu0 %v7768_v0  ;;  %5952 = vmatpush1.bf16.msra.mxu0 %v7314_v51 }
 0x8b1   :  { %v1498_v57 = vadd.f32 %v1491_v46, %v1483_v55  ;;  %5954 = vmatprep.subr.bf16.mxu0 %v7315_v53 }
 0x8b2   :  { %v1480_v58 = vpop.permute.xlu1 %1479 }
 0x8b3   :  { %5302 = vmatmul.mubr.msk.f32.gmra.mrb[12].mxu0 %vm1425_vm9, %v1498_v57  ;;  %v1484_v59 = vmul.f32 %v1480_v58, %v8078_v16 }
 0x8b4   :  { %1585 = vmatprep.mubr.f32.mxu0 %v7768_v0  ;;  %5956 = vmatpush1.bf16.msra.mxu0 %v7317_v56 }
 0x8b5   :  { %5957 = vmatprep.subr.bf16.mxu0 %v7769_v38 }
 0x8b7   :  { %v1495_v60 = vpop.permute.xlu1 %1494 }
 0x8b8   :  { %v1499_v62 = vadd.f32 %v1495_v60, %v1484_v59  ;;  %v1865_v59 = vrot.slane %v8066_v47, 4  ;;  %v8176_v60 = vld [vmem:[#allocation10 + $0x58] sm:$0xff] }
 0x8ba   :  { %5303 = vmatmul.mubr.msk.f32.gmra.mrb[14].mxu0 %vm1425_vm9, %v1499_v62 }
 0x8bb   :  { %1656 = vmatprep.mubr.f32.mxu0 %v7768_v0 }
 0x8be   :  { %5304 = vmatmul.mubr.msk.f32.vlgmr.msra.gmra.mrb[16].mxu0 %vm1425_vm9, %v1497_v52 }
 0x8bf   :  { %1662 = vmatprep.mubr.f32.mxu0 %v7768_v0  ;;  %5959 = vmatpush3.bf16.msra.mxu0 %v7318_v63 }
 0x8c0   :  { %5960 = vmatprep.subr.bf16.mxu0 %v7769_v38 }
 0x8c2   :  { %5305 = vmatmul.mubr.msk.f32.gmra.mrb[18].mxu0 %vm1425_vm9, %v1498_v57 }
 0x8c3   :  { %1668 = vmatprep.mubr.f32.mxu0 %v7768_v0  ;;  %5962 = vmatpush3.bf16.msra.mxu0 %v7319_v1  ;;  %v7781_v1 = vmov 6  }
 0x8c4   :  { %5963 = vmatprep.subr.bf16.mxu0 %v7769_v38  ;;  %7074 = vset.pattern.permute.xlu0 %v7781_v1 }
 0x8c5   :  { %7075 = vset.pattern.permute.xlu1 %v7781_v1 }
 0x8c6   :  { %5306 = vmatmul.mubr.msk.f32.gmra.mrb[20].mxu0 %vm1425_vm9, %v1499_v62 }
 0x8c7   :  { %5545 = vmatprep.mubr.msk.f32.mxu0 %vm7770_vm0, %v7768_v0 }
 0x8ca   :  { %5546 = vmatmul.mubr.msk.f32.vlgmr.msra.gmra.mrb[22].mxu0 %vm1425_vm9, %v1497_v52 }
 0x8cb   :  { %5548 = vmatprep.mubr.msk.f32.mxu0 %vm7770_vm0, %v7768_v0 }
 0x8ce   :  { %5549 = vmatmul.mubr.msk.f32.gmra.mrb[24].mxu0 %vm1425_vm9, %v1498_v57 }
 0x8cf   :  { %5551 = vmatprep.mubr.msk.f32.mxu0 %vm7770_vm0, %v7768_v0 }
 0x8d2   :  { %5552 = vmatmul.mubr.msk.f32.gmra.mrb[26].mxu0 %vm1425_vm9, %v1499_v62  ;;  %v1866_v62 = vrot.slane %v8176_v60, 4 }
 0x8d4   :  { %v1867_v63 = vsel %vm933_vm3, %v1865_v59, %v1866_v62 }
 0x8d5   :  { %5310 = vmatprep.mubr.msk.f32.mxu0 %vm1875_vm11, %v1867_v63 }
 0x982   :  { %v1575_v2 = vpop.f32.mrb[10].mxu0 }
 0x983   :  { %v8114_v3 = vpop.f32.mrb[11].mxu0  ;;  %v1758_v6 = vrot.slane %v1575_v2, 4 }
 0x984   :  { %v1775_v4 = vrot.slane %v8114_v3, 4 }
 0x986   :  { %1780 = vrot.lane.b32.xlu0 %v1775_v4, %s7771_s16  ;;  %v1581_v5 = vpop.f32.mrb[12].mxu0 }
 0x987   :  { %v1759_v7 = vrot.slane %v1581_v5, 4  ;;  %v5964_v8 = vpack.c.bf16 %v1581_v5, %v1575_v2  ;;  %v8118_v9 = vpop.f32.mrb[13].mxu0 }
 0x988   :  { %v1776_v10 = vrot.slane %v8118_v9, 4 }
 0x989   :  { %5965 = vmatpush1.bf16.msra.mxu0 %v5964_v8  ;;  %v1760_v11 = vsel %vm933_vm3, %v1758_v6, %v1759_v7 }
 0x98a   :  { %v7049_v12 = vpack.i.bf16 %v1760_v11, %v1758_v6  ;;  %v1777_v13 = vsel %vm933_vm3, %v1775_v4, %v1776_v10  ;;  %5966 = vmatprep.subr.bf16.mxu0 %v7769_v38 }
 0x98c   :  { %7050 = vrot.lane.b32.xlu1 %v7049_v12, %s7771_s16 }
 0x98d   :  { %v8125_v15 = vpop.f32.mrb[14].mxu0 }
 0x98e   :  { %v1761_v16 = vrot.slane %v8125_v15, 4  ;;  %v1589_v18 = vpop.f32.mrb[15].mxu0 }
 0x98f   :  { %v1778_v19 = vrot.slane %v1589_v18, 4 }
 0x990   :  { %v1762_v20 = vsel %vm933_vm3, %v1759_v7, %v1761_v16 }
 0x991   :  { %1767 = vrot.lane.b32.xlu1 %v1762_v20, %s7771_s16  ;;  %v8130_v21 = vpop.f32.mrb[16].mxu0  ;;  %v1779_v22 = vsel %vm933_vm3, %v1776_v10, %v1778_v19 }
 0x992   :  { %v8133_v23 = vpop.f32.mrb[17].mxu0  ;;  %v7054_v24 = vpack.i.bf16 %v1779_v22, %v1777_v13  ;;  %v1792_v26 = vrot.slane %v8130_v21, 4 }
 0x993   :  { %v1809_v30 = vrot.slane %v8133_v23, 4 }
 0x995   :  { %7055 = vrot.lane.b32.xlu1 %v7054_v24, %s7771_s16  ;;  %v8136_v25 = vpop.f32.mrb[18].mxu0 }
 0x996   :  { %v1793_v27 = vrot.slane %v8136_v25, 4  ;;  %v5979_v28 = vpack.c.bf16 %v8136_v25, %v8130_v21  ;;  %v8142_v29 = vpop.f32.mrb[19].mxu0 }
 0x997   :  { %v1810_v31 = vrot.slane %v8142_v29, 4 }
 0x998   :  { %v1794_v32 = vsel %vm933_vm3, %v1792_v26, %v1793_v27 }
 0x999   :  { %v8147_v33 = vpop.f32.mrb[20].mxu0  ;;  %v7059_v34 = vpack.i.bf16 %v1794_v32, %v1792_v26  ;;  %v1811_v35 = vsel %vm933_vm3, %v1809_v30, %v1810_v31 }
 0x99a   :  { %v1795_v36 = vrot.slane %v8147_v33, 4  ;;  %v8151_v37 = vpop.f32.mrb[21].mxu0 }
 0x99b   :  { %v1812_v39 = vrot.slane %v8151_v37, 4  ;;  %7060 = vrot.lane.b32.xlu0 %v7059_v34, %s7771_s16  ;;  %v578_v34 = vld [vmem:[#allocation10 + $0x68] sm:$0xff] }
 0x99c   :  { %v1796_v40 = vsel %vm933_vm3, %v1793_v27, %v1795_v36 }
 0x99d   :  { %1801 = vrot.lane.b32.xlu1 %v1796_v40, %s7771_s16  ;;  %v8157_v41 = vpop.f32.mrb[22].mxu0  ;;  %v1813_v42 = vsel %vm933_vm3, %v1810_v31, %v1812_v39  ;;  %v1870_v39 = vrot.slane %v578_v34, 4  ;;  %v577_v40 = vld [vmem:[#allocation10 + $0x60] sm:$0xff] }
 0x99e   :  { %v5547_v44 = vpop.f32.mrb[23].mxu0  ;;  %v7064_v45 = vpack.i.bf16 %v1813_v42, %v1811_v35  ;;  %v1826_v49 = vrot.slane %v8157_v41, 4  ;;  %v1862_v35 = vrot.slane %v8070_v48, 4 }
 0x99f   :  { %1814 = vrot.lane.b32.xlu0 %v1809_v30, %s7771_s16  ;;  %v1868_v44 = vrot.slane %v577_v40, 4 }
 0x9a1   :  { %7065 = vrot.lane.b32.xlu1 %v7064_v45, %s7771_s16  ;;  %v8162_v46 = vpop.f32.mrb[24].mxu0 }
 0x9a2   :  { %v1827_v50 = vrot.slane %v8162_v46, 4  ;;  %v5994_v51 = vpack.c.bf16 %v8162_v46, %v8157_v41  ;;  %v5550_v52 = vpop.f32.mrb[25].mxu0  ;;  %v1871_v41 = vsel %vm933_vm3, %v1866_v62, %v1870_v39 }
 0x9a4   :  { %v1828_v53 = vsel %vm933_vm3, %v1826_v49, %v1827_v50 }
 0x9a5   :  { %v8169_v54 = vpop.f32.mrb[26].mxu0  ;;  %v7069_v55 = vpack.i.bf16 %v1828_v53, %v1826_v49 }
 0x9a6   :  { %v1829_v56 = vrot.slane %v8169_v54, 4  ;;  %v5553_v57 = vpop.f32.mrb[27].mxu0 }
 0x9a7   :  { %7070 = vrot.lane.b32.xlu0 %v7069_v55, %s7771_s16 }
 0x9a8   :  { %v1830_v58 = vsel %vm933_vm3, %v1827_v50, %v1829_v56 }
 0x9a9   :  { %1835 = vrot.lane.b32.xlu1 %v1830_v58, %s7771_s16 }
 0x9ab   :  { %1846 = vperm.xlu0 %7074, %v7953_v14  }
 0x9ad   :  { %1850 = vperm.xlu1 %7075, %v7961_v17  }
 0x9b1   :  { %1854 = vperm.xlu1 %7075, %v8044_v61  }
 0x9f8   :  { %v1781_v47 = vpop.permute.xlu0 %1780 }
 0x9f9   :  { %v1841_v2 = vsel %vm933_vm3, %v1589_v18, %v1781_v47 }
 0x9fa   :  { %v5973_v4 = vpack.c.bf16 %v1841_v2, %v8118_v9 }
 0x9fe   :  { %v7051_v5 = vpop.permute.xlu1 %7050 }
 0x9ff   :  { %v7053_v6 = vunpack.i.h.bf16 %v7051_v5  ;;  %v7052_v7 = vunpack.i.l.bf16 %v7051_v5 }
 0xa01   :  { %v1840_v8 = vsel %vm933_vm3, %v8125_v15, %v7052_v7 }
 0xa02   :  { %v5967_v10 = vpack.c.bf16 %v7053_v6, %v1840_v8 }
 0xa03   :  { %v1768_v11 = vpop.permute.xlu1 %1767 }
 0xa04   :  { %5968 = vmatpush1.bf16.msra.mxu0 %v5967_v10  ;;  %v5970_v14 = vpack.c.bf16 %v8114_v3, %v1768_v11 }
 0xa05   :  { %5969 = vmatprep.subr.bf16.mxu0 %v7769_v38 }
 0xa07   :  { %v7056_v17 = vpop.permute.xlu1 %7055 }
 0xa08   :  { %5971 = vmatpush1.bf16.msra.mxu0 %v5970_v14  ;;  %v7058_v12 = vunpack.i.h.bf16 %v7056_v17  ;;  %v7057_v13 = vunpack.i.l.bf16 %v7056_v17 }
 0xa09   :  { %5972 = vmatprep.subr.bf16.mxu0 %v7769_v38 }
 0xa0a   :  { %v5976_v16 = vpack.c.bf16 %v7058_v12, %v7057_v13 }
 0xa0c   :  { %5974 = vmatpush1.bf16.msra.mxu0 %v5973_v4 }
 0xa0d   :  { %v7061_v9 = vpop.permute.xlu0 %7060  ;;  %5975 = vmatprep.subr.bf16.mxu0 %v7769_v38 }
 0xa0e   :  { %v7062_v18 = vunpack.i.l.bf16 %v7061_v9  ;;  %v7063_v19 = vunpack.i.h.bf16 %v7061_v9 }
 0xa0f   :  { %v1802_v24 = vpop.permute.xlu1 %1801 }
 0xa10   :  { %5977 = vmatpush1.bf16.msra.mxu0 %v5976_v16  ;;  %v1842_v20 = vsel %vm933_vm3, %v8147_v33, %v7062_v18  ;;  %v5985_v27 = vpack.c.bf16 %v8133_v23, %v1802_v24  ;;  %v575_v23 = vld [vmem:[#allocation10 + $0x50] sm:$0xff]  ;;  %v7322_v24 = vld [vmem:[#allocation7] ss:$40 sps:$4 sm:$0xff]  }
 0xa11   :  { %v1815_v15 = vpop.permute.xlu0 %1814  ;;  %5978 = vmatprep.subr.bf16.mxu0 %v7769_v38  ;;  %v5982_v26 = vpack.c.bf16 %v7063_v19, %v1842_v20  ;;  %v7782_v19 = vmov 7   ;;  %v8247_v20 = vld [vmem:[%s8860_s7] sm:$0xff] }
 0xa12   :  { %v1843_v3 = vsel %vm933_vm3, %v8151_v37, %v1815_v15  ;;  %v1863_v37 = vrot.slane %v575_v23, 4  ;;  %7077 = vset.pattern.permute.xlu1 %v7782_v19 }
 0xa13   :  { %v5988_v22 = vpack.c.bf16 %v1843_v3, %v8142_v29  ;;  %v7066_v30 = vpop.permute.xlu1 %7065  ;;  %v7783_v3 = vmov 8  }
 0xa14   :  { %5980 = vmatpush1.bf16.msra.mxu0 %v5979_v28  ;;  %v7068_v31 = vunpack.i.h.bf16 %v7066_v30  ;;  %v7067_v32 = vunpack.i.l.bf16 %v7066_v30  ;;  %v1864_v42 = vsel %vm933_vm3, %v1862_v35, %v1863_v37  ;;  %v1869_v48 = vsel %vm933_vm3, %v1863_v37, %v1868_v44  ;;  %7076 = vset.pattern.permute.xlu0 %v7783_v3  ;;  %v7326_v30 = vld [vmem:[#allocation7 + $0x54] ss:$40 sps:$4 sm:$0xff]  }
 0xa15   :  { %5981 = vmatprep.subr.bf16.mxu0 %v7769_v38 }
 0xa16   :  { %v5991_v21 = vpack.c.bf16 %v7068_v31, %v7067_v32  ;;  %v7329_v31 = vld [vmem:[#allocation7 + $0x6c] ss:$40 sps:$4 sm:$0xff]   ;;  %v7328_v32 = vld [vmem:[#allocation7 + $0x50] ss:$40 sps:$4 sm:$0xff]  }
 0xa18   :  { %5983 = vmatpush1.bf16.msra.mxu0 %v5982_v26  ;;  %v7323_v26 = vld [vmem:[#allocation7 + $0x1c] ss:$40 sps:$4 sm:$0xff]  }
 0xa19   :  { %5984 = vmatprep.subr.bf16.mxu0 %v7769_v38  ;;  %v7071_v29 = vpop.permute.xlu0 %7070 }
 0xa1a   :  { %v7072_v25 = vunpack.i.l.bf16 %v7071_v29  ;;  %v7073_v28 = vunpack.i.h.bf16 %v7071_v29  ;;  %v7331_v29 = vld [vmem:[#allocation7 + $0x68] ss:$40 sps:$4 sm:$0xff]  }
 0xa1b   :  { %v1836_v45 = vpop.permute.xlu1 %1835 }
 0xa1c   :  { %5986 = vmatpush1.bf16.msra.mxu0 %v5985_v27  ;;  %v1844_v33 = vsel %vm933_vm3, %v8169_v54, %v7072_v25  ;;  %v7325_v27 = vld [vmem:[#allocation7 + $0x18] ss:$40 sps:$4 sm:$0xff]   ;;  %v7335_v25 = vld [vmem:[#allocation7 + $0xbc] ss:$40 sps:$4 sm:$0xff]  }
 0xa1d   :  { %5987 = vmatprep.subr.bf16.mxu0 %v7769_v38  ;;  %v5997_v36 = vpack.c.bf16 %v7073_v28, %v1844_v33  ;;  %v7334_v28 = vld [vmem:[#allocation7 + $0xa0] ss:$40 sps:$4 sm:$0xff]  }
 0xa1e   :  { %v7337_v33 = vld [vmem:[#allocation7 + $0xb8] ss:$40 sps:$4 sm:$0xff]  }
 0xa20   :  { %5989 = vmatpush1.bf16.msra.mxu0 %v5988_v22  ;;  %v7320_v22 = vld [vmem:[#allocation7 + $0x4] ss:$40 sps:$4 sm:$0xff]  }
 0xa21   :  { %5990 = vmatprep.subr.bf16.mxu0 %v7769_v38  ;;  %6000 = vmatprep.subr.bf16.mxu1 %v7320_v22  ;;  %v7368_v22 = vld [vmem:[#allocation7 + $0x24] ss:$40 sps:$4 sm:$0xff]  }
 0xa22   :  { %6002 = vmatpush1.bf16.msra.mxu1 %v7322_v24  ;;  %v7370_v24 = vld [vmem:[#allocation7 + $0x20] ss:$40 sps:$4 sm:$0xff]  }
 0xa23   :  { %6004 = vmatprep.subr.bf16.mxu1 %v7326_v30  ;;  %v7374_v30 = vld [vmem:[#allocation7 + $0xc4] ss:$40 sps:$4 sm:$0xff]  }
 0xa24   :  { %5992 = vmatpush1.bf16.msra.mxu0 %v5991_v21  ;;  %v7332_v21 = vld [vmem:[#allocation7 + $0xa4] ss:$40 sps:$4 sm:$0xff]  }
 0xa25   :  { %5993 = vmatprep.subr.bf16.mxu0 %v7769_v38 }
 0xa26   :  { %6006 = vmatpush1.bf16.msra.mxu1 %v7328_v32  ;;  %v7377_v32 = vld [vmem:[#allocation7 + $0x114] ss:$40 sps:$4 sm:$0xff]  }
 0xa27   :  { %6008 = vmatprep.subr.bf16.mxu1 %v7332_v21  ;;  %v580_v21 = vld [vmem:[#allocation10 + $0x78] sm:$0xff] }
 0xa28   :  { %5995 = vmatpush1.bf16.msra.mxu0 %v5994_v51 }
 0xa29   :  { %5996 = vmatprep.subr.bf16.mxu0 %v7769_v38 }
 0xa2a   :  { %v1847_v46 = vpop.permute.xlu0 %1846  ;;  %6010 = vmatpush1.bf16.msra.mxu1 %v7334_v28  ;;  %v8308_v28 = vld [vmem:[%s8860_s7 + $0x10] sm:$0xf] }
 0xa2c   :  { %5998 = vmatpush1.bf16.msra.mxu0 %v5997_v36  ;;  %v1851_v50 = vpop.permute.xlu1 %1850 }
 0xa2d   :  { %1930 = vmatprep.subr.mxu0 %v7768_v0 }
 0xa30   :  { %1931 = vmatpush1.msra.mxu0 %v1836_v45  ;;  %v1855_v58 = vpop.permute.xlu1 %1854 }
 0xa31   :  { %1947 = vmatmul.mubr.f32.vlgmr.msra.gmra.mrb[28].mxu0 %v1864_v42  ;;  %6048 = vmatprep.subr.bf16.mxu0 %v7323_v26  ;;  %v7371_v26 = vld [vmem:[#allocation7 + $0x74] ss:$40 sps:$4 sm:$0xff]  }
 0xa32   :  { %5311 = vmatprep.mubr.msk.f32.mxu0 %vm1875_vm11, %v1871_v41  ;;  %6050 = vmatpush1.bf16.msra.mxu0 %v7325_v27  ;;  %v7373_v27 = vld [vmem:[#allocation7 + $0x70] ss:$40 sps:$4 sm:$0xff]  }
 0xa33   :  { %6052 = vmatprep.subr.bf16.mxu0 %v7329_v31  ;;  %v7376_v31 = vld [vmem:[#allocation7 + $0xc0] ss:$40 sps:$4 sm:$0xff]  }
 0xa35   :  { %1952 = vmatmul.mubr.f32.gmra.mrb[30].mxu0 %v1869_v48  ;;  %v7338_v48 = vld [vmem:[#allocation7 + $0xf4] ss:$40 sps:$4 sm:$0xff]  }
 0xa36   :  { %5312 = vmatprep.mubr.msk.f32.mxu0 %vm1875_vm11, %v1870_v39  ;;  %6054 = vmatpush1.bf16.msra.mxu0 %v7331_v29  ;;  %v7379_v29 = vld [vmem:[#allocation7 + $0x110] ss:$40 sps:$4 sm:$0xff]  }
 0xa37   :  { %6056 = vmatprep.subr.bf16.mxu0 %v7335_v25  ;;  %6012 = vmatprep.subr.bf16.mxu1 %v7338_v48  ;;  %v7784_v25 = vmov 9  }
 0xa39   :  { %1957 = vmatmul.mubr.f32.gmra.mrb[32].mxu0 %v1868_v44 }
 0xa3a   :  { %2360 = vmatprep.mubr.f32.mxu0 %v7768_v0  ;;  %6058 = vmatpush1.bf16.msra.mxu0 %v7337_v33 }
 0xb04   :  { %v1948_v49 = vpop.f32.mrb[28].mxu0 }
 0xb05   :  { %v1949_v51 = vadd.f32 %v1948_v49, %v1847_v46  ;;  %v1950_v52 = vpop.f32.mrb[29].mxu0  ;;  %v7340_v46 = vld [vmem:[#allocation7 + $0xf0] ss:$40 sps:$4 sm:$0xff]   ;;  %v7341_v49 = vld [vmem:[#allocation7 + $0x10c] ss:$40 sps:$4 sm:$0xff]  }
 0xb06   :  { %6060 = vmatprep.subr.bf16.mxu0 %v7341_v49  ;;  %6014 = vmatpush1.bf16.msra.mxu1 %v7340_v46 }
 0xb07   :  { %v1962_v53 = vmax.f32 %v1949_v51, 0.0  ;;  %v7344_v51 = vld [vmem:[#allocation7 + $0xc] ss:$40 sps:$4 sm:$0xff]  }
 0xb08   :  { %v1953_v54 = vpop.f32.mrb[30].mxu0  ;;  %6016 = vmatprep.subr.bf16.mxu1 %v7344_v51 }
 0xb09   :  { %v1954_v55 = vadd.f32 %v1953_v54, %v1851_v50  ;;  %v1965_v56 = vsel %vm1041_vm7, %v1962_v53, 0.0  ;;  %v1955_v57 = vpop.f32.mrb[31].mxu0  ;;  %v7343_v50 = vld [vmem:[#allocation7 + $0x108] ss:$40 sps:$4 sm:$0xff]  }
 0xb0a   :  { %1966 = vadd.xlane.f32.xlu0 %v1965_v56  ;;  %6062 = vmatpush1.bf16.msra.mxu0 %v7343_v50 }
 0xb0b   :  { %v1963_v59 = vmax.f32 %v1954_v55, 0.0  ;;  %6079 = vmatprep.subr.bf16.mxu0 %v7769_v38 }
 0xb0c   :  { %v1958_v60 = vpop.f32.mrb[32].mxu0 }
 0xb0d   :  { %v1959_v62 = vadd.f32 %v1958_v60, %v1855_v58  ;;  %v1968_v63 = vsel %vm1041_vm7, %v1963_v59, 0.0  ;;  %v1960_v1 = vpop.f32.mrb[33].mxu0  ;;  %v7346_v60 = vld [vmem:[#allocation7 + $0x8] ss:$40 sps:$4 sm:$0xff]  }
 0xb0e   :  { %1969 = vadd.xlane.f32.xlu1 %v1968_v63  ;;  %v7347_v63 = vld [vmem:[#allocation7 + $0x5c] ss:$40 sps:$4 sm:$0xff]  }
 0xb0f   :  { %v1964_v47 = vmax.f32 %v1959_v62, 0.0 }
 0xb11   :  { %v1972_v2 = vsel %vm1971_vm12, %v1964_v47, 0.0 }
 0xb12   :  { %1973 = vadd.xlane.f32.xlu0 %v1972_v2 }
 0xb97   :  { %v1967_v4 = vpop.xlane.xlu0 %1966 }
 0xb98   :  { %v1975_v5 = vmul.f32 0.015625, %v1967_v4  ;;  %v7352_v4 = vld [vmem:[#allocation7 + $0xa8] ss:$40 sps:$4 sm:$0xff]  }
 0xb9a   :  { %v8228_v6 = vsub.f32 %v1962_v53, %v1975_v5  ;;  %v8256_v53 = vld [vmem:[%s8860_s7 + $0x8] sm:$0xff] }
 0xb9b   :  { %v1970_v7 = vpop.xlane.xlu1 %1969 }
 0xb9c   :  { %v1976_v8 = vmul.f32 0.015625, %v1970_v7  ;;  %v1981_v10 = vmul.f32 %v8228_v6, %v8228_v6 }
 0xb9e   :  { %v8232_v11 = vsub.f32 %v1963_v59, %v1976_v8  ;;  %v1984_v14 = vsel %vm1041_vm7, %v1981_v10, 0.0  ;;  %v7355_v10 = vld [vmem:[#allocation7 + $0xf8] ss:$40 sps:$4 sm:$0xff]  }
 0xb9f   :  { %1985 = vadd.xlane.f32.xlu0 %v1984_v14  ;;  %v1974_v17 = vpop.xlane.xlu0 %1973  ;;  %v7356_v14 = vld [vmem:[#allocation7 + $0x14] ss:$40 sps:$4 sm:$0xff]  }
 0xba0   :  { %v1977_v12 = vmul.f32 0.015625, %v1974_v17  ;;  %v1982_v13 = vmul.f32 %v8232_v11, %v8232_v11 }
 0xba2   :  { %v8237_v9 = vsub.f32 %v1964_v47, %v1977_v12  ;;  %v1987_v16 = vsel %vm1041_vm7, %v1982_v13, 0.0  ;;  %v7349_v47 = vld [vmem:[#allocation7 + $0x58] ss:$40 sps:$4 sm:$0xff]  }
 0xba3   :  { %1988 = vadd.xlane.f32.xlu1 %v1987_v16  ;;  %v7358_v13 = vld [vmem:[#allocation7 + $0x10] ss:$40 sps:$4 sm:$0xff]   ;;  %v7359_v16 = vld [vmem:[#allocation7 + $0x64] ss:$40 sps:$4 sm:$0xff]  }
 0xba4   :  { %v1983_v18 = vmul.f32 %v8237_v9, %v8237_v9 }
 0xba6   :  { %v1990_v15 = vsel %vm1971_vm12, %v1983_v18, 0.0  ;;  %v7361_v18 = vld [vmem:[#allocation7 + $0x60] ss:$40 sps:$4 sm:$0xff]  }
 0xba7   :  { %1991 = vadd.xlane.f32.xlu0 %v1990_v15  ;;  %v7364_v15 = vld [vmem:[#allocation7 + $0xb0] ss:$40 sps:$4 sm:$0xff]  }
 0xbbd   :  { %2024 = vperm.xlu0 %7076, %v8247_v20  }
 0xc2c   :  { %v1986_v23 = vpop.xlane.xlu0 %1985 }
 0xc2d   :  { %v1993_v34 = vmul.f32 0.015625, %v1986_v23 }
 0xc2f   :  { %v1996_v35 = vadd.f32 1e-05, %v1993_v34 }
 0xc30   :  { %v1989_v36 = vpop.xlane.xlu1 %1988 }
 0xc31   :  { %7422 = vrsqrt.f32 %v1996_v35  ;;  %v1994_v37 = vmul.f32 0.015625, %v1989_v36 }
 0xc33   :  { %v1997_v40 = vadd.f32 1e-05, %v1994_v37 }
 0xc34   :  { %v1992_v39 = vpop.xlane.xlu0 %1991 }
 0xc35   :  { %v1995_v42 = vmul.f32 0.015625, %v1992_v39  ;;  %7424 = vrsqrt.f32 %v1997_v40 }
 0xc37   :  { %v1998_v44 = vadd.f32 1e-05, %v1995_v42 }
 0xc39   :  { %7426 = vrsqrt.f32 %v1998_v44 }
 0xc3b   :  { %v7423_v45 = vpop.eup %7422 }
 0xc3c   :  { %v2002_v41 = vmul.f32 %v8247_v20, %v7423_v45  ;;  %v2025_v58 = vpop.permute.xlu0 %2024 }
 0xc3e   :  { %2007 = vperm.xlu1 %7077, %v2002_v41  }
 0xc3f   :  { %v7425_v52 = vpop.eup %7424 }
 0xc40   :  { %v2003_v54 = vmul.f32 %v8256_v53, %v7425_v52 }
 0xc42   :  { %7078 = vset.pattern.permute.xlu1 %v7783_v3 }
 0xc43   :  { %2028 = vperm.xlu1 %7078, %v8256_v53   ;;  %v7427_v55 = vpop.eup %7426 }
 0xc44   :  { %v2004_v56 = vmul.f32 %v7427_v55, %v8044_v61 }
 0xc47   :  { %7079 = vset.pattern.permute.xlu1 %v7782_v19  ;;  %v7365_v19 = vld [vmem:[#allocation7 + $0x104] ss:$40 sps:$4 sm:$0xff]  }
 0xc48   :  { %2012 = vperm.xlu1 %7079, %v2003_v54  }
 0xc4c   :  { %2017 = vperm.xlu1 %7079, %v2004_v56  }
 0xc50   :  { %7080 = vset.pattern.permute.xlu1 %v7783_v3  ;;  %v7367_v3 = vld [vmem:[#allocation7 + $0x100] ss:$40 sps:$4 sm:$0xff]  }
 0xc51   :  { %2032 = vperm.xlu1 %7080, %v8044_v61   ;;  %v7350_v61 = vld [vmem:[#allocation7 + $0xac] ss:$40 sps:$4 sm:$0xff]  }
 0xc55   :  { %7081 = vset.pattern.permute.xlu1 %v7784_v25 }
 0xc56   :  { %2523 = vperm.xlu1 %7081, %v8247_v20  }
 0xc5a   :  { %2527 = vperm.xlu1 %7081, %v8256_v53  }
 0xc5e   :  { %2531 = vperm.xlu1 %7081, %v8308_v28  }
 0xcbd   :  { %v2008_v57 = vpop.permute.xlu1 %2007 }
 0xcbe   :  { %v2020_v59 = vmul.f32 %v2008_v57, %v8228_v6  ;;  %v7353_v6 = vld [vmem:[#allocation7 + $0xfc] ss:$40 sps:$4 sm:$0xff]  }
 0xcc0   :  { %v8264_v62 = vadd.f32 %v2025_v58, %v2020_v59 }
 0xcc2   :  { %v2029_v1 = vpop.permute.xlu1 %2028  ;;  %5313 = vmatmul.mubr.msk.f32.vlgmr.msra.gmra.mrb[14].mxu1 %vm1041_vm7, %v8264_v62  ;;  %5322 = vmatmul.mubr.msk.f32.vlgmr.msra.gmra.mrb[34].mxu0 %vm1041_vm7, %v8264_v62 }
 0xcc3   :  { %6018 = vmatpush1.bf16.msra.mxu1 %v7346_v60  ;;  %2117 = vmatprep.mubr.f32.mxu1 %v7768_v0 }
 0xcc4   :  { %6020 = vmatprep.subr.bf16.mxu1 %v7347_v63  ;;  %2366 = vmatprep.mubr.f32.mxu0 %v7768_v0 }
 0xcc7   :  { %v2013_v2 = vpop.permute.xlu1 %2012  ;;  %6022 = vmatpush1.bf16.msra.mxu1 %v7349_v47 }
 0xcc8   :  { %v2021_v5 = vmul.f32 %v2013_v2, %v8232_v11  ;;  %6024 = vmatprep.subr.bf16.mxu1 %v7350_v61 }
 0xcca   :  { %v2036_v7 = vadd.f32 %v2029_v1, %v2021_v5 }
 0xccb   :  { %v2018_v8 = vpop.permute.xlu1 %2017  ;;  %6026 = vmatpush1.bf16.msra.mxu1 %v7352_v4 }
 0xccc   :  { %5314 = vmatmul.mubr.msk.f32.gmra.mrb[16].mxu1 %vm1041_vm7, %v2036_v7  ;;  %5323 = vmatmul.mubr.msk.f32.gmra.mrb[36].mxu0 %vm1041_vm7, %v2036_v7  ;;  %v2022_v17 = vmul.f32 %v2018_v8, %v8237_v9  ;;  %v7362_v9 = vld [vmem:[#allocation7 + $0xb4] ss:$40 sps:$4 sm:$0xff]  }
 0xccd   :  { %2123 = vmatprep.mubr.f32.mxu1 %v7768_v0  ;;  %6028 = vmatprep.subr.bf16.mxu1 %v7353_v6 }
 0xcce   :  { %2372 = vmatprep.mubr.f32.mxu0 %v7768_v0 }
 0xccf   :  { %6030 = vmatpush1.bf16.msra.mxu1 %v7355_v10 }
 0xcd0   :  { %v2033_v11 = vpop.permute.xlu1 %2032  ;;  %6032 = vmatprep.subr.bf16.mxu1 %v7356_v14 }
 0xcd1   :  { %v2037_v12 = vadd.f32 %v2033_v11, %v2022_v17 }
 0xcd3   :  { %5315 = vmatmul.mubr.msk.f32.gmra.mrb[18].mxu1 %vm1041_vm7, %v2037_v12  ;;  %5324 = vmatmul.mubr.msk.f32.gmra.mrb[38].mxu0 %vm1041_vm7, %v2037_v12 }
 0xcd4   :  { %2194 = vmatprep.mubr.f32.mxu1 %v7768_v0  ;;  %5328 = vmatprep.mubr.msk.f32.mxu0 %vm1875_vm11, %v580_v21 }
 0xcd7   :  { %5316 = vmatmul.mubr.msk.f32.vlgmr.msra.gmra.mrb[20].mxu1 %vm1041_vm7, %v8264_v62 }
 0xcd8   :  { %6034 = vmatpush1.bf16.msra.mxu1 %v7358_v13  ;;  %2200 = vmatprep.mubr.f32.mxu1 %v7768_v0 }
 0xcd9   :  { %6036 = vmatprep.subr.bf16.mxu1 %v7359_v16 }
 0xcdb   :  { %5317 = vmatmul.mubr.msk.f32.gmra.mrb[22].mxu1 %vm1041_vm7, %v2036_v7 }
 0xcdc   :  { %6038 = vmatpush1.bf16.msra.mxu1 %v7361_v18  ;;  %2206 = vmatprep.mubr.f32.mxu1 %v7768_v0 }
 0xcdd   :  { %6040 = vmatprep.subr.bf16.mxu1 %v7362_v9 }
 0xcdf   :  { %5318 = vmatmul.mubr.msk.f32.gmra.mrb[24].mxu1 %vm1041_vm7, %v2037_v12 }
 0xce0   :  { %6042 = vmatpush1.bf16.msra.mxu1 %v7364_v15  ;;  %2277 = vmatprep.mubr.f32.mxu1 %v7768_v0 }
 0xce1   :  { %6044 = vmatprep.subr.bf16.mxu1 %v7365_v19 }
 0xce4   :  { %6046 = vmatpush1.bf16.msra.mxu1 %v7367_v3 }
 0xce5   :  { %6064 = vmatprep.subr.bf16.mxu1 %v7368_v22 }
 0xce7   :  { %5319 = vmatmul.mubr.msk.f32.vlgmr.msra.gmra.mrb[26].mxu1 %vm1041_vm7, %v8264_v62 }
 0xce8   :  { %6066 = vmatpush1.bf16.msra.mxu1 %v7370_v24  ;;  %2283 = vmatprep.mubr.f32.mxu1 %v7768_v0 }
 0xce9   :  { %6068 = vmatprep.subr.bf16.mxu1 %v7371_v26 }
 0xceb   :  { %5320 = vmatmul.mubr.msk.f32.gmra.mrb[28].mxu1 %vm1041_vm7, %v2036_v7 }
 0xcec   :  { %6070 = vmatpush1.bf16.msra.mxu1 %v7373_v27  ;;  %2289 = vmatprep.mubr.f32.mxu1 %v7768_v0 }
 0xced   :  { %6072 = vmatprep.subr.bf16.mxu1 %v7374_v30 }
 0xcef   :  { %5321 = vmatmul.mubr.msk.f32.gmra.mrb[30].mxu1 %vm1041_vm7, %v2037_v12 }
 0xcf0   :  { %6074 = vmatpush1.bf16.msra.mxu1 %v7376_v31  ;;  %2443 = vmatprep.mubr.f32.mxu1 %v7768_v0 }
 0xcf1   :  { %6076 = vmatprep.subr.bf16.mxu1 %v7377_v32 }
 0xcf4   :  { %6078 = vmatpush1.bf16.msra.mxu1 %v7379_v29 }
 0xcf7   :  { %5325 = vmatmul.mubr.msk.f32.vlgmr.msra.gmra.mrb[32].mxu1 %vm1041_vm7, %v8264_v62 }
 0xcf8   :  { %2449 = vmatprep.mubr.f32.mxu1 %v7768_v0 }
 0xcfb   :  { %5326 = vmatmul.mubr.msk.f32.gmra.mrb[34].mxu1 %vm1041_vm7, %v2036_v7 }
 0xcfc   :  { %2455 = vmatprep.mubr.f32.mxu1 %v7768_v0 }
 0xcff   :  { %5327 = vmatmul.mubr.msk.f32.gmra.mrb[36].mxu1 %vm1041_vm7, %v2037_v12 }
 0xd00   :  { %2759 = vmatprep.mubr.f32.mxu1 %v7768_v0 }
 0xd95   :  { %v2113_v33 = vpop.f32.mrb[14].mxu1  ;;  %v8311_v23 = vpop.f32.mrb[34].mxu0 }
 0xd96   :  { %v2115_v34 = vpop.f32.mrb[15].mxu1  ;;  %v2364_v35 = vpop.f32.mrb[35].mxu0 }
 0xd97   :  { %v2465_v44 = vrot.slane %v2115_v34, 4  ;;  %v2498_v45 = vrot.slane %v2364_v35, 4 }
 0xd9f   :  { %v2119_v36 = vpop.f32.mrb[16].mxu1  ;;  %v8313_v37 = vpop.f32.mrb[36].mxu0 }
 0xda0   :  { %v6080_v39 = vpack.c.bf16 %v2119_v36, %v2113_v33  ;;  %v2121_v40 = vpop.f32.mrb[17].mxu1  ;;  %v2370_v42 = vpop.f32.mrb[37].mxu0 }
 0xda1   :  { %v2466_v41 = vrot.slane %v2121_v40, 4  ;;  %v2499_v48 = vrot.slane %v2370_v42, 4 }
 0xda2   :  { %6081 = vmatpush1.bf16.msra.mxu0 %v6080_v39 }
 0xda3   :  { %v8316_v46 = vsel %vm933_vm3, %v2498_v45, %v2499_v48  ;;  %v2467_v49 = vsel %vm933_vm3, %v2465_v44, %v2466_v41  ;;  %6082 = vmatprep.subr.bf16.mxu0 %v7769_v38 }
 0xda6   :  { %v2125_v50 = vpop.f32.mrb[18].mxu1  ;;  %v2374_v51 = vpop.f32.mrb[38].mxu0 }
 0xda7   :  { %v2517_v52 = vsel %vm933_vm3, %v2125_v50, %v2465_v44  ;;  %v2520_v54 = vsel %vm933_vm3, %v2374_v51, %v2498_v45  ;;  %v2127_v55 = vpop.f32.mrb[19].mxu1  ;;  %v2376_v56 = vpop.f32.mrb[39].mxu0  ;;  %v582_v50 = vld [vmem:[#allocation10 + $0x88] sm:$0xff]  ;;  %v581_v51 = vld [vmem:[#allocation10 + $0x80] sm:$0xff] }
 0xda8   :  { %v6083_v57 = vpack.c.bf16 %v2467_v49, %v2517_v52  ;;  %v6104_v58 = vpack.c.bf16 %v2520_v54, %v8313_v37  ;;  %v2468_v59 = vrot.slane %v2127_v55, 4  ;;  %v2501_v60 = vrot.slane %v2376_v56, 4  ;;  %v579_v49 = vld [vmem:[#allocation10 + $0x70] sm:$0xff]  ;;  %v584_v52 = vld [vmem:[#allocation10 + $0x98] sm:$0xff]  ;;  %v2524_v55 = vpop.permute.xlu1 %2523 }
 0xda9   :  { %v8350_v54 = vld [vmem:[#allocation10 + $0x90] sm:$0xff] }
 0xdaa   :  { %v2502_v62 = vsel %vm933_vm3, %v2499_v48, %v2501_v60  ;;  %v2196_v63 = vpop.f32.mrb[20].mxu1  ;;  %v2469_v1 = vsel %vm933_vm3, %v2466_v41, %v2468_v59  ;;  %6084 = vmatpush1.bf16.msra.mxu0 %v6083_v57 }
 0xdab   :  { %v6107_v47 = vpack.c.bf16 %v2502_v62, %v8316_v46  ;;  %v6086_v61 = vpack.c.bf16 %v2196_v63, %v2469_v1  ;;  %v2198_v2 = vpop.f32.mrb[21].mxu1  ;;  %6085 = vmatprep.subr.bf16.mxu0 %v7769_v38 }
 0xdac   :  { %v2476_v6 = vrot.slane %v2198_v2, 4  ;;  %v2528_v59 = vpop.permute.xlu1 %2527 }
 0xdae   :  { %v2202_v4 = vpop.f32.mrb[22].mxu1  ;;  %6087 = vmatpush1.bf16.msra.mxu0 %v6086_v61 }
 0xdaf   :  { %v2204_v5 = vpop.f32.mrb[23].mxu1  ;;  %6088 = vmatprep.subr.bf16.mxu0 %v7769_v38 }
 0xdb0   :  { %v2477_v7 = vrot.slane %v2204_v5, 4  ;;  %v2532_v61 = vpop.permute.xlu1 %2531 }
 0xdb2   :  { %v2478_v8 = vsel %vm933_vm3, %v2476_v6, %v2477_v7  ;;  %v2208_v10 = vpop.f32.mrb[24].mxu1 }
 0xdb3   :  { %v2518_v14 = vsel %vm933_vm3, %v2208_v10, %v2476_v6  ;;  %v2210_v17 = vpop.f32.mrb[25].mxu1 }
 0xdb4   :  { %v6089_v11 = vpack.c.bf16 %v2518_v14, %v2202_v4  ;;  %v2479_v12 = vrot.slane %v2210_v17, 4 }
 0xdb6   :  { %v2480_v13 = vsel %vm933_vm3, %v2477_v7, %v2479_v12  ;;  %6090 = vmatpush1.bf16.msra.mxu0 %v6089_v11 }
 0xdb7   :  { %v6092_v16 = vpack.c.bf16 %v2480_v13, %v2478_v8  ;;  %6091 = vmatprep.subr.bf16.mxu0 %v7769_v38 }
 0xdba   :  { %v2279_v18 = vpop.f32.mrb[26].mxu1  ;;  %6093 = vmatpush1.bf16.msra.mxu0 %v6092_v16 }
 0xdbb   :  { %v2281_v9 = vpop.f32.mrb[27].mxu1  ;;  %6094 = vmatprep.subr.bf16.mxu0 %v7769_v38 }
 0xdbc   :  { %v2487_v22 = vrot.slane %v2281_v9, 4 }
 0xdbe   :  { %v2285_v15 = vpop.f32.mrb[28].mxu1 }
 0xdbf   :  { %v6095_v19 = vpack.c.bf16 %v2285_v15, %v2279_v18  ;;  %v2287_v3 = vpop.f32.mrb[29].mxu1 }
 0xdc0   :  { %v2488_v24 = vrot.slane %v2287_v3, 4 }
 0xdc1   :  { %6096 = vmatpush1.bf16.msra.mxu0 %v6095_v19 }
 0xdc2   :  { %v2291_v26 = vpop.f32.mrb[30].mxu1  ;;  %v2489_v27 = vsel %vm933_vm3, %v2487_v22, %v2488_v24  ;;  %6097 = vmatprep.subr.bf16.mxu0 %v7769_v38 }
 0xdc3   :  { %v2519_v30 = vsel %vm933_vm3, %v2291_v26, %v2487_v22  ;;  %v2293_v31 = vpop.f32.mrb[31].mxu1  ;;  %v7785_v22 = vmov 11   ;;  %v7380_v26 = vld [vmem:[#allocation9 + $0x4] ss:$12 sps:$4 sm:$0xff]  }
 0xdc4   :  { %v6098_v32 = vpack.c.bf16 %v2489_v27, %v2519_v30  ;;  %v2490_v29 = vrot.slane %v2293_v31, 4  ;;  %7083 = vset.pattern.permute.xlu1 %v7785_v22  ;;  %v7382_v27 = vld [vmem:[#allocation9] ss:$12 sps:$4 sm:$0xff]   ;;  %v7383_v30 = vld [vmem:[#allocation9 + $0x1c] ss:$12 sps:$4 sm:$0xff]   ;;  %6116 = vmatprep.subr.bf16.mxu1 %v7380_v26 }
 0xdc5   :  { %6118 = vmatpush1.bf16.msra.mxu1 %v7382_v27  ;;  %v7385_v31 = vld [vmem:[#allocation9 + $0x18] ss:$12 sps:$4 sm:$0xff]   ;;  %v7466_v26 = vld [vmem:[#allocation2 + $0xb0] ss:$28 sps:$4 sm:$0xff]  }
 0xdc6   :  { %v2491_v21 = vsel %vm933_vm3, %v2488_v24, %v2490_v29  ;;  %6099 = vmatpush1.bf16.msra.mxu0 %v6098_v32  ;;  %v7786_v24 = vmov 10   ;;  %6120 = vmatprep.subr.bf16.mxu1 %v7383_v30  ;;  %v7386_v32 = vld [vmem:[#allocation9 + $0x34] ss:$12 sps:$4 sm:$0xff]   ;;  %v7388_v29 = vld [vmem:[#allocation9 + $0x30] ss:$12 sps:$4 sm:$0xff]  }
 0xdc7   :  { %v6101_v25 = vpack.c.bf16 %v8311_v23, %v2491_v21  ;;  %6100 = vmatprep.subr.bf16.mxu0 %v7769_v38  ;;  %7082 = vset.pattern.permute.xlu0 %v7786_v24  ;;  %v7389_v21 = vld [vmem:[#allocation9 + $0x4c] ss:$12 sps:$4 sm:$0xff]  }
 0xdc8   :  { %v7467_v27 = vld [vmem:[#allocation2 + $0xec] ss:$28 sps:$4 sm:$0xff]  }
 0xdc9   :  { %6122 = vmatpush1.bf16.msra.mxu1 %v7385_v31  ;;  %v7468_v30 = vld [vmem:[#allocation2 + $0xe8] ss:$28 sps:$4 sm:$0xff]  }
 0xdca   :  { %v2445_v33 = vpop.f32.mrb[32].mxu1  ;;  %6102 = vmatpush1.bf16.msra.mxu0 %v6101_v25  ;;  %6124 = vmatprep.subr.bf16.mxu1 %v7386_v32  ;;  %v7391_v25 = vld [vmem:[#allocation9 + $0x48] ss:$12 sps:$4 sm:$0xff]   ;;  %v7470_v32 = vld [vmem:[#allocation2 + $0x120] ss:$28 sps:$4 sm:$0xff]  }
 0xdcb   :  { %v2447_v34 = vpop.f32.mrb[33].mxu1  ;;  %6103 = vmatprep.subr.bf16.mxu0 %v7769_v38  ;;  %v7469_v31 = vld [vmem:[#allocation2 + $0x124] ss:$28 sps:$4 sm:$0xff]  }
 0xdcc   :  { %v2509_v39 = vrot.slane %v2447_v34, 4  ;;  %v7394_v34 = vld [vmem:[#allocation9 + $0x60] ss:$12 sps:$4 sm:$0xff]  }
 0xdcd   :  { %6126 = vmatpush1.bf16.msra.mxu1 %v7388_v29  ;;  %v7471_v29 = vld [vmem:[#allocation2 + $0x15c] ss:$28 sps:$4 sm:$0xff]  }
 0xdce   :  { %v2451_v35 = vpop.f32.mrb[34].mxu1  ;;  %6105 = vmatpush1.bf16.msra.mxu0 %v6104_v58  ;;  %6128 = vmatprep.subr.bf16.mxu1 %v7389_v21  ;;  %v7472_v21 = vld [vmem:[#allocation2 + $0x158] ss:$28 sps:$4 sm:$0xff]  }
 0xdcf   :  { %v6110_v36 = vpack.c.bf16 %v2451_v35, %v2445_v33  ;;  %v2453_v37 = vpop.f32.mrb[35].mxu1  ;;  %6106 = vmatprep.subr.bf16.mxu0 %v7769_v38  ;;  %v7392_v33 = vld [vmem:[#allocation9 + $0x64] ss:$12 sps:$4 sm:$0xff]   ;;  %v7395_v35 = vld [vmem:[#allocation9 + $0x7c] ss:$12 sps:$4 sm:$0xff]  }
 0xdd0   :  { %v2510_v40 = vrot.slane %v2453_v37, 4  ;;  %v7398_v37 = vld [vmem:[#allocation9 + $0x94] ss:$12 sps:$4 sm:$0xff]  }
 0xdd1   :  { %6130 = vmatpush1.bf16.msra.mxu1 %v7391_v25  ;;  %v7473_v25 = vld [vmem:[#allocation2 + $0x194] ss:$28 sps:$4 sm:$0xff]  }
 0xdd2   :  { %v2457_v42 = vpop.f32.mrb[36].mxu1  ;;  %v2511_v44 = vsel %vm933_vm3, %v2509_v39, %v2510_v40  ;;  %6108 = vmatpush1.bf16.msra.mxu0 %v6107_v47  ;;  %6132 = vmatprep.subr.bf16.mxu1 %v7392_v33  ;;  %v7474_v33 = vld [vmem:[#allocation2 + $0x190] ss:$28 sps:$4 sm:$0xff]  }
 0xdd3   :  { %v2521_v23 = vsel %vm933_vm3, %v2457_v42, %v2509_v39  ;;  %v2459_v45 = vpop.f32.mrb[37].mxu1  ;;  %6109 = vmatprep.subr.bf16.mxu0 %v7769_v38  ;;  %v7400_v39 = vld [vmem:[#allocation9 + $0x90] ss:$12 sps:$4 sm:$0xff]   ;;  %v7403_v42 = vld [vmem:[#allocation9 + $0xa8] ss:$12 sps:$4 sm:$0xff]  }
 0xdd4   :  { %v6113_v41 = vpack.c.bf16 %v2511_v44, %v2521_v23  ;;  %v2512_v48 = vrot.slane %v2459_v45, 4 }
 0xdd5   :  { %6134 = vmatpush1.bf16.msra.mxu1 %v7394_v34  ;;  %v7787_v34 = vmov 12  }
 0xdd6   :  { %6111 = vmatpush1.bf16.msra.mxu0 %v6110_v36  ;;  %v2513_v46 = vsel %vm933_vm3, %v2510_v40, %v2512_v48  ;;  %v7397_v36 = vld [vmem:[#allocation9 + $0x78] ss:$12 sps:$4 sm:$0xff]   ;;  %6136 = vmatprep.subr.bf16.mxu1 %v7395_v35 }
 0xdd7   :  { %6112 = vmatprep.subr.bf16.mxu0 %v7769_v38  ;;  %v7401_v40 = vld [vmem:[#allocation9 + $0xac] ss:$12 sps:$4 sm:$0xff]  }
 0xdd9   :  { %6138 = vmatpush1.bf16.msra.mxu1 %v7397_v36 }
 0xdda   :  { %6114 = vmatpush1.bf16.msra.mxu0 %v6113_v41  ;;  %6140 = vmatprep.subr.bf16.mxu1 %v7398_v37 }
 0xddb   :  { %2591 = vmatprep.subr.mxu0 %v7768_v0 }
 0xddd   :  { %6142 = vmatpush1.bf16.msra.mxu1 %v7400_v39 }
 0xdde   :  { %2592 = vmatpush1.msra.mxu0 %v2513_v46  ;;  %6144 = vmatprep.subr.bf16.mxu1 %v7401_v40 }
 0xddf   :  { %2608 = vmatmul.mubr.f32.vlgmr.msra.gmra.mrb[40].mxu0 %v579_v49  ;;  %6171 = vmatprep.subr.bf16.mxu0 %v7769_v38 }
 0xde0   :  { %5329 = vmatprep.mubr.msk.f32.mxu0 %vm1875_vm11, %v582_v50 }
 0xde1   :  { %6146 = vmatpush1.bf16.msra.mxu1 %v7403_v42 }
 0xde2   :  { %6147 = vmatprep.subr.bf16.mxu1 %v7769_v38 }
 0xde3   :  { %2613 = vmatmul.mubr.f32.gmra.mrb[42].mxu0 %v581_v51 }
 0xde4   :  { %5330 = vmatprep.mubr.msk.f32.mxu0 %vm1875_vm11, %v584_v52 }
 0xde7   :  { %2618 = vmatmul.mubr.f32.gmra.mrb[44].mxu0 %v8350_v54 }
 0xde8   :  { %5611 = vmatprep.mubr.msk.f32.mxu0 %vm7770_vm0, %v7768_v0 }
 0xeb2   :  { %v2609_v56 = vpop.f32.mrb[40].mxu0 }
 0xeb3   :  { %v2610_v57 = vadd.f32 %v2609_v56, %v2524_v55  ;;  %v2611_v58 = vpop.f32.mrb[41].mxu0 }
 0xeb5   :  { %v2623_v60 = vmax.f32 %v2610_v57, 0.0 }
 0xeb6   :  { %v2614_v62 = vpop.f32.mrb[42].mxu0 }
 0xeb7   :  { %v2615_v63 = vadd.f32 %v2614_v62, %v2528_v59  ;;  %2626 = vadd.xlane.f32.xlu1 %v2623_v60  ;;  %v2616_v1 = vpop.f32.mrb[43].mxu0 }
 0xeb9   :  { %v2624_v47 = vmax.f32 %v2615_v63, 0.0 }
 0xeba   :  { %v2619_v2 = vpop.f32.mrb[44].mxu0 }
 0xebb   :  { %v2620_v4 = vadd.f32 %v2619_v2, %v2532_v61  ;;  %2628 = vadd.xlane.f32.xlu0 %v2624_v47  ;;  %v2621_v5 = vpop.f32.mrb[45].mxu0 }
 0xebc   :  { %v7405_v5 = vld [vmem:[#allocation9 + $0x20] ss:$12 sps:$4 sm:$0xff]  }
 0xebd   :  { %v2625_v6 = vmax.f32 %v2620_v4, 0.0 }
 0xebf   :  { %v2630_v7 = vsel %vm933_vm3, %v2625_v6, 0.0 }
 0xec0   :  { %2631 = vadd.xlane.f32.xlu0 %v2630_v7  ;;  %v7406_v7 = vld [vmem:[#allocation9 + $0x38] ss:$12 sps:$4 sm:$0xff]  }
 0xf44   :  { %v2627_v8 = vpop.xlane.xlu1 %2626 }
 0xf45   :  { %v2634_v10 = vmul.f32 0.0078125, %v2627_v8 }
 0xf47   :  { %v8356_v14 = vsub.f32 %v2623_v60, %v2634_v10  ;;  %v7407_v10 = vld [vmem:[#allocation9 + $0x50] ss:$12 sps:$4 sm:$0xff]  }
 0xf48   :  { %v2629_v17 = vpop.xlane.xlu0 %2628 }
 0xf49   :  { %v2635_v11 = vmul.f32 0.0078125, %v2629_v17  ;;  %v2640_v12 = vmul.f32 %v8356_v14, %v8356_v14 }
 0xf4b   :  { %v8360_v13 = vsub.f32 %v2624_v47, %v2635_v11  ;;  %2643 = vadd.xlane.f32.xlu1 %v2640_v12  ;;  %v7404_v47 = vld [vmem:[#allocation9 + $0x8] ss:$12 sps:$4 sm:$0xff]   ;;  %v7409_v12 = vld [vmem:[#allocation9 + $0x80] ss:$12 sps:$4 sm:$0xff]  }
 0xf4c   :  { %v7408_v11 = vld [vmem:[#allocation9 + $0x68] ss:$12 sps:$4 sm:$0xff]  }
 0xf4d   :  { %v2632_v16 = vpop.xlane.xlu0 %2631  ;;  %v2641_v18 = vmul.f32 %v8360_v13, %v8360_v13 }
 0xf4e   :  { %v2636_v9 = vmul.f32 0.0078125, %v2632_v16  ;;  %v7411_v16 = vld [vmem:[#allocation9 + $0xb0] ss:$12 sps:$4 sm:$0xff]  }
 0xf4f   :  { %2645 = vadd.xlane.f32.xlu0 %v2641_v18  ;;  %v7459_v18 = vld [vmem:[#allocation2 + $0xc] ss:$28 sps:$4 sm:$0xff]  }
 0xf50   :  { %v8364_v15 = vsub.f32 %v2625_v6, %v2636_v9  ;;  %v7460_v9 = vld [vmem:[#allocation2 + $0x8] ss:$28 sps:$4 sm:$0xff]  }
 0xf52   :  { %v2642_v19 = vmul.f32 %v8364_v15, %v8364_v15 }
 0xf54   :  { %v2647_v3 = vsel %vm933_vm3, %v2642_v19, 0.0  ;;  %v7462_v19 = vld [vmem:[#allocation2 + $0x40] ss:$28 sps:$4 sm:$0xff]  }
 0xf55   :  { %2648 = vadd.xlane.f32.xlu1 %v2647_v3  ;;  %v7463_v3 = vld [vmem:[#allocation2 + $0x7c] ss:$28 sps:$4 sm:$0xff]  }
 0xf66   :  { %2681 = vperm.xlu1 %7083, %v8247_v20  }
 0xf6a   :  { %2685 = vperm.xlu1 %7083, %v8256_v53  }
 0xf6e   :  { %7084 = vset.pattern.permute.xlu1 %v7786_v24  ;;  %v7465_v24 = vld [vmem:[#allocation2 + $0xb4] ss:$28 sps:$4 sm:$0xff]  }
 0xfd8   :  { %v2644_v44 = vpop.xlane.xlu1 %2643 }
 0xfd9   :  { %v2650_v23 = vmul.f32 0.0078125, %v2644_v44 }
 0xfdb   :  { %v2653_v45 = vadd.f32 1e-05, %v2650_v23 }
 0xfdc   :  { %v2646_v41 = vpop.xlane.xlu0 %2645 }
 0xfdd   :  { %7428 = vrsqrt.f32 %v2653_v45  ;;  %v2651_v48 = vmul.f32 0.0078125, %v2646_v41 }
 0xfdf   :  { %v2654_v46 = vadd.f32 1e-05, %v2651_v48 }
 0xfe1   :  { %7430 = vrsqrt.f32 %v2654_v46 }
 0xfe2   :  { %v2649_v49 = vpop.xlane.xlu1 %2648 }
 0xfe3   :  { %v2652_v50 = vmul.f32 0.0078125, %v2649_v49 }
 0xfe5   :  { %v2655_v51 = vadd.f32 1e-05, %v2652_v50 }
 0xfe6   :  { %v2682_v60 = vpop.permute.xlu1 %2681 }
 0xfe7   :  { %v7429_v52 = vpop.eup %7428  ;;  %7432 = vrsqrt.f32 %v2655_v51 }
 0xfe8   :  { %v2659_v55 = vmul.f32 %v8247_v20, %v7429_v52 }
 0xfea   :  { %2664 = vperm.xlu0 %7082, %v2659_v55   ;;  %v2686_v62 = vpop.permute.xlu1 %2685 }
 0xfeb   :  { %v7431_v56 = vpop.eup %7430 }
 0xfec   :  { %v2660_v57 = vmul.f32 %v8256_v53, %v7431_v56 }
 0xfee   :  { %2669 = vperm.xlu1 %7084, %v2660_v57  }
 0xff1   :  { %v7433_v58 = vpop.eup %7432 }
 0xff2   :  { %v2661_v59 = vmul.f32 %v8308_v28, %v7433_v58 }
 0xff4   :  { %2674 = vperm.xlu1 %7084, %v2661_v59  }
 0xff8   :  { %7085 = vset.pattern.permute.xlu1 %v7785_v22  ;;  %v7464_v22 = vld [vmem:[#allocation2 + $0x78] ss:$28 sps:$4 sm:$0xff]  }
 0xff9   :  { %2689 = vperm.xlu1 %7085, %v8308_v28  }
 0xffd   :  { %7086 = vset.pattern.permute.xlu1 %v7787_v34  ;;  %v7506_v34 = vld [vmem:[#allocation2 + $0xf8] ss:$28 sps:$4 sm:$0xff]  }
 0xffe   :  { %2871 = vperm.xlu1 %7086, %v8247_v20  }
0x1069   :  { %v2665_v63 = vpop.permute.xlu0 %2664 }
0x106a   :  { %v2677_v1 = vmul.f32 %v2665_v63, %v8356_v14  ;;  %v7476_v63 = vld [vmem:[#allocation2] ss:$28 sps:$4 sm:$0xff]  }
0x106c   :  { %v2692_v61 = vadd.f32 %v2682_v60, %v2677_v1  ;;  %v2875_v60 = vrot.slane %v8350_v54, 4  ;;  %v7477_v1 = vld [vmem:[#allocation2 + $0x3c] ss:$28 sps:$4 sm:$0xff]   ;;  %v7481_v54 = vld [vmem:[#allocation2 + $0xac] ss:$28 sps:$4 sm:$0xff]  }
0x106d   :  { %v2670_v2 = vpop.permute.xlu1 %2669 }
0x106e   :  { %v2678_v4 = vmul.f32 %v2670_v2, %v8360_v13  ;;  %2760 = vmatmul.mubr.f32.vlgmr.msra.gmra.mrb[38].mxu1 %v2692_v61  ;;  %v7410_v13 = vld [vmem:[#allocation9 + $0x98] ss:$12 sps:$4 sm:$0xff]   ;;  %v7480_v2 = vld [vmem:[#allocation2 + $0x70] ss:$28 sps:$4 sm:$0xff]  }
0x106f   :  { %6149 = vmatpush3.bf16.msra.mxu1 %v7404_v47  ;;  %2765 = vmatprep.mubr.f32.mxu1 %v7768_v0  ;;  %v7478_v47 = vld [vmem:[#allocation2 + $0x38] ss:$28 sps:$4 sm:$0xff]  }
0x1070   :  { %v2693_v6 = vadd.f32 %v2686_v62, %v2678_v4  ;;  %6150 = vmatprep.subr.bf16.mxu1 %v7769_v38  ;;  %v7475_v62 = vld [vmem:[#allocation2 + $0x4] ss:$28 sps:$4 sm:$0xff]  }
0x1071   :  { %v7482_v4 = vld [vmem:[#allocation2 + $0xa8] ss:$28 sps:$4 sm:$0xff]  }
0x1072   :  { %2766 = vmatmul.mubr.f32.gmra.mrb[40].mxu1 %v2693_v6 }
0x1073   :  { %6152 = vmatpush3.bf16.msra.mxu1 %v7405_v5  ;;  %v2675_v28 = vpop.permute.xlu1 %2674  ;;  %2771 = vmatprep.mubr.f32.mxu1 %v7768_v0  ;;  %v7483_v5 = vld [vmem:[#allocation2 + $0xe4] ss:$28 sps:$4 sm:$0xff]  }
0x1074   :  { %6153 = vmatprep.subr.bf16.mxu1 %v7769_v38  ;;  %v2679_v8 = vmul.f32 %v2675_v28, %v8364_v15  ;;  %v7461_v15 = vld [vmem:[#allocation2 + $0x44] ss:$28 sps:$4 sm:$0xff]   ;;  %v7485_v28 = vld [vmem:[#allocation2 + $0x11c] ss:$28 sps:$4 sm:$0xff]  }
0x1077   :  { %6155 = vmatpush3.bf16.msra.mxu1 %v7406_v7  ;;  %v7486_v7 = vld [vmem:[#allocation2 + $0x118] ss:$28 sps:$4 sm:$0xff]  }
0x1078   :  { %v2690_v14 = vpop.permute.xlu1 %2689  ;;  %6156 = vmatprep.subr.bf16.mxu1 %v7769_v38 }
0x1079   :  { %v2694_v17 = vadd.f32 %v2690_v14, %v2679_v8  ;;  %v7487_v8 = vld [vmem:[#allocation2 + $0x154] ss:$28 sps:$4 sm:$0xff]   ;;  %v7489_v14 = vld [vmem:[#allocation2 + $0x18c] ss:$28 sps:$4 sm:$0xff]  }
0x107b   :  { %6158 = vmatpush3.bf16.msra.mxu1 %v7407_v10  ;;  %v7488_v10 = vld [vmem:[#allocation2 + $0x150] ss:$28 sps:$4 sm:$0xff]  }
0x107c   :  { %2772 = vmatmul.mubr.f32.gmra.mrb[42].mxu1 %v2694_v17  ;;  %6159 = vmatprep.subr.bf16.mxu1 %v7769_v38 }
0x107d   :  { %5586 = vmatprep.mubr.msk.f32.mxu1 %vm7770_vm0, %v7768_v0 }
0x107f   :  { %6161 = vmatpush3.bf16.msra.mxu1 %v7408_v11  ;;  %v7491_v11 = vld [vmem:[#allocation2 + $0x14] ss:$28 sps:$4 sm:$0xff]  }
0x1080   :  { %6162 = vmatprep.subr.bf16.mxu1 %v7769_v38 }
0x1083   :  { %6164 = vmatpush3.bf16.msra.mxu1 %v7409_v12  ;;  %v2872_v12 = vpop.permute.xlu1 %2871 }
0x1084   :  { %6165 = vmatprep.subr.bf16.mxu1 %v7769_v38 }
0x1087   :  { %6167 = vmatpush3.bf16.msra.mxu1 %v7410_v13 }
0x1088   :  { %6168 = vmatprep.subr.bf16.mxu1 %v7769_v38 }
0x108b   :  { %6170 = vmatpush3.bf16.msra.mxu1 %v7411_v16 }
0x108c   :  { %6217 = vmatprep.subr.bf16.mxu1 %v7459_v18 }
0x108e   :  { %5587 = vmatmul.mubr.f32.vlgmr.msra.gmra.mrb[44].mxu1 %v2692_v61  ;;  %v7479_v61 = vld [vmem:[#allocation2 + $0x74] ss:$28 sps:$4 sm:$0xff]  }
0x108f   :  { %5589 = vmatprep.mubr.msk.f32.mxu1 %vm7770_vm0, %v7768_v0  ;;  %6219 = vmatpush1.bf16.msra.mxu1 %v7460_v9  ;;  %v7492_v9 = vld [vmem:[%s8853_s0] sm:$0x3] }
0x1090   :  { %6221 = vmatprep.subr.bf16.mxu1 %v7461_v15 }
0x1092   :  { %5590 = vmatmul.mubr.f32.gmra.mrb[46].mxu1 %v2693_v6  ;;  %v7484_v6 = vld [vmem:[#allocation2 + $0xe0] ss:$28 sps:$4 sm:$0xff]  }
0x1093   :  { %5592 = vmatprep.mubr.msk.f32.mxu1 %vm7770_vm0, %v7768_v0  ;;  %6223 = vmatpush1.bf16.msra.mxu1 %v7462_v19  ;;  %v7493_v19 = vld [vmem:[#allocation2 + $0x10] ss:$28 sps:$4 sm:$0xff]  }
0x1094   :  { %6225 = vmatprep.subr.bf16.mxu1 %v7463_v3  ;;  %v7494_v3 = vld [vmem:[#allocation2 + $0x18] ss:$28 sps:$4 sm:$0xff]  }
0x1096   :  { %5593 = vmatmul.mubr.f32.gmra.mrb[48].mxu1 %v2694_v17  ;;  %v7490_v17 = vld [vmem:[#allocation2 + $0x188] ss:$28 sps:$4 sm:$0xff]  }
0x1097   :  { %6227 = vmatpush1.bf16.msra.mxu1 %v7464_v22  ;;  %3088 = vmatprep.mubr.f32.mxu1 %v7768_v0  ;;  %v7495_v22 = vld [vmem:[#allocation2 + $0x4c] ss:$28 sps:$4 sm:$0xff]  }
0x1098   :  { %6229 = vmatprep.subr.bf16.mxu1 %v7465_v24  ;;  %v7496_v24 = vld [vmem:[#allocation2 + $0x48] ss:$28 sps:$4 sm:$0xff]  }
0x109b   :  { %6231 = vmatpush1.bf16.msra.mxu1 %v7466_v26  ;;  %v7497_v26 = vld [vmem:[#allocation2 + $0x50] ss:$28 sps:$4 sm:$0xff]  }
0x109c   :  { %6233 = vmatprep.subr.bf16.mxu1 %v7467_v27  ;;  %v7498_v27 = vld [vmem:[#allocation2 + $0x84] ss:$28 sps:$4 sm:$0xff]  }
0x109f   :  { %6235 = vmatpush1.bf16.msra.mxu1 %v7468_v30  ;;  %v7499_v30 = vld [vmem:[#allocation2 + $0x80] ss:$28 sps:$4 sm:$0xff]  }
0x10a0   :  { %6237 = vmatprep.subr.bf16.mxu1 %v7469_v31  ;;  %v7500_v31 = vld [vmem:[#allocation2 + $0x88] ss:$28 sps:$4 sm:$0xff]  }
0x10a3   :  { %6239 = vmatpush1.bf16.msra.mxu1 %v7470_v32  ;;  %v7501_v32 = vld [vmem:[#allocation2 + $0xbc] ss:$28 sps:$4 sm:$0xff]  }
0x10a4   :  { %6241 = vmatprep.subr.bf16.mxu1 %v7471_v29  ;;  %v7502_v29 = vld [vmem:[#allocation2 + $0xb8] ss:$28 sps:$4 sm:$0xff]  }
0x10a7   :  { %6243 = vmatpush1.bf16.msra.mxu1 %v7472_v21  ;;  %v7503_v21 = vld [vmem:[#allocation2 + $0xc0] ss:$28 sps:$4 sm:$0xff]  }
0x10a8   :  { %6245 = vmatprep.subr.bf16.mxu1 %v7473_v25  ;;  %v7504_v25 = vld [vmem:[#allocation2 + $0xf4] ss:$28 sps:$4 sm:$0xff]  }
0x10ab   :  { %6247 = vmatpush1.bf16.msra.mxu1 %v7474_v33  ;;  %v7505_v33 = vld [vmem:[#allocation2 + $0xf0] ss:$28 sps:$4 sm:$0xff]  }
0x10ac   :  { %6280 = vmatprep.subr.bf16.mxu1 %v7769_v38 }
0x1141   :  { %v2761_v35 = vpop.f32.mrb[38].mxu1 }
0x1142   :  { %v2763_v36 = vpop.f32.mrb[39].mxu1 }
0x1143   :  { %v2861_v42 = vrot.slane %v2763_v36, 4  ;;  %v7508_v36 = vld [vmem:[#allocation2 + $0x128] ss:$28 sps:$4 sm:$0xff]  }
0x1145   :  { %v2767_v37 = vpop.f32.mrb[40].mxu1 }
0x1146   :  { %v6172_v39 = vpack.c.bf16 %v2767_v37, %v2761_v35  ;;  %v2769_v40 = vpop.f32.mrb[41].mxu1  ;;  %v7507_v35 = vld [vmem:[#allocation2 + $0x12c] ss:$28 sps:$4 sm:$0xff]  }
0x1147   :  { %v2862_v44 = vrot.slane %v2769_v40, 4  ;;  %v7509_v37 = vld [vmem:[#allocation2 + $0x130] ss:$28 sps:$4 sm:$0xff]   ;;  %v7511_v40 = vld [vmem:[#allocation2 + $0x160] ss:$28 sps:$4 sm:$0xff]  }
0x1148   :  { %6173 = vmatpush3.bf16.msra.mxu0 %v6172_v39  ;;  %v7510_v39 = vld [vmem:[#allocation2 + $0x164] ss:$28 sps:$4 sm:$0xff]  }
0x1149   :  { %v2863_v23 = vsel %vm933_vm3, %v2861_v42, %v2862_v44  ;;  %6174 = vmatprep.subr.bf16.mxu0 %v7769_v38 }
0x114f   :  { %v2773_v45 = vpop.f32.mrb[42].mxu1 }
0x1150   :  { %v2869_v41 = vsel %vm933_vm3, %v2773_v45, %v2861_v42  ;;  %v2775_v48 = vpop.f32.mrb[43].mxu1  ;;  %v7512_v42 = vld [vmem:[#allocation2 + $0x168] ss:$28 sps:$4 sm:$0xff]   ;;  %v7515_v45 = vld [vmem:[#allocation2 + $0x1a0] ss:$28 sps:$4 sm:$0xff]  }
0x1151   :  { %v6175_v46 = vpack.c.bf16 %v2863_v23, %v2869_v41  ;;  %v2864_v49 = vrot.slane %v2775_v48, 4  ;;  %v7514_v23 = vld [vmem:[#allocation2 + $0x198] ss:$28 sps:$4 sm:$0xff]   ;;  %v7516_v41 = vld [vmem:[#allocation4 + $0xc] ss:$16 sps:$4 sm:$0xff]  }
0x1152   :  { %v7517_v48 = vld [vmem:[#allocation4 + $0x8] ss:$16 sps:$4 sm:$0xff]  }
0x1153   :  { %6176 = vmatpush3.bf16.msra.mxu0 %v6175_v46  ;;  %v2865_v20 = vsel %vm933_vm3, %v2862_v44, %v2864_v49  ;;  %v7513_v44 = vld [vmem:[#allocation2 + $0x19c] ss:$28 sps:$4 sm:$0xff]  }
0x1154   :  { %6177 = vmatprep.subr.bf16.mxu0 %v7769_v38  ;;  %v7518_v46 = vld [vmem:[#allocation4 + $0x2c] ss:$16 sps:$4 sm:$0xff]   ;;  %v7519_v49 = vld [vmem:[#allocation4 + $0x28] ss:$16 sps:$4 sm:$0xff]  }
0x1161   :  { %v2844_v50 = vpop.f32.mrb[44].mxu1 }
0x1162   :  { %v6178_v51 = vpack.c.bf16 %v2844_v50, %v2865_v20  ;;  %v5588_v52 = vpop.f32.mrb[45].mxu1  ;;  %v7520_v20 = vld [vmem:[#allocation4 + $0x4c] ss:$16 sps:$4 sm:$0xff]   ;;  %v7521_v50 = vld [vmem:[#allocation4 + $0x48] ss:$16 sps:$4 sm:$0xff]  }
0x1163   :  { %v7523_v52 = vld [vmem:[#allocation4 + $0x68] ss:$16 sps:$4 sm:$0xff]  }
0x1164   :  { %6179 = vmatpush3.bf16.msra.mxu0 %v6178_v51  ;;  %v7522_v51 = vld [vmem:[#allocation4 + $0x6c] ss:$16 sps:$4 sm:$0xff]  }
0x1165   :  { %v2849_v55 = vpop.f32.mrb[46].mxu1  ;;  %6180 = vmatprep.subr.bf16.mxu0 %v7769_v38 }
0x1166   :  { %v5591_v56 = vpop.f32.mrb[47].mxu1 }
0x1169   :  { %v2854_v57 = vpop.f32.mrb[48].mxu1 }
0x116a   :  { %v6181_v58 = vpack.c.bf16 %v2854_v57, %v2849_v55  ;;  %v5594_v59 = vpop.f32.mrb[49].mxu1  ;;  %v7524_v55 = vld [vmem:[#allocation6 + $0xc] ss:$20 sps:$4 sm:$0xff]  }
0x116c   :  { %6183 = vmatpush3.bf16.msk.msra.mxu0 %vm7975_vm6, %v6181_v58 }
0x116d   :  { %6185 = vmatprep.subr.bf16.mxu0 %v7475_v62 }
0x116f   :  { %5612 = vmatmul.mubr.msk.f32.vlgmr.msra.gmra.mrb[46].mxu0 %vm2876_vm13, %v2875_v60 }
0x1170   :  { %6187 = vmatpush1.bf16.msra.mxu0 %v7476_v63  ;;  %3017 = vmatprep.mubr.f32.mxu0 %v7768_v0 }
0x1171   :  { %6189 = vmatprep.subr.bf16.mxu0 %v7477_v1 }
0x1174   :  { %6191 = vmatpush1.bf16.msra.mxu0 %v7478_v47 }
0x1175   :  { %6193 = vmatprep.subr.bf16.mxu0 %v7479_v61 }
0x1178   :  { %6195 = vmatpush1.bf16.msra.mxu0 %v7480_v2 }
0x1179   :  { %6197 = vmatprep.subr.bf16.mxu0 %v7481_v54 }
0x117c   :  { %6199 = vmatpush1.bf16.msra.mxu0 %v7482_v4 }
0x117d   :  { %6201 = vmatprep.subr.bf16.mxu0 %v7483_v5 }
0x1180   :  { %6203 = vmatpush1.bf16.msra.mxu0 %v7484_v6 }
0x1181   :  { %6205 = vmatprep.subr.bf16.mxu0 %v7485_v28 }
0x1184   :  { %6207 = vmatpush1.bf16.msra.mxu0 %v7486_v7  ;;  %v585_v7 = vld [vmem:[#allocation10 + $0xa0] sm:$0xff] }
0x1185   :  { %6209 = vmatprep.subr.bf16.mxu0 %v7487_v8 }
0x1188   :  { %6211 = vmatpush1.bf16.msra.mxu0 %v7488_v10 }
0x1189   :  { %6213 = vmatprep.subr.bf16.mxu0 %v7489_v14  ;;  %v7788_v14 = vmov 13  }
0x118a   :  { %7103 = vset.pattern.permute.xlu0 %v7788_v14  ;;  %7102 = vset.pattern.permute.xlu1 %v7788_v14 }
0x118c   :  { %6215 = vmatpush1.bf16.msra.mxu0 %v7490_v17  ;;  %v8437_v17 = vld [vmem:[%s8860_s7] sm:$0xff] }
0x118d   :  { %6249 = vmatprep.subr.bf16.mxu0 %v7491_v11 }
0x1242   :  { %v2948_v13 = vpop.f32.mrb[46].mxu0 }
0x1243   :  { %v2949_v16 = vadd.f32 %v2948_v13, %v2872_v12  ;;  %v5613_v18 = vpop.f32.mrb[47].mxu0 }
0x1245   :  { %v8411_v15 = vadd.f32 %v7492_v9, %v2949_v16 }
0x1247   :  { %3018 = vmatmul.mubr.f32.vlgmr.msra.gmra.mrb[48].mxu0 %v8411_v15  ;;  %3089 = vmatmul.mubr.f32.vlgmr.msra.gmra.mrb[50].mxu1 %v8411_v15 }
0x1248   :  { %6251 = vmatpush1.bf16.msra.mxu0 %v7493_v19  ;;  %6282 = vmatpush3.bf16.msra.mxu1 %v7494_v3 }
0x1249   :  { %6253 = vmatprep.subr.bf16.mxu0 %v7495_v22  ;;  %6283 = vmatprep.subr.bf16.mxu1 %v7769_v38 }
0x124a   :  { %3159 = vmatprep.mubr.f32.mxu0 %v7768_v0  ;;  %5646 = vmatprep.mubr.msk.f32.mxu1 %vm7770_vm0, %v7768_v0 }
0x124c   :  { %6255 = vmatpush1.bf16.msra.mxu0 %v7496_v24  ;;  %6285 = vmatpush3.bf16.msra.mxu1 %v7497_v26 }
0x124d   :  { %6257 = vmatprep.subr.bf16.mxu0 %v7498_v27  ;;  %6286 = vmatprep.subr.bf16.mxu1 %v7769_v38 }
0x1250   :  { %6259 = vmatpush1.bf16.msra.mxu0 %v7499_v30  ;;  %6288 = vmatpush3.bf16.msra.mxu1 %v7500_v31 }
0x1251   :  { %6261 = vmatprep.subr.bf16.mxu0 %v7501_v32  ;;  %6289 = vmatprep.subr.bf16.mxu1 %v7769_v38 }
0x1254   :  { %6263 = vmatpush1.bf16.msra.mxu0 %v7502_v29  ;;  %6291 = vmatpush3.bf16.msra.mxu1 %v7503_v21 }
0x1255   :  { %6265 = vmatprep.subr.bf16.mxu0 %v7504_v25  ;;  %6292 = vmatprep.subr.bf16.mxu1 %v7769_v38 }
0x1258   :  { %6267 = vmatpush1.bf16.msra.mxu0 %v7505_v33  ;;  %6294 = vmatpush3.bf16.msra.mxu1 %v7506_v34 }
0x1259   :  { %6269 = vmatprep.subr.bf16.mxu0 %v7507_v35  ;;  %6295 = vmatprep.subr.bf16.mxu1 %v7769_v38 }
0x125c   :  { %6271 = vmatpush1.bf16.msra.mxu0 %v7508_v36  ;;  %6297 = vmatpush3.bf16.msra.mxu1 %v7509_v37 }
0x125d   :  { %6273 = vmatprep.subr.bf16.mxu0 %v7510_v39  ;;  %6298 = vmatprep.subr.bf16.mxu1 %v7769_v38 }
0x1260   :  { %6275 = vmatpush1.bf16.msra.mxu0 %v7511_v40  ;;  %6300 = vmatpush3.bf16.msra.mxu1 %v7512_v42  ;;  %v586_v40 = vld [vmem:[#allocation10 + $0xb0] sm:$0xff] }
0x1261   :  { %6277 = vmatprep.subr.bf16.mxu0 %v7513_v44  ;;  %6301 = vmatprep.subr.bf16.mxu1 %v7769_v38  ;;  %v7526_v42 = vld [vmem:[#allocation4 + $0x4] ss:$16 sps:$4 sm:$0xff]   ;;  %v7527_v44 = vld [vmem:[#allocation4] ss:$16 sps:$4 sm:$0xff]  }
0x1264   :  { %6279 = vmatpush1.bf16.msra.mxu0 %v7514_v23  ;;  %6303 = vmatpush3.bf16.msra.mxu1 %v7515_v45  ;;  %v7528_v23 = vld [vmem:[#allocation4 + $0x24] ss:$16 sps:$4 sm:$0xff]   ;;  %v7529_v45 = vld [vmem:[#allocation4 + $0x20] ss:$16 sps:$4 sm:$0xff]  }
0x1265   :  { %6331 = vmatprep.subr.bf16.mxu1 %v7516_v41  ;;  %v7530_v41 = vld [vmem:[#allocation4 + $0x44] ss:$16 sps:$4 sm:$0xff]  }
0x1267   :  { %3160 = vmatmul.mubr.f32.vlgmr.msra.gmra.mrb[50].mxu0 %v8411_v15  ;;  %5647 = vmatmul.mubr.f32.vlgmr.msra.gmra.mrb[52].mxu1 %v8411_v15 }
0x1268   :  { %6333 = vmatpush1.bf16.msra.mxu1 %v7517_v48  ;;  %3576 = vmatprep.mubr.f32.mxu1 %v7768_v0  ;;  %v7531_v48 = vld [vmem:[#allocation4 + $0x40] ss:$16 sps:$4 sm:$0xff]  }
0x1269   :  { %6335 = vmatprep.subr.bf16.mxu1 %v7518_v46  ;;  %5657 = vmatprep.mubr.msk.f32.mxu0 %vm954_vm1, %v585_v7  ;;  %v7532_v46 = vld [vmem:[#allocation4 + $0x64] ss:$16 sps:$4 sm:$0xff]   ;;  %v7790_v7 = vmov 15  }
0x126c   :  { %6337 = vmatpush1.bf16.msra.mxu1 %v7519_v49  ;;  %v7533_v49 = vld [vmem:[#allocation4 + $0x60] ss:$16 sps:$4 sm:$0xff]  }
0x126d   :  { %6339 = vmatprep.subr.bf16.mxu1 %v7520_v20 }
0x1270   :  { %6341 = vmatpush1.bf16.msra.mxu1 %v7521_v50 }
0x1271   :  { %6343 = vmatprep.subr.bf16.mxu1 %v7522_v51 }
0x1274   :  { %6345 = vmatpush1.bf16.msra.mxu1 %v7523_v52 }
0x1275   :  { %6397 = vmatprep.subr.bf16.mxu1 %v7524_v55 }
0x131a   :  { %v3019_v56 = vpop.f32.mrb[48].mxu0  ;;  %v3090_v57 = vpop.f32.mrb[50].mxu1 }
0x131b   :  { %v3237_v58 = vrot.slane %v3019_v56, 6  ;;  %v3249_v59 = vrot.slane %v3090_v57, 6  ;;  %v3021_v60 = vpop.f32.mrb[49].mxu0  ;;  %v3092_v62 = vpop.f32.mrb[51].mxu1 }
0x131c   :  { %v3244_v63 = vrot.slane %v3021_v60, 2  ;;  %v3256_v1 = vrot.slane %v3092_v62, 2  ;;  %v3242_v18 = vrot.slane %v3021_v60, 4  ;;  %v3254_v9 = vrot.slane %v3092_v62, 4 }
0x131d   :  { %v7087_v47 = vpack.i.bf16 %v3249_v59, %v3237_v58 }
0x131e   :  { %v7092_v61 = vpack.i.bf16 %v3256_v1, %v3244_v63 }
0x131f   :  { %7088 = vrot.lane.b32.xlu1 %v7087_v47, %s7771_s16 }
0x1320   :  { %7093 = vrot.lane.b32.xlu0 %v7092_v61, %s7771_s16 }
0x133a   :  { %v3161_v2 = vpop.f32.mrb[50].mxu0  ;;  %v3232_v54 = vpop.f32.mrb[52].mxu1 }
0x133b   :  { %v3261_v4 = vrot.slane %v3161_v2, 6  ;;  %v3273_v5 = vrot.slane %v3232_v54, 6  ;;  %v3163_v6 = vpop.f32.mrb[51].mxu0  ;;  %v5648_v28 = vpop.f32.mrb[53].mxu1 }
0x133c   :  { %v3268_v8 = vrot.slane %v3163_v6, 2  ;;  %v3266_v21 = vrot.slane %v3163_v6, 4  ;;  %v7789_v28 = vmov 14  }
0x133d   :  { %3274 = vrot.lane.b32.xlu0 %v3273_v5, %s7771_s16 }
0x133e   :  { %v7097_v10 = vpack.i.bf16 %v3268_v8, %v3261_v4 }
0x1340   :  { %7098 = vrot.lane.b32.xlu1 %v7097_v10, %s7771_s16 }
0x1341   :  { %3292 = vperm.xlu0 %7103, %v8256_v53  }
0x1344   :  { %3288 = vperm.xlu1 %7102, %v8437_v17  }
0x1345   :  { %7104 = vset.pattern.permute.xlu0 %v7790_v7 }
0x1348   :  { %7105 = vset.pattern.permute.xlu1 %v7789_v28 }
0x1391   :  { %v7089_v11 = vpop.permute.xlu1 %7088 }
0x1392   :  { %v7091_v12 = vunpack.i.h.bf16 %v7089_v11  ;;  %v7090_v13 = vunpack.i.l.bf16 %v7089_v11  ;;  %v7094_v16 = vpop.permute.xlu0 %7093 }
0x1393   :  { %v7096_v19 = vunpack.i.h.bf16 %v7094_v16  ;;  %v7095_v3 = vunpack.i.l.bf16 %v7094_v16 }
0x1394   :  { %v3280_v22 = vsel %vm931_vm2, %v3090_v57, %v7091_v12  ;;  %v3277_v24 = vsel %vm931_vm2, %v3019_v56, %v7090_v13 }
0x1395   :  { %v3278_v53 = vsel %vm933_vm3, %v3277_v24, %v3242_v18  ;;  %v3281_v26 = vsel %vm933_vm3, %v3280_v22, %v3254_v9 }
0x1396   :  { %v3279_v27 = vsel %vm935_vm4, %v3278_v53, %v7095_v3  ;;  %v3282_v30 = vsel %vm935_vm4, %v3281_v26, %v7096_v19  ;;  %v8466_v19 = vld [vmem:[%s8860_s7 + $0x8] sm:$0xff] }
0x1397   :  { %v6304_v31 = vpack.c.bf16 %v3282_v30, %v3279_v27  ;;  %v7535_v30 = vld [vmem:[#allocation6 + $0x8] ss:$20 sps:$4 sm:$0xff]  }
0x1399   :  { %6305 = vmatprep.subr.bf16.mxu0 %v6304_v31 }
0x139a   :  { %6307 = vmatpush3.bf16.msra.mxu0 %v6304_v31 }
0x13af   :  { %v3275_v25 = vpop.permute.xlu0 %3274 }
0x13b0   :  { %v3286_v36 = vsel %vm931_vm2, %v3232_v54, %v3275_v25  ;;  %v7537_v25 = vld [vmem:[#allocation6 + $0x30] ss:$20 sps:$4 sm:$0xff]  }
0x13b2   :  { %v7099_v32 = vpop.permute.xlu1 %7098 }
0x13b3   :  { %v7100_v29 = vunpack.i.l.bf16 %v7099_v32  ;;  %v7101_v33 = vunpack.i.h.bf16 %v7099_v32  ;;  %v7536_v32 = vld [vmem:[#allocation6 + $0x34] ss:$20 sps:$4 sm:$0xff]  }
0x13b5   :  { %v3283_v34 = vsel %vm931_vm2, %v3161_v2, %v7100_v29 }
0x13b6   :  { %v3284_v35 = vsel %vm933_vm3, %v3283_v34, %v3266_v21 }
0x13b7   :  { %v3285_v37 = vsel %vm935_vm4, %v3284_v35, %v7101_v33 }
0x13b8   :  { %v6308_v39 = vpack.c.bf16 %v3286_v36, %v3285_v37 }
0x13ba   :  { %6310 = vmatprep.subr.msk.bf16.mxu0 %vm7975_vm6, %v6308_v39 }
0x13bb   :  { %6313 = vmatpush3.bf16.msk.msra.mxu0 %vm7975_vm6, %v6308_v39 }
0x13bc   :  { %6315 = vmatprep.subr.bf16.mxu0 %v7526_v42 }
0x13be   :  { %5658 = vmatmul.mubr.msk.f32.vlgmr.msra.gmra.mrb[52].mxu0 %vm954_vm1, %v586_v40 }
0x13bf   :  { %6317 = vmatpush1.bf16.msra.mxu0 %v7527_v44  ;;  %3499 = vmatprep.mubr.f32.mxu0 %v7768_v0 }
0x13c0   :  { %6319 = vmatprep.subr.bf16.mxu0 %v7528_v23  ;;  %v3293_v20 = vpop.permute.xlu0 %3292 }
0x13c3   :  { %6321 = vmatpush1.bf16.msra.mxu0 %v7529_v45  ;;  %v3289_v50 = vpop.permute.xlu1 %3288 }
0x13c4   :  { %6323 = vmatprep.subr.bf16.mxu0 %v7530_v41 }
0x13c7   :  { %6325 = vmatpush1.bf16.msra.mxu0 %v7531_v48 }
0x13c8   :  { %6327 = vmatprep.subr.bf16.mxu0 %v7532_v46 }
0x13cb   :  { %6329 = vmatpush1.bf16.msra.mxu0 %v7533_v49 }
0x13cc   :  { %6346 = vmatprep.subr.bf16.mxu0 %v7769_v38 }
0x1491   :  { %v5659_v51 = vpop.f32.mrb[52].mxu0 }
0x1492   :  { %v3376_v52 = vadd.f32 %v5659_v51, %v3293_v20  ;;  %v3370_v55 = vpop.f32.mrb[53].mxu0  ;;  %v7791_v51 = vmov 16  }
0x1493   :  { %v3371_v56 = vadd.f32 %v3370_v55, %v3289_v50  ;;  %v588_v50 = vld [vmem:[#allocation10 + $0xc8] sm:$0xff] }
0x1494   :  { %v3380_v57 = vmax.f32 %v3376_v52, 0.0  ;;  %v8511_v52 = vld [vmem:[%s8860_s7 + $0x10] sm:$0xf] }
0x1495   :  { %v3379_v58 = vmax.f32 %v3371_v56, 0.0 }
0x1496   :  { %v3384_v59 = vsel %vm1041_vm7, %v3380_v57, 0.0 }
0x1497   :  { %3385 = vadd.xlane.f32.xlu0 %v3384_v59  ;;  %v3381_v60 = vsel %vm1041_vm7, %v3379_v58, 0.0 }
0x1498   :  { %3382 = vadd.xlane.f32.xlu1 %v3381_v60 }
0x1524   :  { %v3386_v62 = vpop.xlane.xlu0 %3385 }
0x1525   :  { %v3388_v63 = vmul.f32 0.015625, %v3386_v62  ;;  %v3383_v1 = vpop.xlane.xlu1 %3382 }
0x1526   :  { %v3387_v47 = vmul.f32 0.015625, %v3383_v1 }
0x1527   :  { %v3390_v61 = vsub.f32 %v3380_v57, %v3388_v63 }
0x1528   :  { %v3389_v2 = vsub.f32 %v3379_v58, %v3387_v47 }
0x1529   :  { %v3392_v54 = vmul.f32 %v3390_v61, %v3390_v61 }
0x152a   :  { %v3391_v4 = vmul.f32 %v3389_v2, %v3389_v2 }
0x152b   :  { %v3396_v5 = vsel %vm1041_vm7, %v3392_v54, 0.0 }
0x152c   :  { %3397 = vadd.xlane.f32.xlu0 %v3396_v5  ;;  %v3393_v6 = vsel %vm1041_vm7, %v3391_v4, 0.0 }
0x152d   :  { %3394 = vadd.xlane.f32.xlu1 %v3393_v6 }
0x1542   :  { %3420 = vperm.xlu0 %7104, %v8437_v17  }
0x1546   :  { %7157 = vset.pattern.permute.xlu0 %v7791_v51 }
0x15b9   :  { %v3398_v8 = vpop.xlane.xlu0 %3397 }
0x15ba   :  { %v3400_v10 = vmul.f32 0.015625, %v3398_v8  ;;  %v3395_v14 = vpop.xlane.xlu1 %3394 }
0x15bb   :  { %v3399_v11 = vmul.f32 0.015625, %v3395_v14 }
0x15bc   :  { %v3402_v12 = vadd.f32 1e-05, %v3400_v10 }
0x15bd   :  { %v3401_v13 = vadd.f32 1e-05, %v3399_v11 }
0x15bf   :  { %7434 = vrsqrt.f32 %v3401_v13 }
0x15c0   :  { %7436 = vrsqrt.f32 %v3402_v12 }
0x15c1   :  { %v3421_v24 = vpop.permute.xlu0 %3420 }
0x15c9   :  { %v7435_v16 = vpop.eup %7434 }
0x15ca   :  { %v3405_v18 = vmul.f32 %v8437_v17, %v7435_v16  ;;  %v7437_v9 = vpop.eup %7436 }
0x15cb   :  { %v3406_v3 = vmul.f32 %v8466_v19, %v7437_v9 }
0x15cc   :  { %3409 = vperm.xlu1 %7105, %v3405_v18  }
0x15d0   :  { %3414 = vperm.xlu1 %7105, %v3406_v3  }
0x15d4   :  { %7106 = vset.pattern.permute.xlu1 %v7790_v7 }
0x15d5   :  { %3424 = vperm.xlu1 %7106, %v8466_v19  }
0x15d9   :  { %7158 = vset.pattern.permute.xlu1 %v7791_v51 }
0x164b   :  { %v3410_v22 = vpop.permute.xlu1 %3409 }
0x164c   :  { %v3417_v53 = vmul.f32 %v3410_v22, %v3389_v2 }
0x164e   :  { %v3427_v26 = vadd.f32 %v3421_v24, %v3417_v53 }
0x164f   :  { %v3415_v27 = vpop.permute.xlu1 %3414 }
0x1650   :  { %5336 = vmatmul.mubr.msk.f32.vlgmr.msra.gmra.mrb[54].mxu0 %vm1041_vm7, %v3427_v26  ;;  %5338 = vmatmul.mubr.msk.f32.vlgmr.msra.gmra.mrb[54].mxu1 %vm1041_vm7, %v3427_v26  ;;  %v3418_v31 = vmul.f32 %v3415_v27, %v3390_v61 }
0x1651   :  { %3505 = vmatprep.mubr.f32.mxu0 %v7768_v0  ;;  %3582 = vmatprep.mubr.f32.mxu1 %v7768_v0 }
0x1652   :  { %6399 = vmatpush1.bf16.msra.mxu1 %v7535_v30 }
0x1653   :  { %6401 = vmatprep.subr.bf16.mxu1 %v7536_v32 }
0x1654   :  { %v3425_v29 = vpop.permute.xlu1 %3424 }
0x1655   :  { %v3428_v21 = vadd.f32 %v3425_v29, %v3418_v31 }
0x1656   :  { %6403 = vmatpush1.bf16.msra.mxu1 %v7537_v25 }
0x1657   :  { %5337 = vmatmul.mubr.msk.f32.gmra.mrb[56].mxu0 %vm1041_vm7, %v3428_v21  ;;  %5339 = vmatmul.mubr.msk.f32.gmra.mrb[56].mxu1 %vm1041_vm7, %v3428_v21 }
0x1658   :  { %3989 = vmatprep.mubr.f32.mxu1 %v7768_v0  ;;  %6404 = vmatprep.subr.bf16.mxu1 %v7769_v38 }
0x1659   :  { %5340 = vmatprep.mubr.msk.f32.mxu0 %vm1332_vm8, %v588_v50 }
0x1723   :  { %v3501_v33 = vpop.f32.mrb[54].mxu0  ;;  %v8478_v34 = vpop.f32.mrb[54].mxu1 }
0x1724   :  { %v3503_v35 = vpop.f32.mrb[55].mxu0  ;;  %v8480_v36 = vpop.f32.mrb[55].mxu1 }
0x172a   :  { %v3507_v37 = vpop.f32.mrb[56].mxu0  ;;  %v8482_v39 = vpop.f32.mrb[56].mxu1 }
0x172b   :  { %v7117_v40 = vpack.i.bf16 %v3507_v37, %v3501_v33  ;;  %v6347_v42 = vpack.c.bf16 %v3507_v37, %v3501_v33  ;;  %v3509_v44 = vpop.f32.mrb[57].mxu0  ;;  %v8484_v23 = vpop.f32.mrb[57].mxu1  ;;  %v7142_v45 = vpack.i.bf16 %v8482_v39, %v8478_v34  ;;  %v6371_v41 = vpack.c.bf16 %v8482_v39, %v8478_v34  ;;  %v587_v34 = vld [vmem:[#allocation10 + $0xc0] sm:$0xff]  ;;  %v7539_v37 = vld [vmem:[#allocation6 + $0x4] ss:$20 sps:$4 sm:$0xff]  }
0x172c   :  { %v7132_v48 = vpack.i.bf16 %v3509_v44, %v3503_v35  ;;  %v6359_v46 = vpack.c.bf16 %v3509_v44, %v3503_v35  ;;  %v7152_v49 = vpack.i.bf16 %v8484_v23, %v8480_v36  ;;  %v6383_v20 = vpack.c.bf16 %v8484_v23, %v8480_v36  ;;  %v590_v35 = vld [vmem:[#allocation10 + $0xd8] sm:$0xff]  ;;  %v589_v39 = vld [vmem:[#allocation10 + $0xd0] sm:$0xff]  ;;  %v8537_v36 = vld [vmem:[#allocation10 + $0xe0] sm:$0xff] }
0x172d   :  { %7108 = vrot.lane.b32.xlu1 %v7117_v40, %s7776_s4  ;;  %6348 = vmatpush1.bf16.msra.mxu0 %v6347_v42  ;;  %v8533_v42 = vld [vmem:[#allocation10 + $0xe8] sm:$0xff]  ;;  %v7541_v44 = vld [vmem:[#allocation6 + $0x2c] ss:$20 sps:$4 sm:$0xff]  }
0x172e   :  { %6349 = vmatprep.subr.bf16.mxu0 %v7769_v38  ;;  %7138 = vrot.lane.b32.xlu0 %v7142_v45, %s7776_s4  ;;  %v7542_v23 = vld [vmem:[#allocation6 + $0x28] ss:$20 sps:$4 sm:$0xff]  }
0x1731   :  { %7113 = vrot.lane.b32.xlu1 %v7117_v40, %s7771_s16 }
0x1732   :  { %7148 = vrot.lane.b32.xlu0 %v7142_v45, %s7777_s20 }
0x1735   :  { %7118 = vrot.lane.b32.xlu1 %v7117_v40, %s7777_s20  ;;  %v7540_v40 = vld [vmem:[#allocation6] ss:$20 sps:$4 sm:$0xff]  }
0x1736   :  { %3658 = vperm.xlu0 %7157, %v8437_v17  }
0x1739   :  { %7123 = vrot.lane.b32.xlu1 %v7132_v48, %s7776_s4 }
0x173d   :  { %7128 = vrot.lane.b32.xlu1 %v7132_v48, %s7771_s16 }
0x1741   :  { %7133 = vrot.lane.b32.xlu1 %v7132_v48, %s7777_s20 }
0x1745   :  { %7143 = vrot.lane.b32.xlu1 %v7142_v45, %s7771_s16  ;;  %v7543_v45 = vld [vmem:[#allocation7 + $0x4] ss:$40 sps:$4 sm:$0xff]  }
0x1749   :  { %7153 = vrot.lane.b32.xlu1 %v7152_v49, %s7776_s4 }
0x174d   :  { %3662 = vperm.xlu1 %7158, %v8466_v19  }
0x1751   :  { %3666 = vperm.xlu1 %7158, %v8511_v52  }
0x179f   :  { %v7109_v55 = vpop.permute.xlu1 %7108 }
0x17a0   :  { %v7111_v56 = vunpack.i.h.bf16 %v7109_v55  ;;  %v7110_v57 = vunpack.i.l.bf16 %v7109_v55  ;;  %v7139_v16 = vpop.permute.xlu0 %7138 }
0x17a1   :  { %v7141_v18 = vunpack.i.h.bf16 %v7139_v16  ;;  %v7140_v9 = vunpack.i.l.bf16 %v7139_v16 }
0x17a2   :  { %v6350_v58 = vpack.c.bf16 %v7111_v56, %v7110_v57 }
0x17a3   :  { %v7114_v59 = vpop.permute.xlu1 %7113  ;;  %v6374_v22 = vpack.c.bf16 %v7141_v18, %v7140_v9  ;;  %v7792_v9 = vmov 18  }
0x17a4   :  { %v7116_v60 = vunpack.i.h.bf16 %v7114_v59  ;;  %v7115_v62 = vunpack.i.l.bf16 %v7114_v59  ;;  %6351 = vmatpush1.bf16.msra.mxu0 %v6350_v58  ;;  %v7149_v26 = vpop.permute.xlu0 %7148  ;;  %7160 = vset.pattern.permute.xlu1 %v7792_v9 }
0x17a5   :  { %6352 = vmatprep.subr.bf16.mxu0 %v7769_v38  ;;  %v7151_v27 = vunpack.i.h.bf16 %v7149_v26  ;;  %v7150_v30 = vunpack.i.l.bf16 %v7149_v26  ;;  %7159 = vset.pattern.permute.xlu0 %v7792_v9 }
0x17a6   :  { %v6353_v63 = vpack.c.bf16 %v7116_v60, %v7115_v62 }
0x17a7   :  { %v7119_v1 = vpop.permute.xlu1 %7118  ;;  %v6380_v32 = vpack.c.bf16 %v7151_v27, %v7150_v30 }
0x17a8   :  { %v7121_v47 = vunpack.i.h.bf16 %v7119_v1  ;;  %v7120_v61 = vunpack.i.l.bf16 %v7119_v1  ;;  %6354 = vmatpush1.bf16.msra.mxu0 %v6353_v63 }
0x17a9   :  { %6355 = vmatprep.subr.bf16.mxu0 %v7769_v38 }
0x17aa   :  { %v6356_v2 = vpack.c.bf16 %v7121_v47, %v7120_v61 }
0x17ab   :  { %v7124_v54 = vpop.permute.xlu1 %7123 }
0x17ac   :  { %6357 = vmatpush1.bf16.msra.mxu0 %v6356_v2  ;;  %v7126_v4 = vunpack.i.h.bf16 %v7124_v54  ;;  %v7125_v5 = vunpack.i.l.bf16 %v7124_v54 }
0x17ad   :  { %6358 = vmatprep.subr.bf16.mxu0 %v7769_v38 }
0x17ae   :  { %v6362_v28 = vpack.c.bf16 %v7126_v4, %v7125_v5 }
0x17af   :  { %v7129_v6 = vpop.permute.xlu1 %7128 }
0x17b0   :  { %6360 = vmatpush1.bf16.msra.mxu0 %v6359_v46  ;;  %v7131_v7 = vunpack.i.h.bf16 %v7129_v6  ;;  %v7130_v8 = vunpack.i.l.bf16 %v7129_v6 }
0x17b1   :  { %6361 = vmatprep.subr.bf16.mxu0 %v7769_v38 }
0x17b2   :  { %v6365_v14 = vpack.c.bf16 %v7131_v7, %v7130_v8 }
0x17b3   :  { %v7134_v10 = vpop.permute.xlu1 %7133 }
0x17b4   :  { %6363 = vmatpush1.bf16.msra.mxu0 %v6362_v28  ;;  %v7136_v11 = vunpack.i.h.bf16 %v7134_v10  ;;  %v7135_v12 = vunpack.i.l.bf16 %v7134_v10 }
0x17b5   :  { %6364 = vmatprep.subr.bf16.mxu0 %v7769_v38 }
0x17b6   :  { %v6368_v13 = vpack.c.bf16 %v7136_v11, %v7135_v12 }
0x17b7   :  { %v7144_v3 = vpop.permute.xlu1 %7143 }
0x17b8   :  { %6366 = vmatpush1.bf16.msra.mxu0 %v6365_v14  ;;  %v7146_v24 = vunpack.i.h.bf16 %v7144_v3  ;;  %v7145_v53 = vunpack.i.l.bf16 %v7144_v3  ;;  %v7793_v3 = vmov 17  }
0x17b9   :  { %6367 = vmatprep.subr.bf16.mxu0 %v7769_v38 }
0x17ba   :  { %v6377_v31 = vpack.c.bf16 %v7146_v24, %v7145_v53 }
0x17bb   :  { %v7154_v29 = vpop.permute.xlu1 %7153 }
0x17bc   :  { %6369 = vmatpush1.bf16.msra.mxu0 %v6368_v13  ;;  %v7156_v21 = vunpack.i.h.bf16 %v7154_v29  ;;  %v7155_v25 = vunpack.i.l.bf16 %v7154_v29 }
0x17bd   :  { %6370 = vmatprep.subr.bf16.mxu0 %v7769_v38 }
0x17be   :  { %v6386_v33 = vpack.c.bf16 %v7156_v21, %v7155_v25 }
0x17c0   :  { %6372 = vmatpush1.bf16.msra.mxu0 %v6371_v41  ;;  %v3659_v41 = vpop.permute.xlu0 %3658 }
0x17c1   :  { %6373 = vmatprep.subr.bf16.mxu0 %v7769_v38 }
0x17c4   :  { %6375 = vmatpush1.bf16.msra.mxu0 %v6374_v22 }
0x17c5   :  { %6376 = vmatprep.subr.bf16.mxu0 %v7769_v38 }
0x17c8   :  { %6378 = vmatpush1.bf16.msra.mxu0 %v6377_v31 }
0x17c9   :  { %6379 = vmatprep.subr.bf16.mxu0 %v7769_v38 }
0x17cc   :  { %6381 = vmatpush1.bf16.msra.mxu0 %v6380_v32 }
0x17cd   :  { %6382 = vmatprep.subr.bf16.mxu0 %v7769_v38 }
0x17d0   :  { %6384 = vmatpush1.bf16.msra.mxu0 %v6383_v20  ;;  %v3663_v20 = vpop.permute.xlu1 %3662 }
0x17d1   :  { %6385 = vmatprep.subr.bf16.mxu0 %v7769_v38 }
0x17d4   :  { %6387 = vmatpush1.bf16.msra.mxu0 %v6386_v33  ;;  %v3667_v59 = vpop.permute.xlu1 %3666 }
0x17d5   :  { %6389 = vmatprep.subr.bf16.mxu0 %v7539_v37 }
0x17d7   :  { %3743 = vmatmul.mubr.f32.vlgmr.msra.gmra.mrb[58].mxu0 %v587_v34 }
0x17d8   :  { %5341 = vmatprep.mubr.msk.f32.mxu0 %vm1332_vm8, %v590_v35  ;;  %6391 = vmatpush1.bf16.msra.mxu0 %v7540_v40 }
0x17d9   :  { %6393 = vmatprep.subr.bf16.mxu0 %v7541_v44 }
0x17db   :  { %3748 = vmatmul.mubr.f32.gmra.mrb[60].mxu0 %v589_v39 }
0x17dc   :  { %5342 = vmatprep.mubr.msk.f32.mxu0 %vm1332_vm8, %v8533_v42  ;;  %6395 = vmatpush1.bf16.msra.mxu0 %v7542_v23 }
0x17dd   :  { %6447 = vmatprep.subr.bf16.mxu0 %v7543_v45 }
0x17df   :  { %3753 = vmatmul.mubr.f32.gmra.mrb[62].mxu0 %v8537_v36 }
0x17e0   :  { %3906 = vmatprep.mubr.f32.mxu0 %v7768_v0 }
0x18aa   :  { %v3744_v48 = vpop.f32.mrb[58].mxu0 }
0x18ab   :  { %v3745_v46 = vadd.f32 %v3744_v48, %v3659_v41  ;;  %v3746_v49 = vpop.f32.mrb[59].mxu0 }
0x18ac   :  { %v7544_v49 = vld [vmem:[#allocation6 + $0x10] ss:$20 sps:$4 sm:$0xff]  }
0x18ad   :  { %v3758_v50 = vmax.f32 %v3745_v46, 0.0 }
0x18ae   :  { %v3749_v51 = vpop.f32.mrb[60].mxu0 }
0x18af   :  { %v3750_v55 = vadd.f32 %v3749_v51, %v3663_v20  ;;  %v3751_v56 = vpop.f32.mrb[61].mxu0  ;;  %v3761_v57 = vsel %vm1425_vm9, %v3758_v50, 0.0  ;;  %v7545_v20 = vld [vmem:[#allocation7] ss:$40 sps:$4 sm:$0xff]   ;;  %v7546_v51 = vld [vmem:[#allocation7 + $0x54] ss:$40 sps:$4 sm:$0xff]  }
0x18b0   :  { %3762 = vadd.xlane.f32.xlu0 %v3761_v57  ;;  %v7548_v56 = vld [vmem:[#allocation7 + $0x50] ss:$40 sps:$4 sm:$0xff]  }
0x18b1   :  { %v3759_v58 = vmax.f32 %v3750_v55, 0.0  ;;  %v7547_v55 = vld [vmem:[#allocation6 + $0x38] ss:$20 sps:$4 sm:$0xff]  }
0x18b2   :  { %v3754_v60 = vpop.f32.mrb[62].mxu0 }
0x18b3   :  { %v3755_v62 = vadd.f32 %v3754_v60, %v3667_v59  ;;  %v3756_v63 = vpop.f32.mrb[63].mxu0  ;;  %v3764_v1 = vsel %vm1425_vm9, %v3759_v58, 0.0 }
0x18b4   :  { %3765 = vadd.xlane.f32.xlu1 %v3764_v1  ;;  %v7551_v63 = vld [vmem:[#allocation7 + $0xf4] ss:$40 sps:$4 sm:$0xff]   ;;  %v7552_v1 = vld [vmem:[#allocation7 + $0xf0] ss:$40 sps:$4 sm:$0xff]  }
0x18b5   :  { %v3760_v47 = vmax.f32 %v3755_v62, 0.0  ;;  %v7550_v62 = vld [vmem:[#allocation7 + $0xa0] ss:$40 sps:$4 sm:$0xff]  }
0x18b7   :  { %v3767_v61 = vsel %vm1432_vm10, %v3760_v47, 0.0 }
0x18b8   :  { %3768 = vadd.xlane.f32.xlu0 %v3767_v61 }
0x193d   :  { %v3763_v2 = vpop.xlane.xlu0 %3762 }
0x193e   :  { %v3770_v54 = vmul.f32 0.03125, %v3763_v2 }
0x1940   :  { %v3773_v4 = vsub.f32 %v3758_v50, %v3770_v54 }
0x1941   :  { %v3766_v5 = vpop.xlane.xlu1 %3765 }
0x1942   :  { %v3771_v6 = vmul.f32 0.03125, %v3766_v5  ;;  %v3776_v28 = vmul.f32 %v3773_v4, %v3773_v4 }
0x1944   :  { %v3774_v7 = vsub.f32 %v3759_v58, %v3771_v6  ;;  %v3779_v8 = vsel %vm1425_vm9, %v3776_v28, 0.0  ;;  %v7549_v58 = vld [vmem:[#allocation7 + $0xa4] ss:$40 sps:$4 sm:$0xff]  }
0x1945   :  { %3780 = vadd.xlane.f32.xlu0 %v3779_v8  ;;  %v3769_v10 = vpop.xlane.xlu0 %3768 }
0x1946   :  { %v3772_v14 = vmul.f32 0.03125, %v3769_v10  ;;  %v3777_v11 = vmul.f32 %v3774_v7, %v3774_v7 }
0x1948   :  { %v8545_v12 = vsub.f32 %v3760_v47, %v3772_v14  ;;  %v3782_v13 = vsel %vm1425_vm9, %v3777_v11, 0.0  ;;  %v7553_v47 = vld [vmem:[#allocation7 + $0xc] ss:$40 sps:$4 sm:$0xff]  }
0x1949   :  { %3783 = vadd.xlane.f32.xlu1 %v3782_v13 }
0x194a   :  { %v3778_v16 = vmul.f32 %v8545_v12, %v8545_v12 }
0x194c   :  { %v3785_v18 = vsel %vm1432_vm10, %v3778_v16, 0.0 }
0x194d   :  { %3786 = vadd.xlane.f32.xlu0 %v3785_v18 }
0x195a   :  { %3823 = vperm.xlu1 %7160, %v8466_v19  }
0x195e   :  { %7161 = vset.pattern.permute.xlu1 %v7793_v3 }
0x1963   :  { %3819 = vperm.xlu0 %7159, %v8437_v17  }
0x19d2   :  { %v3781_v22 = vpop.xlane.xlu0 %3780 }
0x19d3   :  { %v3788_v24 = vmul.f32 0.03125, %v3781_v22 }
0x19d5   :  { %v3791_v53 = vadd.f32 1e-05, %v3788_v24 }
0x19d6   :  { %v3784_v26 = vpop.xlane.xlu1 %3783 }
0x19d7   :  { %7438 = vrsqrt.f32 %v3791_v53  ;;  %v3789_v27 = vmul.f32 0.03125, %v3784_v26 }
0x19d9   :  { %v3792_v30 = vadd.f32 1e-05, %v3789_v27 }
0x19da   :  { %v3787_v31 = vpop.xlane.xlu0 %3786  ;;  %v3824_v39 = vpop.permute.xlu1 %3823 }
0x19db   :  { %7440 = vrsqrt.f32 %v3792_v30  ;;  %v3790_v32 = vmul.f32 0.03125, %v3787_v31 }
0x19dd   :  { %v3793_v29 = vadd.f32 1e-05, %v3790_v32 }
0x19df   :  { %7442 = vrsqrt.f32 %v3793_v29 }
0x19e1   :  { %v7439_v21 = vpop.eup %7438 }
0x19e2   :  { %v3797_v25 = vmul.f32 %v8437_v17, %v7439_v21  ;;  %v3820_v44 = vpop.permute.xlu0 %3819 }
0x19e4   :  { %3802 = vperm.xlu1 %7161, %v3797_v25  }
0x19e5   :  { %v7441_v33 = vpop.eup %7440 }
0x19e6   :  { %v3798_v34 = vmul.f32 %v8466_v19, %v7441_v33 }
0x19e8   :  { %3807 = vperm.xlu1 %7161, %v3798_v34  }
0x19e9   :  { %v7443_v35 = vpop.eup %7442 }
0x19ea   :  { %v3799_v37 = vmul.f32 %v8511_v52, %v7443_v35 }
0x19ec   :  { %3812 = vperm.xlu1 %7161, %v3799_v37  }
0x19f0   :  { %7162 = vset.pattern.permute.xlu1 %v7792_v9 }
0x19f1   :  { %3827 = vperm.xlu1 %7162, %v8511_v52  }
0x1a63   :  { %v3803_v40 = vpop.permute.xlu1 %3802 }
0x1a64   :  { %v3815_v23 = vmul.f32 %v3803_v40, %v3773_v4 }
0x1a66   :  { %v3830_v45 = vadd.f32 %v3820_v44, %v3815_v23 }
0x1a67   :  { %v3808_v41 = vpop.permute.xlu1 %3807 }
0x1a68   :  { %v3816_v48 = vmul.f32 %v3808_v41, %v3774_v7  ;;  %5343 = vmatmul.mubr.msk.f32.vlgmr.msra.gmra.mrb[64].mxu0 %vm1425_vm9, %v3830_v45  ;;  %5346 = vmatmul.mubr.msk.f32.vlgmr.msra.gmra.mrb[58].mxu1 %vm1425_vm9, %v3830_v45 }
0x1a69   :  { %3912 = vmatprep.mubr.f32.mxu0 %v7768_v0  ;;  %3995 = vmatprep.mubr.f32.mxu1 %v7768_v0 }
0x1a6a   :  { %v3831_v46 = vadd.f32 %v3824_v39, %v3816_v48  ;;  %6406 = vmatpush3.bf16.msra.mxu1 %v7544_v49  ;;  %6449 = vmatpush1.bf16.msra.mxu0 %v7545_v20 }
0x1a6b   :  { %v3813_v50 = vpop.permute.xlu1 %3812  ;;  %6407 = vmatprep.subr.bf16.mxu1 %v7769_v38  ;;  %6451 = vmatprep.subr.bf16.mxu0 %v7546_v51 }
0x1a6c   :  { %5344 = vmatmul.mubr.msk.f32.gmra.mrb[66].mxu0 %vm1425_vm9, %v3831_v46  ;;  %5347 = vmatmul.mubr.msk.f32.gmra.mrb[60].mxu1 %vm1425_vm9, %v3831_v46  ;;  %v3817_v57 = vmul.f32 %v3813_v50, %v8545_v12 }
0x1a6d   :  { %3918 = vmatprep.mubr.f32.mxu0 %v7768_v0  ;;  %4001 = vmatprep.mubr.f32.mxu1 %v7768_v0 }
0x1a6e   :  { %6409 = vmatpush3.bf16.msra.mxu1 %v7547_v55  ;;  %6453 = vmatpush1.bf16.msra.mxu0 %v7548_v56 }
0x1a6f   :  { %6410 = vmatprep.subr.bf16.mxu1 %v7769_v38  ;;  %6455 = vmatprep.subr.bf16.mxu0 %v7549_v58 }
0x1a70   :  { %v3828_v59 = vpop.permute.xlu1 %3827 }
0x1a71   :  { %v3832_v60 = vadd.f32 %v3828_v59, %v3817_v57 }
0x1a72   :  { %6457 = vmatpush1.bf16.msra.mxu0 %v7550_v62  ;;  %v4198_v62 = vrot.slane %v8533_v42, 4 }
0x1a73   :  { %5345 = vmatmul.mubr.msk.f32.gmra.mrb[68].mxu0 %vm1425_vm9, %v3832_v60  ;;  %5348 = vmatmul.mubr.msk.f32.gmra.mrb[62].mxu1 %vm1425_vm9, %v3832_v60 }
0x1a74   :  { %5668 = vmatprep.mubr.msk.f32.mxu1 %vm7770_vm0, %v7768_v0  ;;  %6459 = vmatprep.subr.bf16.mxu0 %v7551_v63  ;;  %v8639_v63 = vld [vmem:[#allocation10 + $0xf8] sm:$0xff] }
0x1a75   :  { %4442 = vmatprep.mubr.f32.mxu0 %v7768_v0 }
0x1a76   :  { %6461 = vmatpush1.bf16.msra.mxu0 %v7552_v1  ;;  %v4199_v1 = vrot.slane %v8639_v63, 4 }
0x1a77   :  { %5669 = vmatmul.mubr.msk.f32.vlgmr.msra.gmra.mrb[64].mxu1 %vm1425_vm9, %v3830_v45  ;;  %6463 = vmatprep.subr.bf16.mxu0 %v7553_v47 }
0x1a78   :  { %5671 = vmatprep.mubr.msk.f32.mxu1 %vm7770_vm0, %v7768_v0  ;;  %v4200_v47 = vsel %vm933_vm3, %v4198_v62, %v4199_v1 }
0x1a7b   :  { %5672 = vmatmul.mubr.msk.f32.gmra.mrb[66].mxu1 %vm1425_vm9, %v3831_v46 }
0x1a7c   :  { %5674 = vmatprep.mubr.msk.f32.mxu1 %vm7770_vm0, %v7768_v0 }
0x1a7f   :  { %5675 = vmatmul.mubr.msk.f32.gmra.mrb[68].mxu1 %vm1425_vm9, %v3832_v60 }
0x1a80   :  { %5352 = vmatprep.mubr.msk.f32.mxu1 %vm1875_vm11, %v4200_v47 }
0x1b3b   :  { %v3908_v61 = vpop.f32.mrb[64].mxu0  ;;  %v8580_v2 = vpop.f32.mrb[58].mxu1 }
0x1b3c   :  { %v8582_v54 = vpop.f32.mrb[65].mxu0  ;;  %v8584_v4 = vpop.f32.mrb[59].mxu1  ;;  %v4091_v5 = vrot.slane %v3908_v61, 4  ;;  %v4125_v6 = vrot.slane %v8580_v2, 4 }
0x1b3d   :  { %v4108_v16 = vrot.slane %v8582_v54, 4  ;;  %v4142_v18 = vrot.slane %v8584_v4, 4 }
0x1b3f   :  { %v3914_v28 = vpop.f32.mrb[66].mxu0  ;;  %v8587_v7 = vpop.f32.mrb[60].mxu1 }
0x1b40   :  { %v4092_v8 = vrot.slane %v3914_v28, 4  ;;  %v6411_v10 = vpack.c.bf16 %v3914_v28, %v3908_v61  ;;  %v4126_v14 = vrot.slane %v8587_v7, 4  ;;  %v6426_v11 = vpack.c.bf16 %v8587_v7, %v8580_v2  ;;  %v8592_v12 = vpop.f32.mrb[67].mxu0  ;;  %v8594_v13 = vpop.f32.mrb[61].mxu1 }
0x1b41   :  { %v4109_v9 = vrot.slane %v8592_v12, 4  ;;  %v4143_v3 = vrot.slane %v8594_v13, 4  ;;  %v7794_v61 = vmov 19  }
0x1b42   :  { %v4093_v22 = vsel %vm933_vm3, %v4091_v5, %v4092_v8  ;;  %v4127_v24 = vsel %vm933_vm3, %v4125_v6, %v4126_v14  ;;  %6412 = vmatpush1.bf16.msra.mxu1 %v6411_v10  ;;  %7188 = vset.pattern.permute.xlu1 %v7794_v61 }
0x1b43   :  { %v7163_v53 = vpack.i.bf16 %v4093_v22, %v4091_v5  ;;  %v7173_v26 = vpack.i.bf16 %v4127_v24, %v4125_v6  ;;  %v4110_v27 = vsel %vm933_vm3, %v4108_v16, %v4109_v9  ;;  %v4144_v30 = vsel %vm933_vm3, %v4142_v18, %v4143_v3  ;;  %6413 = vmatprep.subr.bf16.mxu1 %v7769_v38 }
0x1b44   :  { %7189 = vset.pattern.permute.xlu0 %v7794_v61 }
0x1b45   :  { %7164 = vrot.lane.b32.xlu1 %v7163_v53, %s7771_s16 }
0x1b46   :  { %v3920_v31 = vpop.f32.mrb[68].mxu0  ;;  %v8606_v32 = vpop.f32.mrb[62].mxu1 }
0x1b47   :  { %v4094_v29 = vrot.slane %v3920_v31, 4  ;;  %v4128_v21 = vrot.slane %v8606_v32, 4  ;;  %v3922_v25 = vpop.f32.mrb[69].mxu0  ;;  %v8609_v33 = vpop.f32.mrb[63].mxu1 }
0x1b48   :  { %v4111_v34 = vrot.slane %v3922_v25, 4  ;;  %v4145_v35 = vrot.slane %v8609_v33, 4 }
0x1b49   :  { %v4095_v37 = vsel %vm933_vm3, %v4092_v8, %v4094_v29  ;;  %v4129_v39 = vsel %vm933_vm3, %v4126_v14, %v4128_v21 }
0x1b4a   :  { %v8614_v40 = vpop.f32.mrb[64].mxu1  ;;  %4100 = vrot.lane.b32.xlu1 %v4095_v37, %s7771_s16  ;;  %v4112_v44 = vsel %vm933_vm3, %v4109_v9, %v4111_v34  ;;  %v4146_v23 = vsel %vm933_vm3, %v4143_v3, %v4145_v35  ;;  %v596_v37 = vld [vmem:[#allocation10 + $0x108] sm:$0xff] }
0x1b4b   :  { %v5670_v45 = vpop.f32.mrb[65].mxu1  ;;  %v7168_v41 = vpack.i.bf16 %v4112_v44, %v4110_v27  ;;  %v7178_v48 = vpack.i.bf16 %v4146_v23, %v4144_v30  ;;  %v4159_v49 = vrot.slane %v8614_v40, 4 }
0x1b4c   :  { %v4203_v45 = vrot.slane %v596_v37, 4 }
0x1b4d   :  { %7169 = vrot.lane.b32.xlu0 %v7168_v41, %s7771_s16  ;;  %v595_v41 = vld [vmem:[#allocation10 + $0x100] sm:$0xff] }
0x1b4e   :  { %v8620_v46 = vpop.f32.mrb[66].mxu1  ;;  %4113 = vrot.lane.b32.xlu1 %v4108_v16, %s7771_s16 }
0x1b4f   :  { %v4160_v20 = vrot.slane %v8620_v46, 4  ;;  %v6441_v50 = vpack.c.bf16 %v8620_v46, %v8614_v40  ;;  %v5673_v51 = vpop.f32.mrb[67].mxu1  ;;  %v4204_v40 = vsel %vm933_vm3, %v4199_v1, %v4203_v45  ;;  %v7554_v46 = vld [vmem:[#allocation7 + $0x14] ss:$40 sps:$4 sm:$0xff]  }
0x1b50   :  { %v7556_v51 = vld [vmem:[#allocation7 + $0x64] ss:$40 sps:$4 sm:$0xff]  }
0x1b51   :  { %v4161_v55 = vsel %vm933_vm3, %v4159_v49, %v4160_v20  ;;  %4134 = vrot.lane.b32.xlu0 %v4129_v39, %s7771_s16  ;;  %v4195_v39 = vrot.slane %v8537_v36, 4 }
0x1b52   :  { %v7183_v56 = vpack.i.bf16 %v4161_v55, %v4159_v49  ;;  %v8629_v57 = vpop.f32.mrb[68].mxu1  ;;  %7174 = vrot.lane.b32.xlu1 %v7173_v26, %s7771_s16  ;;  %v4201_v49 = vrot.slane %v595_v41, 4  ;;  %v7557_v55 = vld [vmem:[#allocation7 + $0x60] ss:$40 sps:$4 sm:$0xff]  }
0x1b53   :  { %v4162_v58 = vrot.slane %v8629_v57, 4  ;;  %v5676_v59 = vpop.f32.mrb[69].mxu1 }
0x1b54   :  { %v7561_v59 = vld [vmem:[#allocation7 + $0x100] ss:$40 sps:$4 sm:$0xff]  }
0x1b55   :  { %7179 = vrot.lane.b32.xlu0 %v7178_v48, %s7771_s16  ;;  %v4163_v60 = vsel %vm933_vm3, %v4160_v20, %v4162_v58  ;;  %v7560_v58 = vld [vmem:[#allocation7 + $0x104] ss:$40 sps:$4 sm:$0xff]  }
0x1b56   :  { %4147 = vrot.lane.b32.xlu1 %v4142_v18, %s7771_s16 }
0x1b59   :  { %4168 = vrot.lane.b32.xlu0 %v4163_v60, %s7771_s16  ;;  %v7562_v60 = vld [vmem:[#allocation7 + $0x24] ss:$40 sps:$4 sm:$0xff]  }
0x1b5a   :  { %7184 = vrot.lane.b32.xlu1 %v7183_v56, %s7771_s16  ;;  %v7558_v56 = vld [vmem:[#allocation7 + $0xb4] ss:$40 sps:$4 sm:$0xff]  }
0x1b5d   :  { %4183 = vperm.xlu0 %7189, %v8466_v19  }
0x1b5e   :  { %4179 = vperm.xlu1 %7188, %v8437_v17  }
0x1b62   :  { %4187 = vperm.xlu1 %7188, %v8511_v52  }
0x1bb7   :  { %v7165_v42 = vpop.permute.xlu1 %7164 }
0x1bb8   :  { %v7167_v5 = vunpack.i.h.bf16 %v7165_v42  ;;  %v7166_v6 = vunpack.i.l.bf16 %v7165_v42 }
0x1bba   :  { %v4173_v28 = vsel %vm933_vm3, %v3920_v31, %v7166_v6 }
0x1bbb   :  { %v6414_v8 = vpack.c.bf16 %v7167_v5, %v4173_v28 }
0x1bbc   :  { %v4101_v10 = vpop.permute.xlu1 %4100 }
0x1bbd   :  { %6415 = vmatpush1.bf16.msra.mxu1 %v6414_v8  ;;  %v6417_v14 = vpack.c.bf16 %v8582_v54, %v4101_v10 }
0x1bbe   :  { %6416 = vmatprep.subr.bf16.mxu1 %v7769_v38 }
0x1bbf   :  { %v7170_v16 = vpop.permute.xlu0 %7169 }
0x1bc0   :  { %v4114_v18 = vpop.permute.xlu1 %4113  ;;  %v7172_v3 = vunpack.i.h.bf16 %v7170_v16  ;;  %v7171_v22 = vunpack.i.l.bf16 %v7170_v16 }
0x1bc1   :  { %v4174_v17 = vsel %vm933_vm3, %v3922_v25, %v4114_v18  ;;  %6418 = vmatpush1.bf16.msra.mxu1 %v6417_v14 }
0x1bc2   :  { %v6420_v9 = vpack.c.bf16 %v4174_v17, %v8592_v12  ;;  %6419 = vmatprep.subr.bf16.mxu1 %v7769_v38  ;;  %v6423_v53 = vpack.c.bf16 %v7172_v3, %v7171_v22 }
0x1bc3   :  { %v4135_v29 = vpop.permute.xlu0 %4134 }
0x1bc4   :  { %v7175_v24 = vpop.permute.xlu1 %7174  ;;  %v6432_v25 = vpack.c.bf16 %v8584_v4, %v4135_v29  ;;  %v593_v4 = vld [vmem:[#allocation10 + $0xf0] sm:$0xff] }
0x1bc5   :  { %6421 = vmatpush1.bf16.msra.mxu1 %v6420_v9  ;;  %v7176_v26 = vunpack.i.l.bf16 %v7175_v24  ;;  %v7177_v12 = vunpack.i.h.bf16 %v7175_v24  ;;  %v4196_v23 = vrot.slane %v593_v4, 4 }
0x1bc6   :  { %6422 = vmatprep.subr.bf16.mxu1 %v7769_v38 }
0x1bc7   :  { %v4175_v31 = vsel %vm933_vm3, %v8606_v32, %v7176_v26  ;;  %v4197_v48 = vsel %vm933_vm3, %v4195_v39, %v4196_v23  ;;  %v4202_v36 = vsel %vm933_vm3, %v4196_v23, %v4201_v49 }
0x1bc8   :  { %v4148_v27 = vpop.permute.xlu1 %4147  ;;  %v6429_v21 = vpack.c.bf16 %v7177_v12, %v4175_v31 }
0x1bc9   :  { %v4176_v54 = vsel %vm933_vm3, %v8609_v33, %v4148_v27  ;;  %6424 = vmatpush1.bf16.msra.mxu1 %v6423_v53 }
0x1bca   :  { %v6435_v30 = vpack.c.bf16 %v4176_v54, %v8594_v13  ;;  %6425 = vmatprep.subr.bf16.mxu1 %v7769_v38  ;;  %v7180_v13 = vpop.permute.xlu0 %7179 }
0x1bcb   :  { %v7182_v33 = vunpack.i.h.bf16 %v7180_v13  ;;  %v7181_v34 = vunpack.i.l.bf16 %v7180_v13 }
0x1bcc   :  { %v7185_v32 = vpop.permute.xlu1 %7184 }
0x1bcd   :  { %6427 = vmatpush1.bf16.msra.mxu1 %v6426_v11  ;;  %v6438_v2 = vpack.c.bf16 %v7182_v33, %v7181_v34  ;;  %v7186_v7 = vunpack.i.l.bf16 %v7185_v32  ;;  %v7187_v11 = vunpack.i.h.bf16 %v7185_v32 }
0x1bce   :  { %6428 = vmatprep.subr.bf16.mxu1 %v7769_v38  ;;  %v4169_v20 = vpop.permute.xlu0 %4168 }
0x1bcf   :  { %v4177_v35 = vsel %vm933_vm3, %v8629_v57, %v7186_v7  ;;  %v7559_v57 = vld [vmem:[#allocation7 + $0xb0] ss:$40 sps:$4 sm:$0xff]  }
0x1bd0   :  { %v6444_v44 = vpack.c.bf16 %v7187_v11, %v4177_v35  ;;  %v8700_v7 = vld [vmem:[%s8860_s7] sm:$0xff]  ;;  %v7796_v11 = vmov 20  }
0x1bd1   :  { %6430 = vmatpush1.bf16.msra.mxu1 %v6429_v21  ;;  %7190 = vset.pattern.permute.xlu0 %v7796_v11 }
0x1bd2   :  { %6431 = vmatprep.subr.bf16.mxu1 %v7769_v38 }
0x1bd5   :  { %6433 = vmatpush1.bf16.msra.mxu1 %v6432_v25 }
0x1bd6   :  { %6434 = vmatprep.subr.bf16.mxu1 %v7769_v38 }
0x1bd9   :  { %6436 = vmatpush1.bf16.msra.mxu1 %v6435_v30 }
0x1bda   :  { %6437 = vmatprep.subr.bf16.mxu1 %v7769_v38 }
0x1bdc   :  { %v4184_v61 = vpop.permute.xlu0 %4183 }
0x1bdd   :  { %6439 = vmatpush1.bf16.msra.mxu1 %v6438_v2  ;;  %v4180_v62 = vpop.permute.xlu1 %4179  ;;  %v7795_v2 = vmov 21  }
0x1bde   :  { %6440 = vmatprep.subr.bf16.mxu1 %v7769_v38  ;;  %7191 = vset.pattern.permute.xlu1 %v7795_v2 }
0x1be1   :  { %6442 = vmatpush1.bf16.msra.mxu1 %v6441_v50  ;;  %v7555_v50 = vld [vmem:[#allocation7 + $0x10] ss:$40 sps:$4 sm:$0xff]   ;;  %v4188_v14 = vpop.permute.xlu1 %4187 }
0x1be2   :  { %6443 = vmatprep.subr.bf16.mxu1 %v7769_v38 }
0x1be5   :  { %6445 = vmatpush1.bf16.msra.mxu1 %v6444_v44 }
0x1be6   :  { %4262 = vmatprep.subr.mxu1 %v7768_v0 }
0x1be9   :  { %4263 = vmatpush1.msra.mxu1 %v4169_v20 }
0x1bea   :  { %4279 = vmatmul.mubr.f32.vlgmr.msra.gmra.mrb[70].mxu1 %v4197_v48  ;;  %6479 = vmatprep.subr.bf16.mxu1 %v7554_v46 }
0x1beb   :  { %5353 = vmatprep.mubr.msk.f32.mxu1 %vm1875_vm11, %v4204_v40  ;;  %6481 = vmatpush1.bf16.msra.mxu1 %v7555_v50 }
0x1bec   :  { %6483 = vmatprep.subr.bf16.mxu1 %v7556_v51 }
0x1bee   :  { %4284 = vmatmul.mubr.f32.gmra.mrb[72].mxu1 %v4202_v36 }
0x1bef   :  { %5354 = vmatprep.mubr.msk.f32.mxu1 %vm1875_vm11, %v4203_v45  ;;  %6485 = vmatpush1.bf16.msra.mxu1 %v7557_v55 }
0x1bf0   :  { %6487 = vmatprep.subr.bf16.mxu1 %v7558_v56 }
0x1bf2   :  { %4289 = vmatmul.mubr.f32.gmra.mrb[74].mxu1 %v4201_v49 }
0x1bf3   :  { %6489 = vmatpush1.bf16.msra.mxu1 %v7559_v57  ;;  %4608 = vmatprep.mubr.f32.mxu1 %v7768_v0 }
0x1bf4   :  { %6491 = vmatprep.subr.bf16.mxu1 %v7560_v58 }
0x1bf7   :  { %6493 = vmatpush1.bf16.msra.mxu1 %v7561_v59 }
0x1bf8   :  { %6511 = vmatprep.subr.bf16.mxu1 %v7562_v60 }
0x1cbd   :  { %v4280_v63 = vpop.f32.mrb[70].mxu1 }
0x1cbe   :  { %v4281_v1 = vadd.f32 %v4280_v63, %v4180_v62  ;;  %v4282_v47 = vpop.f32.mrb[71].mxu1  ;;  %v7565_v62 = vld [vmem:[#allocation7 + $0x20] ss:$40 sps:$4 sm:$0xff]  }
0x1cbf   :  { %v7567_v47 = vld [vmem:[#allocation7 + $0x74] ss:$40 sps:$4 sm:$0xff]  }
0x1cc0   :  { %v4294_v42 = vmax.f32 %v4281_v1, 0.0  ;;  %v7566_v1 = vld [vmem:[#allocation7 + $0x5c] ss:$40 sps:$4 sm:$0xff]  }
0x1cc1   :  { %v4285_v5 = vpop.f32.mrb[72].mxu1 }
0x1cc2   :  { %v4286_v6 = vadd.f32 %v4285_v5, %v4184_v61  ;;  %v4287_v28 = vpop.f32.mrb[73].mxu1  ;;  %v4297_v8 = vsel %vm1041_vm7, %v4294_v42, 0.0  ;;  %v7569_v5 = vld [vmem:[#allocation7 + $0x70] ss:$40 sps:$4 sm:$0xff]  }
0x1cc3   :  { %4298 = vadd.xlane.f32.xlu1 %v4297_v8  ;;  %v7571_v28 = vld [vmem:[#allocation7 + $0xc4] ss:$40 sps:$4 sm:$0xff]  }
0x1cc4   :  { %v4295_v10 = vmax.f32 %v4286_v6, 0.0  ;;  %v7570_v6 = vld [vmem:[#allocation7 + $0xac] ss:$40 sps:$4 sm:$0xff]  }
0x1cc5   :  { %v4290_v16 = vpop.f32.mrb[74].mxu1 }
0x1cc6   :  { %v4291_v18 = vadd.f32 %v4290_v16, %v4188_v14  ;;  %v4292_v17 = vpop.f32.mrb[75].mxu1  ;;  %v4300_v9 = vsel %vm1041_vm7, %v4295_v10, 0.0  ;;  %v7572_v14 = vld [vmem:[#allocation7 + $0xa8] ss:$40 sps:$4 sm:$0xff]  }
0x1cc7   :  { %4301 = vadd.xlane.f32.xlu0 %v4300_v9  ;;  %v7573_v16 = vld [vmem:[#allocation7 + $0xc0] ss:$40 sps:$4 sm:$0xff]   ;;  %v7574_v17 = vld [vmem:[#allocation7 + $0xfc] ss:$40 sps:$4 sm:$0xff]  }
0x1cc8   :  { %v4296_v3 = vmax.f32 %v4291_v18, 0.0  ;;  %v7575_v9 = vld [vmem:[#allocation7 + $0x114] ss:$40 sps:$4 sm:$0xff]  }
0x1cca   :  { %v4303_v22 = vsel %vm1971_vm12, %v4296_v3, 0.0 }
0x1ccb   :  { %4304 = vadd.xlane.f32.xlu0 %v4303_v22  ;;  %v7577_v22 = vld [vmem:[#allocation7 + $0x110] ss:$40 sps:$4 sm:$0xff]  }
0x1d50   :  { %v4299_v24 = vpop.xlane.xlu1 %4298 }
0x1d51   :  { %v4306_v53 = vmul.f32 0.015625, %v4299_v24  ;;  %v7578_v24 = vld [vmem:[#allocation7 + $0x1c] ss:$40 sps:$4 sm:$0xff]  }
0x1d53   :  { %v4309_v26 = vsub.f32 %v4294_v42, %v4306_v53  ;;  %v7568_v42 = vld [vmem:[#allocation7 + $0x58] ss:$40 sps:$4 sm:$0xff]   ;;  %v7579_v53 = vld [vmem:[#allocation9 + $0x4] ss:$12 sps:$4 sm:$0xff]  }
0x1d54   :  { %v4302_v27 = vpop.xlane.xlu0 %4301 }
0x1d55   :  { %v4307_v54 = vmul.f32 0.015625, %v4302_v27  ;;  %v4312_v30 = vmul.f32 %v4309_v26, %v4309_v26  ;;  %v7581_v27 = vld [vmem:[#allocation7 + $0x6c] ss:$40 sps:$4 sm:$0xff]  }
0x1d57   :  { %v4310_v12 = vsub.f32 %v4295_v10, %v4307_v54  ;;  %v4315_v31 = vsel %vm1041_vm7, %v4312_v30, 0.0  ;;  %v7582_v54 = vld [vmem:[#allocation9] ss:$12 sps:$4 sm:$0xff]   ;;  %v7583_v30 = vld [vmem:[#allocation7 + $0x68] ss:$40 sps:$4 sm:$0xff]  }
0x1d58   :  { %v4305_v29 = vpop.xlane.xlu0 %4304  ;;  %4316 = vadd.xlane.f32.xlu1 %v4315_v31  ;;  %v7585_v31 = vld [vmem:[#allocation9 + $0x1c] ss:$12 sps:$4 sm:$0xff]  }
0x1d59   :  { %v4308_v21 = vmul.f32 0.015625, %v4305_v29  ;;  %v4313_v25 = vmul.f32 %v4310_v12, %v4310_v12  ;;  %v7586_v29 = vld [vmem:[#allocation7 + $0xb8] ss:$40 sps:$4 sm:$0xff]  }
0x1d5b   :  { %v8691_v13 = vsub.f32 %v4296_v3, %v4308_v21  ;;  %v4318_v33 = vsel %vm1041_vm7, %v4313_v25, 0.0  ;;  %v7576_v3 = vld [vmem:[#allocation7 + $0xf8] ss:$40 sps:$4 sm:$0xff]   ;;  %v7587_v21 = vld [vmem:[#allocation7 + $0x10c] ss:$40 sps:$4 sm:$0xff]  }
0x1d5c   :  { %4319 = vadd.xlane.f32.xlu0 %v4318_v33  ;;  %v7588_v25 = vld [vmem:[#allocation9 + $0x18] ss:$12 sps:$4 sm:$0xff]   ;;  %v7590_v33 = vld [vmem:[#allocation7 + $0x108] ss:$40 sps:$4 sm:$0xff]  }
0x1d5d   :  { %v4314_v34 = vmul.f32 %v8691_v13, %v8691_v13 }
0x1d5f   :  { %v4321_v32 = vsel %vm1971_vm12, %v4314_v34, 0.0  ;;  %v7591_v34 = vld [vmem:[#allocation9 + $0x30] ss:$12 sps:$4 sm:$0xff]  }
0x1d60   :  { %4322 = vadd.xlane.f32.xlu1 %v4321_v32  ;;  %v7592_v32 = vld [vmem:[#allocation9 + $0x4c] ss:$12 sps:$4 sm:$0xff]  }
0x1d71   :  { %4355 = vperm.xlu1 %7191, %v8700_v7  }
0x1d75   :  { %4359 = vperm.xlu1 %7191, %v8466_v19  }
0x1d79   :  { %7192 = vset.pattern.permute.xlu1 %v7796_v11  ;;  %v7594_v11 = vld [vmem:[#allocation9 + $0x64] ss:$12 sps:$4 sm:$0xff]  }
0x1de5   :  { %v4317_v35 = vpop.xlane.xlu1 %4316 }
0x1de6   :  { %v4324_v4 = vmul.f32 0.015625, %v4317_v35  ;;  %v7595_v35 = vld [vmem:[#allocation9 + $0x60] ss:$12 sps:$4 sm:$0xff]  }
0x1de8   :  { %v4327_v37 = vadd.f32 1e-05, %v4324_v4  ;;  %v7596_v4 = vld [vmem:[#allocation9 + $0x7c] ss:$12 sps:$4 sm:$0xff]  }
0x1de9   :  { %v4320_v39 = vpop.xlane.xlu0 %4319 }
0x1dea   :  { %7444 = vrsqrt.f32 %v4327_v37  ;;  %v4325_v44 = vmul.f32 0.015625, %v4320_v39  ;;  %v7597_v37 = vld [vmem:[#allocation9 + $0x78] ss:$12 sps:$4 sm:$0xff]   ;;  %v7598_v39 = vld [vmem:[#allocation9 + $0x94] ss:$12 sps:$4 sm:$0xff]  }
0x1dec   :  { %v4328_v23 = vadd.f32 1e-05, %v4325_v44  ;;  %v7599_v44 = vld [vmem:[#allocation9 + $0x90] ss:$12 sps:$4 sm:$0xff]  }
0x1ded   :  { %v4323_v45 = vpop.xlane.xlu1 %4322 }
0x1dee   :  { %7446 = vrsqrt.f32 %v4328_v23  ;;  %v4326_v41 = vmul.f32 0.015625, %v4323_v45  ;;  %v7600_v23 = vld [vmem:[#allocation9 + $0xac] ss:$12 sps:$4 sm:$0xff]   ;;  %v7601_v45 = vld [vmem:[#allocation9 + $0xa8] ss:$12 sps:$4 sm:$0xff]  }
0x1df0   :  { %v4329_v48 = vadd.f32 1e-05, %v4326_v41  ;;  %v598_v41 = vld [vmem:[#allocation10 + $0x118] sm:$0xff] }
0x1df1   :  { %v4356_v51 = vpop.permute.xlu1 %4355 }
0x1df2   :  { %7448 = vrsqrt.f32 %v4329_v48  ;;  %v7797_v48 = vmov 22  }
0x1df4   :  { %v7445_v49 = vpop.eup %7444 }
0x1df5   :  { %v4333_v20 = vmul.f32 %v8700_v7, %v7445_v49  ;;  %v4360_v55 = vpop.permute.xlu1 %4359  ;;  %v8766_v49 = vld [vmem:[%s8860_s7 + $0x8] sm:$0xff] }
0x1df7   :  { %4338 = vperm.xlu0 %7190, %v4333_v20  }
0x1df8   :  { %v7447_v40 = vpop.eup %7446 }
0x1df9   :  { %v4334_v46 = vmul.f32 %v8466_v19, %v7447_v40  ;;  %v7564_v19 = vld [vmem:[#allocation7 + $0x8] ss:$40 sps:$4 sm:$0xff]  }
0x1dfb   :  { %4343 = vperm.xlu1 %7192, %v4334_v46  }
0x1dfc   :  { %v7449_v36 = vpop.eup %7448 }
0x1dfd   :  { %v4335_v50 = vmul.f32 %v8511_v52, %v7449_v36 }
0x1dff   :  { %4348 = vperm.xlu1 %7192, %v4335_v50  }
0x1e03   :  { %7193 = vset.pattern.permute.xlu1 %v7795_v2  ;;  %v7593_v2 = vld [vmem:[#allocation9 + $0x48] ss:$12 sps:$4 sm:$0xff]  }
0x1e04   :  { %4363 = vperm.xlu1 %7193, %v8511_v52  }
0x1e08   :  { %7194 = vset.pattern.permute.xlu1 %v7797_v48 }
0x1e09   :  { %4854 = vperm.xlu1 %7194, %v8700_v7  }
0x1e0d   :  { %4858 = vperm.xlu1 %7194, %v8766_v49  }
0x1e11   :  { %4862 = vperm.xlu1 %7194, %v8511_v52  }
0x1e76   :  { %v4339_v56 = vpop.permute.xlu0 %4338 }
0x1e77   :  { %v4351_v57 = vmul.f32 %v4339_v56, %v4309_v26  ;;  %v7580_v26 = vld [vmem:[#allocation7 + $0x18] ss:$40 sps:$4 sm:$0xff]  }
0x1e79   :  { %v8708_v58 = vadd.f32 %v4356_v51, %v4351_v57 }
0x1e7a   :  { %v4344_v59 = vpop.permute.xlu1 %4343 }
0x1e7b   :  { %v4352_v60 = vmul.f32 %v4344_v59, %v4310_v12  ;;  %5355 = vmatmul.mubr.msk.f32.vlgmr.msra.gmra.mrb[70].mxu0 %vm1041_vm7, %v8708_v58  ;;  %5361 = vmatmul.mubr.msk.f32.vlgmr.msra.gmra.mrb[76].mxu1 %vm1041_vm7, %v8708_v58  ;;  %v7584_v12 = vld [vmem:[#allocation7 + $0xbc] ss:$40 sps:$4 sm:$0xff]  }
0x1e7c   :  { %6465 = vmatpush1.bf16.msra.mxu0 %v7564_v19  ;;  %6513 = vmatpush1.bf16.msra.mxu1 %v7565_v62 }
0x1e7d   :  { %v8714_v63 = vadd.f32 %v4360_v55, %v4352_v60  ;;  %4448 = vmatprep.mubr.f32.mxu0 %v7768_v0  ;;  %6467 = vmatprep.subr.bf16.mxu0 %v7566_v1 }
0x1e7e   :  { %4614 = vmatprep.mubr.f32.mxu1 %v7768_v0  ;;  %6515 = vmatprep.subr.bf16.mxu1 %v7567_v47  ;;  %v4349_v61 = vpop.permute.xlu1 %4348 }
0x1e7f   :  { %5356 = vmatmul.mubr.msk.f32.gmra.mrb[72].mxu0 %vm1041_vm7, %v8714_v63  ;;  %5362 = vmatmul.mubr.msk.f32.gmra.mrb[78].mxu1 %vm1041_vm7, %v8714_v63  ;;  %v4353_v8 = vmul.f32 %v4349_v61, %v8691_v13  ;;  %v7589_v13 = vld [vmem:[#allocation9 + $0x34] ss:$12 sps:$4 sm:$0xff]  }
0x1e80   :  { %6469 = vmatpush1.bf16.msra.mxu0 %v7568_v42  ;;  %6517 = vmatpush1.bf16.msra.mxu1 %v7569_v5 }
0x1e81   :  { %6471 = vmatprep.subr.bf16.mxu0 %v7570_v6  ;;  %6519 = vmatprep.subr.bf16.mxu1 %v7571_v28 }
0x1e82   :  { %4454 = vmatprep.mubr.f32.mxu0 %v7768_v0  ;;  %4620 = vmatprep.mubr.f32.mxu1 %v7768_v0 }
0x1e83   :  { %v4364_v10 = vpop.permute.xlu1 %4363 }
0x1e84   :  { %6473 = vmatpush1.bf16.msra.mxu0 %v7572_v14  ;;  %6521 = vmatpush1.bf16.msra.mxu1 %v7573_v16  ;;  %v8725_v18 = vadd.f32 %v4364_v10, %v4353_v8 }
0x1e85   :  { %6475 = vmatprep.subr.bf16.mxu0 %v7574_v17  ;;  %6523 = vmatprep.subr.bf16.mxu1 %v7575_v9 }
0x1e86   :  { %5357 = vmatmul.mubr.msk.f32.gmra.mrb[74].mxu0 %vm1041_vm7, %v8725_v18  ;;  %5363 = vmatmul.mubr.msk.f32.gmra.mrb[80].mxu1 %vm1041_vm7, %v8725_v18 }
0x1e87   :  { %4525 = vmatprep.mubr.f32.mxu0 %v7768_v0  ;;  %4774 = vmatprep.mubr.f32.mxu1 %v7768_v0 }
0x1e88   :  { %6477 = vmatpush1.bf16.msra.mxu0 %v7576_v3  ;;  %6525 = vmatpush1.bf16.msra.mxu1 %v7577_v22 }
0x1e89   :  { %6495 = vmatprep.subr.bf16.mxu0 %v7578_v24  ;;  %6563 = vmatprep.subr.bf16.mxu1 %v7579_v53 }
0x1e8b   :  { %5358 = vmatmul.mubr.msk.f32.vlgmr.msra.gmra.mrb[76].mxu0 %vm1041_vm7, %v8708_v58  ;;  %5367 = vmatmul.mubr.msk.f32.vlgmr.msra.gmra.mrb[82].mxu1 %vm1041_vm7, %v8708_v58 }
0x1e8c   :  { %6497 = vmatpush1.bf16.msra.mxu0 %v7580_v26  ;;  %4531 = vmatprep.mubr.f32.mxu0 %v7768_v0 }
0x1e8d   :  { %4780 = vmatprep.mubr.f32.mxu1 %v7768_v0  ;;  %6499 = vmatprep.subr.bf16.mxu0 %v7581_v27 }
0x1e8e   :  { %6565 = vmatpush1.bf16.msra.mxu1 %v7582_v54 }
0x1e8f   :  { %5359 = vmatmul.mubr.msk.f32.gmra.mrb[78].mxu0 %vm1041_vm7, %v8714_v63  ;;  %5368 = vmatmul.mubr.msk.f32.gmra.mrb[84].mxu1 %vm1041_vm7, %v8714_v63 }
0x1e90   :  { %6501 = vmatpush1.bf16.msra.mxu0 %v7583_v30  ;;  %4537 = vmatprep.mubr.f32.mxu0 %v7768_v0 }
0x1e91   :  { %4786 = vmatprep.mubr.f32.mxu1 %v7768_v0  ;;  %6503 = vmatprep.subr.bf16.mxu0 %v7584_v12 }
0x1e92   :  { %6567 = vmatprep.subr.bf16.mxu1 %v7585_v31 }
0x1e93   :  { %5360 = vmatmul.mubr.msk.f32.gmra.mrb[80].mxu0 %vm1041_vm7, %v8725_v18  ;;  %5369 = vmatmul.mubr.msk.f32.gmra.mrb[86].mxu1 %vm1041_vm7, %v8725_v18 }
0x1e94   :  { %6505 = vmatpush1.bf16.msra.mxu0 %v7586_v29  ;;  %4691 = vmatprep.mubr.f32.mxu0 %v7768_v0 }
0x1e95   :  { %6507 = vmatprep.subr.bf16.mxu0 %v7587_v21  ;;  %6569 = vmatpush1.bf16.msra.mxu1 %v7588_v25 }
0x1e96   :  { %6571 = vmatprep.subr.bf16.mxu1 %v7589_v13  ;;  %5089 = vmatprep.mubr.f32.mxu1 %v7768_v0 }
0x1e98   :  { %6509 = vmatpush1.bf16.msra.mxu0 %v7590_v33 }
0x1e99   :  { %6526 = vmatprep.subr.bf16.mxu0 %v7769_v38  ;;  %6573 = vmatpush1.bf16.msra.mxu1 %v7591_v34 }
0x1e9a   :  { %6575 = vmatprep.subr.bf16.mxu1 %v7592_v32 }
0x1e9b   :  { %5364 = vmatmul.mubr.msk.f32.vlgmr.msra.gmra.mrb[82].mxu0 %vm1041_vm7, %v8708_v58 }
0x1e9c   :  { %4697 = vmatprep.mubr.f32.mxu0 %v7768_v0 }
0x1e9d   :  { %6577 = vmatpush1.bf16.msra.mxu1 %v7593_v2 }
0x1e9e   :  { %6579 = vmatprep.subr.bf16.mxu1 %v7594_v11 }
0x1e9f   :  { %5365 = vmatmul.mubr.msk.f32.gmra.mrb[84].mxu0 %vm1041_vm7, %v8714_v63 }
0x1ea0   :  { %4703 = vmatprep.mubr.f32.mxu0 %v7768_v0 }
0x1ea1   :  { %6581 = vmatpush1.bf16.msra.mxu1 %v7595_v35 }
0x1ea2   :  { %6583 = vmatprep.subr.bf16.mxu1 %v7596_v4 }
0x1ea3   :  { %5366 = vmatmul.mubr.msk.f32.gmra.mrb[86].mxu0 %vm1041_vm7, %v8725_v18 }
0x1ea4   :  { %5370 = vmatprep.mubr.msk.f32.mxu0 %vm1875_vm11, %v598_v41 }
0x1ea5   :  { %6585 = vmatpush1.bf16.msra.mxu1 %v7597_v37 }
0x1ea6   :  { %6587 = vmatprep.subr.bf16.mxu1 %v7598_v39 }
0x1ea9   :  { %6589 = vmatpush1.bf16.msra.mxu1 %v7599_v44 }
0x1eaa   :  { %6591 = vmatprep.subr.bf16.mxu1 %v7600_v23 }
0x1ead   :  { %6593 = vmatpush1.bf16.msra.mxu1 %v7601_v45 }
0x1eae   :  { %6594 = vmatprep.subr.bf16.mxu1 %v7769_v38 }
0x1f4e   :  { %v4444_v20 = vpop.f32.mrb[70].mxu0  ;;  %v8770_v40 = vpop.f32.mrb[76].mxu1 }
0x1f4f   :  { %v4446_v46 = vpop.f32.mrb[71].mxu0  ;;  %v4612_v36 = vpop.f32.mrb[77].mxu1 }
0x1f50   :  { %v4796_v59 = vrot.slane %v4446_v46, 4  ;;  %v4818_v60 = vrot.slane %v4612_v36, 4 }
0x1f52   :  { %v4450_v50 = vpop.f32.mrb[72].mxu0  ;;  %v8772_v51 = vpop.f32.mrb[78].mxu1 }
0x1f53   :  { %v6527_v55 = vpack.c.bf16 %v4450_v50, %v4444_v20  ;;  %v6542_v56 = vpack.c.bf16 %v8772_v51, %v8770_v40  ;;  %v4452_v57 = vpop.f32.mrb[73].mxu0  ;;  %v4618_v58 = vpop.f32.mrb[79].mxu1  ;;  %v597_v51 = vld [vmem:[#allocation10 + $0x110] sm:$0xff] }
0x1f54   :  { %v4797_v19 = vrot.slane %v4452_v57, 4  ;;  %v4819_v62 = vrot.slane %v4618_v58, 4 }
0x1f55   :  { %6528 = vmatpush1.bf16.msra.mxu0 %v6527_v55 }
0x1f56   :  { %v4798_v52 = vsel %vm933_vm3, %v4796_v59, %v4797_v19  ;;  %v4820_v63 = vsel %vm933_vm3, %v4818_v60, %v4819_v62  ;;  %6529 = vmatprep.subr.bf16.mxu0 %v7769_v38 }
0x1f59   :  { %v4456_v1 = vpop.f32.mrb[74].mxu0  ;;  %v4622_v47 = vpop.f32.mrb[80].mxu1 }
0x1f5a   :  { %v4848_v61 = vsel %vm933_vm3, %v4456_v1, %v4796_v59  ;;  %v4850_v42 = vsel %vm933_vm3, %v4622_v47, %v4818_v60  ;;  %v4458_v5 = vpop.f32.mrb[75].mxu0  ;;  %v4624_v6 = vpop.f32.mrb[81].mxu1  ;;  %v599_v1 = vld [vmem:[#allocation10 + $0x120] sm:$0xff]  ;;  %v602_v47 = vld [vmem:[#allocation10 + $0x138] sm:$0xff] }
0x1f5b   :  { %v6530_v28 = vpack.c.bf16 %v4798_v52, %v4848_v61  ;;  %v6545_v8 = vpack.c.bf16 %v4820_v63, %v4850_v42  ;;  %v4799_v10 = vrot.slane %v4458_v5, 4  ;;  %v4821_v14 = vrot.slane %v4624_v6, 4  ;;  %v8809_v61 = vld [vmem:[#allocation10 + $0x130] sm:$0xff]  ;;  %v4855_v42 = vpop.permute.xlu1 %4854 }
0x1f5d   :  { %v4800_v16 = vsel %vm933_vm3, %v4797_v19, %v4799_v10  ;;  %6531 = vmatpush1.bf16.msra.mxu0 %v6530_v28  ;;  %v4822_v18 = vsel %vm933_vm3, %v4819_v62, %v4821_v14 }
0x1f5e   :  { %v4527_v17 = vpop.f32.mrb[76].mxu0  ;;  %v4776_v9 = vpop.f32.mrb[82].mxu1  ;;  %6532 = vmatprep.subr.bf16.mxu0 %v7769_v38 }
0x1f5f   :  { %v6533_v3 = vpack.c.bf16 %v4527_v17, %v4800_v16  ;;  %v4529_v22 = vpop.f32.mrb[77].mxu0  ;;  %v4778_v24 = vpop.f32.mrb[83].mxu1 }
0x1f60   :  { %v4807_v12 = vrot.slane %v4529_v22, 4  ;;  %v4840_v31 = vrot.slane %v4778_v24, 4 }
0x1f61   :  { %6534 = vmatpush1.bf16.msra.mxu0 %v6533_v3 }
0x1f62   :  { %v4533_v53 = vpop.f32.mrb[78].mxu0  ;;  %v4782_v26 = vpop.f32.mrb[84].mxu1  ;;  %6535 = vmatprep.subr.bf16.mxu0 %v7769_v38 }
0x1f63   :  { %v6557_v27 = vpack.c.bf16 %v4782_v26, %v4776_v9  ;;  %v4535_v54 = vpop.f32.mrb[79].mxu0  ;;  %v4784_v30 = vpop.f32.mrb[85].mxu1 }
0x1f64   :  { %v4808_v29 = vrot.slane %v4535_v54, 4  ;;  %v4841_v21 = vrot.slane %v4784_v30, 4 }
0x1f66   :  { %v4809_v25 = vsel %vm933_vm3, %v4807_v12, %v4808_v29  ;;  %v4539_v13 = vpop.f32.mrb[80].mxu0  ;;  %v4788_v33 = vpop.f32.mrb[86].mxu1  ;;  %v4842_v34 = vsel %vm933_vm3, %v4840_v31, %v4841_v21 }
0x1f67   :  { %v4849_v32 = vsel %vm933_vm3, %v4539_v13, %v4807_v12  ;;  %v4852_v2 = vsel %vm933_vm3, %v4788_v33, %v4840_v31  ;;  %v4541_v11 = vpop.f32.mrb[81].mxu0  ;;  %v4790_v35 = vpop.f32.mrb[87].mxu1 }
0x1f68   :  { %v6536_v4 = vpack.c.bf16 %v4849_v32, %v4533_v53  ;;  %v6560_v37 = vpack.c.bf16 %v4842_v34, %v4852_v2  ;;  %v4810_v39 = vrot.slane %v4541_v11, 4  ;;  %v4843_v44 = vrot.slane %v4790_v35, 4 }
0x1f69   :  { %v7798_v11 = vmov 23   ;;  %v7799_v35 = vmov 24  }
0x1f6a   :  { %v4811_v23 = vsel %vm933_vm3, %v4808_v29, %v4810_v39  ;;  %6537 = vmatpush1.bf16.msra.mxu0 %v6536_v4  ;;  %v4844_v45 = vsel %vm933_vm3, %v4841_v21, %v4843_v44  ;;  %7195 = vset.pattern.permute.xlu1 %v7798_v11 }
0x1f6b   :  { %v6539_v41 = vpack.c.bf16 %v4811_v23, %v4809_v25  ;;  %6538 = vmatprep.subr.bf16.mxu0 %v7769_v38  ;;  %7196 = vset.pattern.permute.xlu0 %v7799_v35 }
0x1f6e   :  { %v4693_v48 = vpop.f32.mrb[82].mxu0  ;;  %6540 = vmatpush1.bf16.msra.mxu0 %v6539_v41 }
0x1f6f   :  { %v6548_v20 = vpack.c.bf16 %v4693_v48, %v4822_v18  ;;  %v4695_v46 = vpop.f32.mrb[83].mxu0  ;;  %6541 = vmatprep.subr.bf16.mxu0 %v7769_v38 }
0x1f70   :  { %v4829_v55 = vrot.slane %v4695_v46, 4 }
0x1f72   :  { %v4699_v36 = vpop.f32.mrb[84].mxu0  ;;  %6543 = vmatpush1.bf16.msra.mxu0 %v6542_v56  ;;  %v600_v56 = vld [vmem:[#allocation10 + $0x128] sm:$0xff] }
0x1f73   :  { %v4701_v50 = vpop.f32.mrb[85].mxu0  ;;  %6544 = vmatprep.subr.bf16.mxu0 %v7769_v38 }
0x1f74   :  { %v4830_v57 = vrot.slane %v4701_v50, 4 }
0x1f76   :  { %v4831_v58 = vsel %vm933_vm3, %v4829_v55, %v4830_v57  ;;  %v4705_v59 = vpop.f32.mrb[86].mxu0  ;;  %6546 = vmatpush1.bf16.msra.mxu0 %v6545_v8  ;;  %v4859_v8 = vpop.permute.xlu1 %4858 }
0x1f77   :  { %v4851_v60 = vsel %vm933_vm3, %v4705_v59, %v4829_v55  ;;  %v4707_v19 = vpop.f32.mrb[87].mxu0  ;;  %6547 = vmatprep.subr.bf16.mxu0 %v7769_v38 }
0x1f78   :  { %v6551_v62 = vpack.c.bf16 %v4851_v60, %v4699_v36  ;;  %v4832_v52 = vrot.slane %v4707_v19, 4 }
0x1f7a   :  { %v4833_v63 = vsel %vm933_vm3, %v4830_v57, %v4832_v52  ;;  %6549 = vmatpush1.bf16.msra.mxu0 %v6548_v20  ;;  %v4863_v9 = vpop.permute.xlu1 %4862 }
0x1f7b   :  { %v6554_v40 = vpack.c.bf16 %v4833_v63, %v4831_v58  ;;  %6550 = vmatprep.subr.bf16.mxu0 %v7769_v38  ;;  %v7603_v58 = vld [vmem:[%s8860_s7 + $0x10] sm:$0xf] }
0x1f7e   :  { %6552 = vmatpush1.bf16.msra.mxu0 %v6551_v62 }
0x1f7f   :  { %6553 = vmatprep.subr.bf16.mxu0 %v7769_v38 }
0x1f82   :  { %6555 = vmatpush1.bf16.msra.mxu0 %v6554_v40  ;;  %v7604_v40 = vld [vmem:[#allocation9 + $0x8] ss:$12 sps:$4 sm:$0xff]  }
0x1f83   :  { %6556 = vmatprep.subr.bf16.mxu0 %v7769_v38 }
0x1f86   :  { %6558 = vmatpush1.bf16.msra.mxu0 %v6557_v27 }
0x1f87   :  { %6559 = vmatprep.subr.bf16.mxu0 %v7769_v38 }
0x1f8a   :  { %6561 = vmatpush1.bf16.msra.mxu0 %v6560_v37 }
0x1f8b   :  { %4922 = vmatprep.subr.mxu0 %v7768_v0 }
0x1f8e   :  { %4923 = vmatpush1.msra.mxu0 %v4844_v45 }
0x1f8f   :  { %4939 = vmatmul.mubr.f32.vlgmr.msra.gmra.mrb[88].mxu0 %v597_v51  ;;  %6618 = vmatprep.subr.bf16.mxu0 %v7769_v38 }
0x1f90   :  { %5371 = vmatprep.mubr.msk.f32.mxu0 %vm1875_vm11, %v600_v56 }
0x1f93   :  { %4944 = vmatmul.mubr.f32.gmra.mrb[90].mxu0 %v599_v1 }
0x1f94   :  { %5372 = vmatprep.mubr.msk.f32.mxu0 %vm1875_vm11, %v602_v47  ;;  %v7606_v47 = vld [vmem:[#allocation9 + $0x38] ss:$12 sps:$4 sm:$0xff]  }
0x1f97   :  { %4949 = vmatmul.mubr.f32.gmra.mrb[92].mxu0 %v8809_v61 }
0x1f98   :  { %5734 = vmatprep.mubr.msk.f32.mxu0 %vm7770_vm0, %v7768_v0 }
0x2062   :  { %v4940_v5 = vpop.f32.mrb[88].mxu0 }
0x2063   :  { %v4941_v6 = vadd.f32 %v4940_v5, %v4855_v42  ;;  %v4942_v28 = vpop.f32.mrb[89].mxu0 }
0x2065   :  { %v4954_v10 = vmax.f32 %v4941_v6, 0.0  ;;  %v7607_v6 = vld [vmem:[#allocation9 + $0x50] ss:$12 sps:$4 sm:$0xff]  }
0x2066   :  { %v4945_v14 = vpop.f32.mrb[90].mxu0 }
0x2067   :  { %v4946_v16 = vadd.f32 %v4945_v14, %v4859_v8  ;;  %4957 = vadd.xlane.f32.xlu0 %v4954_v10  ;;  %v4947_v18 = vpop.f32.mrb[91].mxu0  ;;  %v7609_v14 = vld [vmem:[#allocation9 + $0x80] ss:$12 sps:$4 sm:$0xff]  }
0x2068   :  { %v7611_v18 = vld [vmem:[#allocation9 + $0xb0] ss:$12 sps:$4 sm:$0xff]  }
0x2069   :  { %v4955_v17 = vmax.f32 %v4946_v16, 0.0  ;;  %v7610_v16 = vld [vmem:[#allocation9 + $0x98] ss:$12 sps:$4 sm:$0xff]  }
0x206a   :  { %v4950_v3 = vpop.f32.mrb[92].mxu0 }
0x206b   :  { %v4951_v22 = vadd.f32 %v4950_v3, %v4863_v9  ;;  %4959 = vadd.xlane.f32.xlu1 %v4955_v17  ;;  %v4952_v24 = vpop.f32.mrb[93].mxu0 }
0x206d   :  { %v4956_v53 = vmax.f32 %v4951_v22, 0.0 }
0x206f   :  { %v4961_v26 = vsel %vm933_vm3, %v4956_v53, 0.0 }
0x2070   :  { %4962 = vadd.xlane.f32.xlu0 %v4961_v26 }
0x20f4   :  { %v4958_v27 = vpop.xlane.xlu0 %4957 }
0x20f5   :  { %v4964_v54 = vmul.f32 0.0078125, %v4958_v27 }
0x20f7   :  { %v4967_v30 = vsub.f32 %v4954_v10, %v4964_v54  ;;  %v7608_v10 = vld [vmem:[#allocation9 + $0x68] ss:$12 sps:$4 sm:$0xff]  }
0x20f8   :  { %v4960_v12 = vpop.xlane.xlu1 %4959 }
0x20f9   :  { %v4965_v31 = vmul.f32 0.0078125, %v4960_v12  ;;  %v4970_v29 = vmul.f32 %v4967_v30, %v4967_v30 }
0x20fb   :  { %v4968_v21 = vsub.f32 %v4955_v17, %v4965_v31  ;;  %4973 = vadd.xlane.f32.xlu0 %v4970_v29  ;;  %v7800_v17 = vmov 25  }
0x20fd   :  { %v4963_v25 = vpop.xlane.xlu0 %4962  ;;  %v4971_v13 = vmul.f32 %v4968_v21, %v4968_v21 }
0x20fe   :  { %v4966_v33 = vmul.f32 0.0078125, %v4963_v25 }
0x20ff   :  { %4975 = vadd.xlane.f32.xlu1 %v4971_v13 }
0x2100   :  { %v4969_v34 = vsub.f32 %v4956_v53, %v4966_v33 }
0x2102   :  { %v4972_v32 = vmul.f32 %v4969_v34, %v4969_v34 }
0x2104   :  { %v4977_v2 = vsel %vm933_vm3, %v4972_v32, 0.0 }
0x2105   :  { %4978 = vadd.xlane.f32.xlu0 %v4977_v2 }
0x211b   :  { %5011 = vperm.xlu0 %7196, %v8700_v7  }
0x211f   :  { %7201 = vset.pattern.permute.xlu0 %v7800_v17 }
0x2188   :  { %v4974_v4 = vpop.xlane.xlu0 %4973 }
0x2189   :  { %v4980_v37 = vmul.f32 0.0078125, %v4974_v4 }
0x218b   :  { %v4983_v39 = vadd.f32 1e-05, %v4980_v37 }
0x218c   :  { %v4976_v44 = vpop.xlane.xlu1 %4975 }
0x218d   :  { %7450 = vrsqrt.f32 %v4983_v39  ;;  %v4981_v23 = vmul.f32 0.0078125, %v4976_v44 }
0x218f   :  { %v4984_v45 = vadd.f32 1e-05, %v4981_v23 }
0x2191   :  { %7452 = vrsqrt.f32 %v4984_v45 }
0x2192   :  { %v4979_v41 = vpop.xlane.xlu0 %4978 }
0x2193   :  { %v4982_v48 = vmul.f32 0.0078125, %v4979_v41 }
0x2195   :  { %v4985_v20 = vadd.f32 1e-05, %v4982_v48 }
0x2197   :  { %v7451_v46 = vpop.eup %7450  ;;  %7454 = vrsqrt.f32 %v4985_v20 }
0x2198   :  { %v4989_v36 = vmul.f32 %v8700_v7, %v7451_v46 }
0x219a   :  { %4994 = vperm.xlu1 %7195, %v4989_v36   ;;  %v5012_v19 = vpop.permute.xlu0 %5011 }
0x219b   :  { %v7453_v50 = vpop.eup %7452 }
0x219c   :  { %v4990_v55 = vmul.f32 %v8766_v49, %v7453_v50 }
0x219e   :  { %7197 = vset.pattern.permute.xlu1 %v7799_v35 }
0x219f   :  { %5015 = vperm.xlu1 %7197, %v8766_v49   ;;  %v7605_v49 = vld [vmem:[#allocation9 + $0x20] ss:$12 sps:$4 sm:$0xff]  }
0x21a1   :  { %v7455_v57 = vpop.eup %7454 }
0x21a2   :  { %v4991_v59 = vmul.f32 %v7603_v58, %v7455_v57 }
0x21a3   :  { %7198 = vset.pattern.permute.xlu1 %v7798_v11 }
0x21a4   :  { %4999 = vperm.xlu1 %7198, %v4990_v55  }
0x21a8   :  { %5004 = vperm.xlu1 %7198, %v4991_v59  }
0x21ac   :  { %7199 = vset.pattern.permute.xlu1 %v7799_v35  ;;  %v5205_v35 = vrot.slane %v8809_v61, 4 }
0x21ad   :  { %5019 = vperm.xlu1 %7199, %v7603_v58  }
0x21b1   :  { %7200 = vset.pattern.permute.xlu1 %v7800_v17 }
0x21b2   :  { %5201 = vperm.xlu1 %7200, %v8700_v7  }
0x2219   :  { %v4995_v60 = vpop.permute.xlu1 %4994 }
0x221a   :  { %v5007_v62 = vmul.f32 %v4995_v60, %v4967_v30 }
0x221c   :  { %v5022_v52 = vadd.f32 %v5012_v19, %v5007_v62 }
0x221e   :  { %5090 = vmatmul.mubr.f32.vlgmr.msra.gmra.mrb[88].mxu1 %v5022_v52  ;;  %v5016_v63 = vpop.permute.xlu1 %5015 }
0x221f   :  { %6596 = vmatpush3.bf16.msra.mxu1 %v7604_v40  ;;  %5095 = vmatprep.mubr.f32.mxu1 %v7768_v0 }
0x2220   :  { %6597 = vmatprep.subr.bf16.mxu1 %v7769_v38 }
0x2223   :  { %6599 = vmatpush3.bf16.msra.mxu1 %v7605_v49  ;;  %v5000_v51 = vpop.permute.xlu1 %4999 }
0x2224   :  { %v5008_v56 = vmul.f32 %v5000_v51, %v4968_v21  ;;  %6600 = vmatprep.subr.bf16.mxu1 %v7769_v38 }
0x2226   :  { %v5023_v1 = vadd.f32 %v5016_v63, %v5008_v56 }
0x2227   :  { %6602 = vmatpush3.bf16.msra.mxu1 %v7606_v47  ;;  %v5005_v42 = vpop.permute.xlu1 %5004 }
0x2228   :  { %5096 = vmatmul.mubr.f32.gmra.mrb[90].mxu1 %v5023_v1  ;;  %6603 = vmatprep.subr.bf16.mxu1 %v7769_v38  ;;  %v5009_v5 = vmul.f32 %v5005_v42, %v4969_v34 }
0x2229   :  { %5101 = vmatprep.mubr.f32.mxu1 %v7768_v0 }
0x222b   :  { %6605 = vmatpush3.bf16.msra.mxu1 %v7607_v6 }
0x222c   :  { %v5020_v28 = vpop.permute.xlu1 %5019  ;;  %6606 = vmatprep.subr.bf16.mxu1 %v7769_v38 }
0x222d   :  { %v5024_v8 = vadd.f32 %v5020_v28, %v5009_v5 }
0x222f   :  { %6608 = vmatpush3.bf16.msra.mxu1 %v7608_v10 }
0x2230   :  { %5102 = vmatmul.mubr.f32.gmra.mrb[92].mxu1 %v5024_v8  ;;  %6609 = vmatprep.subr.bf16.mxu1 %v7769_v38 }
0x2231   :  { %5709 = vmatprep.mubr.msk.f32.mxu1 %vm7770_vm0, %v7768_v0  ;;  %v5202_v4 = vpop.permute.xlu1 %5201 }
0x2233   :  { %6611 = vmatpush3.bf16.msra.mxu1 %v7609_v14 }
0x2234   :  { %6612 = vmatprep.subr.bf16.mxu1 %v7769_v38 }
0x2237   :  { %6614 = vmatpush3.bf16.msra.mxu1 %v7610_v16 }
0x2238   :  { %6615 = vmatprep.subr.bf16.mxu1 %v7769_v38 }
0x223b   :  { %6617 = vmatpush3.bf16.msra.mxu1 %v7611_v18 }
0x223e   :  { %5710 = vmatmul.mubr.f32.vlgmr.msra.gmra.mrb[94].mxu1 %v5022_v52 }
0x223f   :  { %5712 = vmatprep.mubr.msk.f32.mxu1 %vm7770_vm0, %v7768_v0 }
0x2242   :  { %5713 = vmatmul.mubr.f32.gmra.mrb[96].mxu1 %v5023_v1 }
0x2243   :  { %5715 = vmatprep.mubr.msk.f32.mxu1 %vm7770_vm0, %v7768_v0 }
0x2246   :  { %5716 = vmatmul.mubr.f32.gmra.mrb[98].mxu1 %v5024_v8 }
0x22f1   :  { %v5091_v9 = vpop.f32.mrb[88].mxu1 }
0x22f2   :  { %v5093_v3 = vpop.f32.mrb[89].mxu1 }
0x22f3   :  { %v5191_v26 = vrot.slane %v5093_v3, 4 }
0x22fb   :  { %v5097_v22 = vpop.f32.mrb[90].mxu1 }
0x22fc   :  { %v6619_v24 = vpack.c.bf16 %v5097_v22, %v5091_v9  ;;  %v5099_v53 = vpop.f32.mrb[91].mxu1 }
0x22fd   :  { %v5192_v27 = vrot.slane %v5099_v53, 4 }
0x22fe   :  { %6620 = vmatpush3.bf16.msra.mxu0 %v6619_v24 }
0x22ff   :  { %v5193_v54 = vsel %vm933_vm3, %v5191_v26, %v5192_v27  ;;  %6621 = vmatprep.subr.bf16.mxu0 %v7769_v38 }
0x2303   :  { %v5103_v30 = vpop.f32.mrb[92].mxu1 }
0x2304   :  { %v5199_v0 = vsel %vm933_vm3, %v5103_v30, %v5191_v26  ;;  %v5105_v12 = vpop.f32.mrb[93].mxu1 }
0x2305   :  { %v6622_v31 = vpack.c.bf16 %v5193_v54, %v5199_v0  ;;  %v5194_v29 = vrot.slane %v5105_v12, 4 }
0x2307   :  { %6623 = vmatpush3.bf16.msra.mxu0 %v6622_v31  ;;  %v5195_v7 = vsel %vm933_vm3, %v5192_v27, %v5194_v29 }
0x2308   :  { %6624 = vmatprep.subr.bf16.mxu0 %v7769_v38 }
0x2311   :  { %v5174_v21 = vpop.f32.mrb[94].mxu1 }
0x2312   :  { %v6625_v25 = vpack.c.bf16 %v5174_v21, %v5195_v7  ;;  %v5711_v13 = vpop.f32.mrb[95].mxu1 }
0x2314   :  { %6626 = vmatpush3.bf16.msra.mxu0 %v6625_v25 }
0x2315   :  { %v5179_v33 = vpop.f32.mrb[96].mxu1  ;;  %6627 = vmatprep.subr.bf16.mxu0 %v7769_v38 }
0x2316   :  { %v5714_v34 = vpop.f32.mrb[97].mxu1 }
0x2319   :  { %v5184_v32 = vpop.f32.mrb[98].mxu1 }
0x231a   :  { %v6628_v2 = vpack.c.bf16 %v5184_v32, %v5179_v33  ;;  %v5717_v11 = vpop.f32.mrb[99].mxu1 }
0x231c   :  { %6630 = vmatpush3.bf16.msk.msra.mxu0 %vm7975_vm6, %v6628_v2 }
0x231f   :  { %5735 = vmatmul.mubr.msk.f32.vlgmr.msra.gmra.mrb[94].mxu0 %vm2876_vm13, %v5205_v35 }
0x23f2   :  { %v5277_v37 = vpop.f32.mrb[94].mxu0 }
0x23f3   :  { %v5278_v39 = vadd.f32 %v5277_v37, %v5202_v4  ;;  %v5736_v44 = vpop.f32.mrb[95].mxu0 }
0x23f5   :  { %v5281_v23 = vadd.f32 %v5278_v39, %v8411_v15 }
0x23f7   :  { %5282 = vst [vmem:[%s8861_s8] sm:$0x3] %v5281_v23 }
0x23f8   :  { %5287 = vsyncpa [#allocation3], 1 }
0x23f9   :  { %5288 = vsyncpa [#allocation5], 1 }
0x23fa   :  { %5289 = vsyncpa [#allocation8], 1 }
0x23fb   :  { %5290 = vsyncpa [#allocation11], 1 }

</bundles_post_ra>
